<compile_context>
chip_gen: v7x
topology: tpu7x:2x2x1
jax: 0.10.0
libtpu: 0.0.40
codegen_flags: <defaults>
</compile_context>

<pallas_src>
import numpy as np
import jax
import jax.numpy as jnp
from jax import lax
from jax.experimental import pallas as pl
from jax.experimental.pallas import tpu as pltpu

# ---------------- model config (small, but shape-faithful to the module) ----------------
T, B = 2, 2
C_IN = 3
H = W = 14            # multiple of 7 => AdaptiveAvgPool2d((7,7)) is a uniform kh x kw pool
C_FEAT = 512          # classifier expects 512 channels: Linear(512*7*7, num_classes)
NUM_CLASSES = 10
POOL_HW = 7
F_IN = C_FEAT * POOL_HW * POOL_HW   # 25088
SPB = 2               # samples per grid step (keeps >=2 parallel steps for v7x's 2 TCs)


# ------------------------------------ fused Pallas kernel -------------------------------
def vgg_fused_kernel(p_ref, wc_ref, bc_ref, pool_ref, wcls_ref, bcls_ref, o_ref):
    # p_ref    : (1, SPB*HW, 9*Cin)  bf16  im2col patches for SPB samples
    # wc_ref   : (9*Cin, 512)        bf16  conv weight
    # bc_ref   : (1, 512)            f32   conv bias
    # pool_ref : (SPB, 49, SPB*HW)   bf16  per-sample AdaptiveAvgPool2d((7,7)) matrices
    # wcls_ref : (K, 49, 512)        bf16  classifier weight (flatten(2) permutation folded in)
    # bcls_ref : (1, K)              f32   classifier bias
    # o_ref    : (1, SPB, K)         f32   logits

    # --- features: conv3x3(pad=1, Cin->512) as one im2col matmul + bias + ReLU (f32 accum) ---
    feat = jnp.dot(p_ref[0], wc_ref[...], preferred_element_type=jnp.float32)   # (SPB*HW, 512)
    feat = jnp.maximum(feat + bc_ref[...], 0.0)
    feat_bf = feat.astype(jnp.bfloat16)

    # --- classifier weight once per step (Dropout in eval mode == identity) ---
    wcls = wcls_ref[...].astype(jnp.float32)                                     # (K, 49, 512)

    rows = []
    for s in range(SPB):
        # avgpool: AdaptiveAvgPool2d((7,7)) expressed as an averaging matmul for sample s
        pooled = jnp.dot(pool_ref[s], feat_bf,
                         preferred_element_type=jnp.float32)                     # (49, 512)
        # Linear(512*7*7, K): contract over (pool position, channel) against the (K,49,512)
        # weight via broadcast-multiply + reduce; avoids any (25088, K) lane-padded buffer.
        prod = pooled[None, :, :] * wcls                                          # (K, 49, 512)
        logit = jnp.sum(jnp.sum(prod, axis=-1), axis=-1)                          # (K,)
        rows.append(logit[None, :])

    o_ref[0] = jnp.concatenate(rows, axis=0) + bcls_ref[...]                      # (SPB, K)


# ------------------------------------ glue (layout) -------------------------------------
def im2col_3x3_same(x_nhwc):
    """(N, H, W, C) -> (N, H*W, 9*C) patches for a 3x3, pad=1, stride=1 conv."""
    n, h, w, c = x_nhwc.shape
    xp = jnp.pad(x_nhwc, ((0, 0), (1, 1), (1, 1), (0, 0)))
    cols = [xp[:, dy:dy + h, dx:dx + w, :] for dy in range(3) for dx in range(3)]
    return jnp.concatenate(cols, axis=-1).reshape(n, h * w, 9 * c)   # index (dy*3+dx)*C + c


def make_pool_stack(h, w, spb):
    """(spb, 49, spb*H*W): per-sample AdaptiveAvgPool2d((7,7)) averaging matrices, bf16."""
    kh, kw = h // POOL_HW, w // POOL_HW
    P = np.zeros((POOL_HW * POOL_HW, h * w), np.float32)
    for oi in range(POOL_HW):
        for oj in range(POOL_HW):
            for di in range(kh):
                for dj in range(kw):
                    P[oi * POOL_HW + oj, (oi * kh + di) * w + (oj * kw + dj)] = 1.0 / (kh * kw)
    stack = np.zeros((spb, POOL_HW * POOL_HW, spb * h * w), np.float32)
    for s in range(spb):
        stack[s, :, s * h * w:(s + 1) * h * w] = P
    return jnp.asarray(stack, jnp.bfloat16)


def prepare_params(params, h=H, w=W):
    """One-time weight re-layouts (hoisted out of the per-call forward)."""
    cin = params["conv_w"].shape[1]
    wc = jnp.transpose(params["conv_w"], (2, 3, 1, 0)).reshape(9 * cin, C_FEAT)
    wc = wc.astype(jnp.bfloat16)                                   # row index (ky*3+kx)*Cin + ci
    bc = params["conv_b"].reshape(1, C_FEAT).astype(jnp.float32)
    # PyTorch flatten(2) on [T,B,C,7,7] -> feature index c*49 + o;  wcls[k, o, c] = fc_w[k, c*49+o]
    wcls = jnp.transpose(params["fc_w"].reshape(NUM_CLASSES, C_FEAT, POOL_HW * POOL_HW),
                         (0, 2, 1)).astype(jnp.bfloat16)           # (K, 49, 512)
    bcls = params["fc_b"].reshape(1, NUM_CLASSES).astype(jnp.float32)
    return {"wc": wc, "bc": bc, "wcls": wcls, "bcls": bcls, "pool": make_pool_stack(h, w, SPB)}


@jax.jit
def vgg_forward(x_tbchw, prep):
    t, b, cin, h, w = x_tbchw.shape
    n, hw = t * b, h * w
    assert h % POOL_HW == 0 and w % POOL_HW == 0 and n % SPB == 0
    g = n // SPB

    # ---- layout glue: [T,B,C,H,W] -> bf16 NHWC -> im2col patches folded as (G, SPB*HW, 9*Cin)
    x = x_tbchw.astype(jnp.bfloat16).reshape(n, cin, h, w).transpose(0, 2, 3, 1)
    patches = im2col_3x3_same(x).reshape(g, SPB * hw, 9 * cin)

    logits = pl.pallas_call(
        vgg_fused_kernel,
        out_shape=jax.ShapeDtypeStruct((g, SPB, NUM_CLASSES), jnp.float32),
        grid_spec=pl.GridSpec(
            grid=(g,),
            in_specs=[
                pl.BlockSpec((1, SPB * hw, 9 * cin), lambda i: (i, 0, 0)),
                pl.BlockSpec((9 * cin, C_FEAT), lambda i: (0, 0)),
                pl.BlockSpec((1, C_FEAT), lambda i: (0, 0)),
                pl.BlockSpec((SPB, POOL_HW * POOL_HW, SPB * hw), lambda i: (0, 0, 0)),
                pl.BlockSpec((NUM_CLASSES, POOL_HW * POOL_HW, C_FEAT), lambda i: (0, 0, 0)),
                pl.BlockSpec((1, NUM_CLASSES), lambda i: (0, 0)),
            ],
            out_specs=pl.BlockSpec((1, SPB, NUM_CLASSES), lambda i: (i, 0, 0)),
        ),
        compiler_params=pltpu.CompilerParams(
            dimension_semantics=("parallel",),          # lets v7x shard the 2 steps over 2 TCs
            vmem_limit_bytes=32 * 1024 * 1024),         # explicit budget (usage is ~8 MiB)
    )(patches, prep["wc"], prep["bc"], prep["pool"], prep["wcls"], prep["bcls"])

    return logits.reshape(t, b, NUM_CLASSES)


# --------------------------------- pure-JAX reference -----------------------------------
def ref_forward(x_tbchw, params):
    """f32 reference mirroring the kernel's bf16 casts (isolates layout/permutation checks)."""
    t, b, cin, h, w = x_tbchw.shape
    q = lambda a: a.astype(jnp.bfloat16).astype(jnp.float32)
    x = q(x_tbchw).reshape(t * b, cin, h, w)
    y = lax.conv_general_dilated(
        x, q(params["conv_w"]), window_strides=(1, 1), padding="SAME",
        dimension_numbers=("NCHW", "OIHW", "NCHW"),
        precision=lax.Precision.HIGHEST)
    y = jnp.maximum(y + params["conv_b"][None, :, None, None], 0.0)
    y = q(y)
    kh, kw = h // POOL_HW, w // POOL_HW
    y = y.reshape(t * b, C_FEAT, POOL_HW, kh, POOL_HW, kw).mean(axis=(3, 5))
    y = y.reshape(t, b, F_IN)                                       # == torch flatten(2)
    return jnp.einsum("tbf,kf->tbk", y, q(params["fc_w"]),
                      precision=lax.Precision.HIGHEST) + params["fc_b"]


if __name__ == "__main__":
    key = jax.random.PRNGKey(0)
    k_x, k_cw, k_cb, k_lw, k_lb = jax.random.split(key, 5)
    x = jax.random.normal(k_x, (T, B, C_IN, H, W), jnp.float32)
    params = {
        "conv_w": jax.random.normal(k_cw, (C_FEAT, C_IN, 3, 3), jnp.float32) * 0.05,
        "conv_b": jax.random.normal(k_cb, (C_FEAT,), jnp.float32) * 0.05,
        "fc_w": jax.random.normal(k_lw, (NUM_CLASSES, F_IN), jnp.float32) * 0.01,
        "fc_b": jax.random.normal(k_lb, (NUM_CLASSES,), jnp.float32) * 0.01,
    }

    prep = prepare_params(params)                       # one-time weight re-layout (hoisted)
    out = jax.block_until_ready(vgg_forward(x, prep))
    assert out.shape == (T, B, NUM_CLASSES)

    ref = ref_forward(x, params)
    np.testing.assert_allclose(np.asarray(out), np.asarray(ref), rtol=1e-2, atol=1e-2)
    print("KERNEL_OK")
</pallas_src>

<mosaic_0001>
module attributes {stable_mosaic.version = 11 : i64} {
  func.func @vgg_fused_kernel(%arg0: i32, %arg1: memref<1x392x27xbf16, #tpu.memory_space<vmem>>, %arg2: memref<27x512xbf16, #tpu.memory_space<vmem>>, %arg3: memref<1x512xf32, #tpu.memory_space<vmem>>, %arg4: memref<2x49x392xbf16, #tpu.memory_space<vmem>>, %arg5: memref<10x49x512xbf16, #tpu.memory_space<vmem>>, %arg6: memref<1x10xf32, #tpu.memory_space<vmem>>, %arg7: memref<1x2x10xf32, #tpu.memory_space<vmem>>) attributes {dimension_semantics = [#tpu.dimension_semantics<parallel>], iteration_bounds = array<i64: 2>, scalar_prefetch = 0 : i64, scratch_operands = 0 : i64, tpu.core_type = #tpu.core_type<tc>, window_params = [{transform_indices = @transform_0, window_bounds = array<i64: 1, 392, 27>}, {pipeline_mode = #tpu.pipeline_mode<synchronous>, transform_indices = @transform_1, window_bounds = array<i64: 27, 512>}, {pipeline_mode = #tpu.pipeline_mode<synchronous>, transform_indices = @transform_2, window_bounds = array<i64: 1, 512>}, {pipeline_mode = #tpu.pipeline_mode<synchronous>, transform_indices = @transform_3, window_bounds = array<i64: 2, 49, 392>}, {pipeline_mode = #tpu.pipeline_mode<synchronous>, transform_indices = @transform_4, window_bounds = array<i64: 10, 49, 512>}, {pipeline_mode = #tpu.pipeline_mode<synchronous>, transform_indices = @transform_5, window_bounds = array<i64: 1, 10>}, {transform_indices = @transform_6, window_bounds = array<i64: 1, 2, 10>}]} {
    %c0 = arith.constant 0 : index
    %c0_0 = arith.constant 0 : index
    %c0_1 = arith.constant 0 : index
    %0 = vector.load %arg1[%c0, %c0_0, %c0_1] : memref<1x392x27xbf16, #tpu.memory_space<vmem>>, vector<1x392x27xbf16>
    %1 = vector.shape_cast %0 : vector<1x392x27xbf16> to vector<392x27xbf16>
    %c0_2 = arith.constant 0 : index
    %c0_3 = arith.constant 0 : index
    %2 = vector.load %arg2[%c0_2, %c0_3] : memref<27x512xbf16, #tpu.memory_space<vmem>>, vector<27x512xbf16>
    %cst = arith.constant dense<0.000000e+00> : vector<392x512xf32>
    %3 = tpu.matmul %1, %2, %cst {dimension_numbers = #tpu.dot_dimension_numbers<[1], [0], [0], [1], [0, 0, 1, 1], [], []>} : vector<392x27xbf16>, vector<27x512xbf16>, vector<392x512xf32> -> vector<392x512xf32>
    %c0_4 = arith.constant 0 : index
    %c0_5 = arith.constant 0 : index
    %4 = vector.load %arg3[%c0_4, %c0_5] : memref<1x512xf32, #tpu.memory_space<vmem>>, vector<1x512xf32>
    %5 = vector.broadcast %4 : vector<1x512xf32> to vector<392x512xf32>
    %6 = arith.addf %3, %5 : vector<392x512xf32>
    %cst_6 = arith.constant 0.000000e+00 : f32
    %7 = vector.broadcast %cst_6 : f32 to vector<392x512xf32>
    %8 = arith.maximumf %6, %7 : vector<392x512xf32>
    %9 = arith.truncf %8 : vector<392x512xf32> to vector<392x512xbf16>
    %c0_7 = arith.constant 0 : index
    %c0_8 = arith.constant 0 : index
    %c0_9 = arith.constant 0 : index
    %10 = vector.load %arg5[%c0_7, %c0_8, %c0_9] : memref<10x49x512xbf16, #tpu.memory_space<vmem>>, vector<10x49x512xbf16>
    %11 = arith.extf %10 : vector<10x49x512xbf16> to vector<10x49x512xf32>
    %c0_10 = arith.constant 0 : index
    %c0_11 = arith.constant 0 : index
    %c0_12 = arith.constant 0 : index
    %12 = vector.load %arg4[%c0_10, %c0_11, %c0_12] : memref<2x49x392xbf16, #tpu.memory_space<vmem>>, vector<1x49x392xbf16>
    %13 = vector.shape_cast %12 : vector<1x49x392xbf16> to vector<49x392xbf16>
    %cst_13 = arith.constant dense<0.000000e+00> : vector<49x512xf32>
    %14 = tpu.matmul %13, %9, %cst_13 {dimension_numbers = #tpu.dot_dimension_numbers<[1], [0], [0], [1], [0, 0, 1, 1], [], []>} : vector<49x392xbf16>, vector<392x512xbf16>, vector<49x512xf32> -> vector<49x512xf32>
    %15 = vector.shape_cast %14 : vector<49x512xf32> to vector<1x49x512xf32>
    %16 = vector.broadcast %15 : vector<1x49x512xf32> to vector<10x49x512xf32>
    %17 = arith.mulf %16, %11 : vector<10x49x512xf32>
    %cst_14 = arith.constant dense<0.000000e+00> : vector<10x49xf32>
    %18 = vector.multi_reduction <add>, %17, %cst_14 [2] : vector<10x49x512xf32> to vector<10x49xf32>
    %cst_15 = arith.constant dense<0.000000e+00> : vector<10xf32>
    %19 = vector.multi_reduction <add>, %18, %cst_15 [1] : vector<10x49xf32> to vector<10xf32>
    %20 = vector.shape_cast %19 : vector<10xf32> to vector<1x10xf32>
    %c1 = arith.constant 1 : index
    %c0_16 = arith.constant 0 : index
    %c0_17 = arith.constant 0 : index
    %21 = vector.load %arg4[%c1, %c0_16, %c0_17] : memref<2x49x392xbf16, #tpu.memory_space<vmem>>, vector<1x49x392xbf16>
    %22 = vector.shape_cast %21 : vector<1x49x392xbf16> to vector<49x392xbf16>
    %cst_18 = arith.constant dense<0.000000e+00> : vector<49x512xf32>
    %23 = tpu.matmul %22, %9, %cst_18 {dimension_numbers = #tpu.dot_dimension_numbers<[1], [0], [0], [1], [0, 0, 1, 1], [], []>} : vector<49x392xbf16>, vector<392x512xbf16>, vector<49x512xf32> -> vector<49x512xf32>
    %24 = vector.shape_cast %23 : vector<49x512xf32> to vector<1x49x512xf32>
    %25 = vector.broadcast %24 : vector<1x49x512xf32> to vector<10x49x512xf32>
    %26 = arith.mulf %25, %11 : vector<10x49x512xf32>
    %cst_19 = arith.constant dense<0.000000e+00> : vector<10x49xf32>
    %27 = vector.multi_reduction <add>, %26, %cst_19 [2] : vector<10x49x512xf32> to vector<10x49xf32>
    %cst_20 = arith.constant dense<0.000000e+00> : vector<10xf32>
    %28 = vector.multi_reduction <add>, %27, %cst_20 [1] : vector<10x49xf32> to vector<10xf32>
    %29 = vector.shape_cast %28 : vector<10xf32> to vector<1x10xf32>
    %30 = tpu.concatenate %20, %29 in 0 : vector<1x10xf32>, vector<1x10xf32> -> vector<2x10xf32>
    %c0_21 = arith.constant 0 : index
    %c0_22 = arith.constant 0 : index
    %31 = vector.load %arg6[%c0_21, %c0_22] : memref<1x10xf32, #tpu.memory_space<vmem>>, vector<1x10xf32>
    %32 = vector.broadcast %31 : vector<1x10xf32> to vector<2x10xf32>
    %33 = arith.addf %30, %32 : vector<2x10xf32>
    %c0_23 = arith.constant 0 : index
    %c0_24 = arith.constant 0 : index
    %c0_25 = arith.constant 0 : index
    %34 = vector.load %arg7[%c0_23, %c0_24, %c0_25] : memref<1x2x10xf32, #tpu.memory_space<vmem>>, vector<1x2x10xf32>
    %35 = vector.shape_cast %34 : vector<1x2x10xf32> to vector<2x10xf32>
    %36 = vector.shape_cast %33 : vector<2x10xf32> to vector<1x2x10xf32>
    tpu.vector_store %arg7[%c0_23, %c0_24, %c0_25], %36 {strides = array<i32>} : memref<1x2x10xf32, #tpu.memory_space<vmem>>, vector<1x2x10xf32>,
    return
  }
  func.func @transform_0(%arg0: i32) -> (i32, i32, i32) {
    %c0_i32 = arith.constant 0 : i32
    %c0_i32_0 = arith.constant 0 : i32
    %c0_i32_1 = arith.constant 0 : i32
    return %arg0, %c0_i32, %c0_i32_0 : i32, i32, i32
  }
  func.func @transform_1(%arg0: i32) -> (i32, i32) {
    %c0_i32 = arith.constant 0 : i32
    %c0_i32_0 = arith.constant 0 : i32
    %c0_i32_1 = arith.constant 0 : i32
    return %c0_i32, %c0_i32_0 : i32, i32
  }
  func.func @transform_2(%arg0: i32) -> (i32, i32) {
    %c0_i32 = arith.constant 0 : i32
    %c0_i32_0 = arith.constant 0 : i32
    %c0_i32_1 = arith.constant 0 : i32
    return %c0_i32, %c0_i32_0 : i32, i32
  }
  func.func @transform_3(%arg0: i32) -> (i32, i32, i32) {
    %c0_i32 = arith.constant 0 : i32
    %c0_i32_0 = arith.constant 0 : i32
    %c0_i32_1 = arith.constant 0 : i32
    %c0_i32_2 = arith.constant 0 : i32
    return %c0_i32, %c0_i32_0, %c0_i32_1 : i32, i32, i32
  }
  func.func @transform_4(%arg0: i32) -> (i32, i32, i32) {
    %c0_i32 = arith.constant 0 : i32
    %c0_i32_0 = arith.constant 0 : i32
    %c0_i32_1 = arith.constant 0 : i32
    %c0_i32_2 = arith.constant 0 : i32
    return %c0_i32, %c0_i32_0, %c0_i32_1 : i32, i32, i32
  }
  func.func @transform_5(%arg0: i32) -> (i32, i32) {
    %c0_i32 = arith.constant 0 : i32
    %c0_i32_0 = arith.constant 0 : i32
    %c0_i32_1 = arith.constant 0 : i32
    return %c0_i32, %c0_i32_0 : i32, i32
  }
  func.func @transform_6(%arg0: i32) -> (i32, i32, i32) {
    %c0_i32 = arith.constant 0 : i32
    %c0_i32_0 = arith.constant 0 : i32
    %c0_i32_1 = arith.constant 0 : i32
    return %arg0, %c0_i32, %c0_i32_0 : i32, i32, i32
  }
}

</mosaic_0001>

<bundles_post_ra>
// kernel: vgg_forward.1
= control target key start
LH: loop header
LB: loop body
LE: loop exit
PB: predicated region body
PF: predicated region fallthrough
CT: control target
= control target key end

     0   :  { %11 = vsyncpa [#allocation3], 0  ;;  %s9932_s0 = inlined_call_operand.vmem [shape: bf16[2,392,27], index: 0, kind: input, shape index: {}]   ;;  %s9933_s1 = inlined_call_operand.vmem [shape: bf16[27,512], index: 1, kind: input, shape index: {}]   ;;  %s9934_s2 = inlined_call_operand.vmem [shape: f32[1,512], index: 2, kind: input, shape index: {}]   ;;  %s9935_s3 = inlined_call_operand.vmem [shape: bf16[2,49,392], index: 3, kind: input, shape index: {}]   ;;  %s9936_s4 = inlined_call_operand.vmem [shape: bf16[10,49,512], index: 4, kind: input, shape index: {}]   ;;  %s9937_s5 = inlined_call_operand.vmem [shape: f32[1,10], index: 5, kind: input, shape index: {}]   ;;  %s9938_s6 = inlined_call_operand.hbm [shape: f32[2,2,10], index: 6, kind: output, shape index: {}]  }
   0x1   :  { %13 = vsyncpa [#allocation3 + $0x1], 0  ;;  %s5407_s21 = smov 0   ;;  %s5409_s22 = smov 0  }
   0x2   :  { %s5411_s23 = smov 0   ;;  %s5413_s24 = smov 0  }
   0x3 LB: > { %s5428_s25 = sadd.s32 4294967295, %s5367_s24   ;;  %s4958_s26 = sadd.s32 4294967294, %s5367_s24   ;;  %s5367_s24 = sphi %s5413_s24, %s11411_s24   ;;  %s5363_s23 = sphi %s5411_s23, %s11410_s23   ;;  %s5359_s22 = sphi %s5409_s22, %s11409_s22   ;;  %s5355_s21 = sphi %s5407_s21, %s11408_s21  }
   0x4   : > { %s5432_s27 = sadd.s32 1, %s5367_s24   ;;  %s157_s28 = sadd.s32 1, %s5363_s23 }
   0x5   : > { %s154_s29 = ssub.s32 %s5367_s24, %s5432_s27  ;;  %p167_p0 = scmp.ne.s32.totalorder %s5363_s23, %s5359_s22 }
   0x6   : > { %p155_p1 = scmp.eq.s32.totalorder %s154_s29, 0  ;;  %p168_p2 = scmp.eq.s32.totalorder %s5428_s25, 1 }
   0x7   : > { %p173_p3 = scmp.ne.s32.totalorder %s5359_s22, %s5355_s21  ;;  %p174_p4 = scmp.eq.s32.totalorder %s4958_s26, 1 }
   0x8   : > { %s5443_s30 = scalar_select %p155_p1, %s5363_s23, %s157_s28  }
   0x9   : > { %p5445_p5 = por %p168_p2, %p167_p0  ;;  %p5449_p6 = por %p174_p4, %p173_p3 }
   0xa   : > { %p4961_p7 = scmp.ge.s32.totalorder %s5367_s24, 1  ;;  %p215_p8 = scmp.lt.s32.totalorder %s5367_s24, 3 }
   0xc   : > { %p216_p9 = pnand %p4961_p7, %p215_p8 }
   0xe   : > { %219 = sbr.rel (%p216_p9) target bundleno = 1412 (0x584), region = 44 }
  0x15   : > { %v5224_v0 = vld [vmem:[%s9933_s1 + $0x4] ss:$16 sps:$4 sm:$0xff]   ;;  %vm565_vm0 = vcmask 1044480   ;;  %vm566_vm1 = vcmask 1045504   ;;  %v5226_v1 = vld [vmem:[%s9933_s1 + $0xc] ss:$16 sps:$4 sm:$0xff]   ;;  %v9939_v41 = vlaneseq }
  0x16   : > { %581 = vmatprep.subr.bf16.mxu0 %v5224_v0  ;;  %v5228_v2 = vld [vmem:[%s9933_s1] ss:$16 sps:$4 sm:$0xff]   ;;  %v5229_v3 = vld [vmem:[%s9933_s1 + $0x8] ss:$16 sps:$4 sm:$0xff]   ;;  %v5369_v4 = vmov 65535   ;;  %v5370_v6 = vmov 0   ;;  %862 = vmatprep.subr.bf16.mxu1 %v5226_v1 }
  0x17   : > { %v567_v5 = vsel %vm565_vm0, 4294967295, %v5369_v4  ;;  %613 = vmatprep.mubr.bf16.mxu0 %v5370_v6  ;;  %v5230_v7 = vld [vmem:[%s9933_s1 + $0x24] ss:$16 sps:$4 sm:$0x3f]   ;;  %894 = vmatprep.mubr.bf16.mxu1 %v5370_v6  ;;  %p245_p10 = scmp.lt.s32.totalorder %s5428_s25, 1  ;;  %vm489_vm2 = vcmask 220160  }
  0x18   : > { %v568_v8 = vsel %vm566_vm1, %v567_v5, 0  ;;  %582 = vmatpush1.bf16.msra.mxu0 %v5228_v2  ;;  %863 = vmatpush1.bf16.msra.mxu1 %v5229_v3  ;;  %v5232_v9 = vld [vmem:[%s9933_s1 + $0x2c] ss:$16 sps:$4 sm:$0x3f]   ;;  %v5612_v42 = vshrl.u32 %v9939_v41, 7  ;;  %vm1943_vm3 = vcmask 64512  }
  0x19   : > { %v573_v10 = vand.u32 %v5230_v7, %v568_v8  ;;  %v5234_v11 = vld [vmem:[%s9933_s1 + $0x20] ss:$16 sps:$4 sm:$0x3f]   ;;  %v5235_v12 = vld [vmem:[%s9933_s1 + $0x28] ss:$16 sps:$4 sm:$0x3f]   ;;  %v579_v13 = vand.u32 %v5232_v9, %v568_v8 }
  0x1a   : > { %v570_v14 = vand.u32 %v5234_v11, %v568_v8  ;;  %v576_v15 = vand.u32 %v5235_v12, %v568_v8  ;;  %s246_s10 = scalar_select %p245_p10, %s5428_s25, 1  ;;  %10360 = vst [vmem:[#allocation5_spill] sm:$0xff] %v5612_v42  ;;  %v312_v43 = vsub.s32 0, %v5612_v42  ;;  %v320_v44 = vsub.s32 2, %v5612_v42  ;;  %v308_v45 = vld [vmem:[%s9934_s2] sm:$0xf] }
  0x1b   : > { %583 = vmatprep.subr.bf16.mxu0 %v573_v10  ;;  %864 = vmatprep.subr.bf16.mxu1 %v579_v13  ;;  %v316_v46 = vsub.s32 1, %v5612_v42  ;;  %v324_v47 = vsub.s32 3, %v5612_v42  ;;  %vm1956_vm4 = vcmask 1043456   ;;  %vm2563_vm5 = vcmask 1040384   ;;  %s242_s29 = sand.u32 1, %s5359_s22   ;;  %s5115_s12 = sshll.u32 %s5428_s25, 5 }
  0x1c   : > { %584 = vmatpush1.bf16.msra.mxu0 %v570_v14  ;;  %865 = vmatpush1.bf16.msra.mxu1 %v576_v15  ;;  %s5182_s11 = smul.u32 196, %s246_s10  ;;  %v5621_v48 = vrot.slane %v308_v45, %v312_v43  ;;  %v5623_v49 = vrot.slane %v308_v45, %v320_v44  ;;  %vm3005_vm6 = vcmask 130112   ;;  %vm3012_vm7 = vcmask 195712   ;;  %s4962_s9 = sshll.u32 %s242_s29, 1 }
  0x1d   : > { %v5625_v50 = vrot.slane %v308_v45, %v316_v46  ;;  %v5627_v51 = vrot.slane %v308_v45, %v324_v47  ;;  %vm3019_vm8 = vcmask 261312   ;;  %vm3026_vm9 = vcmask 326912   ;;  %s244_s13 = scalar_lea.vmem [#allocation2], %s4962_s9  ;;  %s9890_s17 = scalar_lea.hbm %s9938_s6, %s5115_s12 }
  0x1e   : > { %s5486_s14 = scalar_lea.vmem %s9932_s0, %s5182_s11  ;;  %vm3033_vm10 = vcmask 392512   ;;  %vm3040_vm11 = vcmask 458112   ;;  %vm3348_vm12 = vcmask 1041409   ;;  %vm3350_vm13 = vcmask 1042434   ;;  %s4886_s25 = scalar_lea.sflag [#allocation3], %s242_s29 }
  0x1f   : > { %v5236_v16 = vld [vmem:[%s5486_s14] sm:$0xff]   ;;  %v5237_v17 = vld [vmem:[%s5486_s14 + $0x8] sm:$0xff]   ;;  %v5238_v18 = vld [vmem:[%s5486_s14 + $0x10] sm:$0xff]   ;;  %vm3352_vm14 = vcmask 1043459   ;;  %vm3354_vm15 = vcmask 1044484   ;;  %vm3356_vm0 = vcmask 1045509  }
  0x20   : > { %4997 = vmatmul.mubr.msk.bf16.vlgmr.msra.gmra.mrb[0].mxu0 %vm489_vm2, %v5236_v16  ;;  %5022 = vmatmul.mubr.msk.bf16.vlgmr.msra.gmra.mrb[0].mxu1 %vm489_vm2, %v5236_v16  ;;  %v5239_v19 = vld [vmem:[%s5486_s14 + $0x18] sm:$0xff]   ;;  %v5240_v20 = vld [vmem:[%s5486_s14 + $0x20] sm:$0xff]   ;;  %v5241_v21 = vld [vmem:[%s5486_s14 + $0x28] sm:$0xff]   ;;  %vm3358_vm1 = vcmask 1046534   ;;  %s5371_s19 = smov [#allocation2]  }
  0x21   : > { %623 = vmatprep.mubr.bf16.mxu0 %v5370_v6  ;;  %904 = vmatprep.mubr.bf16.mxu1 %v5370_v6  ;;  %v5242_v22 = vld [vmem:[%s5486_s14 + $0x30] sm:$0xff]   ;;  %v5243_v23 = vld [vmem:[%s5486_s14 + $0x38] sm:$0xff]   ;;  %v5244_v24 = vld [vmem:[%s5486_s14 + $0x40] sm:$0xff]   ;;  %s5309_s20 = sshll.u32 %s5371_s19, 4  ;;  %s5310_s20 = int_to_ptr.vmem [resolvable:$false] %s5309_s20 }
  0x22   : > { %v5245_v25 = vld [vmem:[%s5486_s14 + $0x48] sm:$0xff]   ;;  %v5246_v26 = vld [vmem:[%s5486_s14 + $0x50] sm:$0xff]   ;;  %v5247_v27 = vld [vmem:[%s5486_s14 + $0x58] sm:$0xff]   ;;  %s5311_s26 = scalar_lea.vmem %s5310_s20, 64 }
  0x23   : > { %v5248_v28 = vld [vmem:[%s5486_s14 + $0x60] sm:$0xff]   ;;  %v5249_v29 = vld [vmem:[%s5486_s14 + $0x68] sm:$0xff]   ;;  %v5250_v30 = vld [vmem:[%s5486_s14 + $0x70] sm:$0xff]  }
  0x24   : > { %v5251_v31 = vld [vmem:[%s5486_s14 + $0x78] sm:$0xff]   ;;  %v5252_v32 = vld [vmem:[%s5486_s14 + $0x80] sm:$0xff]   ;;  %v5253_v33 = vld [vmem:[%s5486_s14 + $0x88] sm:$0xff]  }
  0x25   : > { %v5254_v34 = vld [vmem:[%s5486_s14 + $0x90] sm:$0xff]   ;;  %v5255_v35 = vld [vmem:[%s5486_s14 + $0x98] sm:$0xff]   ;;  %v5256_v36 = vld [vmem:[%s5486_s14 + $0xa0] sm:$0xff]  }
  0x26   : > { %v5257_v37 = vld [vmem:[%s5486_s14 + $0xa8] sm:$0xff]   ;;  %v5258_v38 = vld [vmem:[%s5486_s14 + $0xb0] sm:$0xff]   ;;  %v5259_v39 = vld [vmem:[%s5486_s14 + $0xb8] sm:$0xff]  }
  0x27   : > { %v5260_v40 = vld [vmem:[%s5486_s14 + $0xc0] ss:$0 sps:$4 sm:$0xff]   ;;  %s4899_s14 = sshll.u32 %s244_s13, 4  ;;  %s9892_s14 = int_to_ptr.vmem [resolvable:$true] %s4899_s14 }
  0x28   : > { %4998 = vmatmul.mubr.msk.bf16.gmra.mrb[4].mxu0 %vm489_vm2, %v5237_v17  ;;  %5023 = vmatmul.mubr.msk.bf16.gmra.mrb[4].mxu1 %vm489_vm2, %v5237_v17  ;;  %s5305_s18 = scalar_lea.vmem %s9892_s14, 32  ;;  %p5312_p0 = scmp.lt.s32.totalorder %s9892_s14, %s5310_s20 }
  0x29   : > { %633 = vmatprep.mubr.bf16.mxu0 %v5370_v6  ;;  %914 = vmatprep.mubr.bf16.mxu1 %v5370_v6  ;;  %p5306_p11 = scmp.ne.s32.totalorder %s9892_s14, %s5305_s18  ;;  %p5313_p1 = scmp.lt.s32.totalorder %s5311_s26, %s5305_s18 }
  0x2b   : > { %p5307_p12 = pnand %p5306_p11, %p5445_p5  ;;  %p5314_p2 = por %p5313_p1, %p5312_p0 }
  0x2d   : > { %p5308_p13 = pneg %p5307_p12 }
  0x2f   : > { %p5315_p3 = pnand %p5314_p2, %p5308_p13 }
  0x30   : > { %4999 = vmatmul.mubr.msk.bf16.gmra.mrb[8].mxu0 %vm489_vm2, %v5238_v18  ;;  %5024 = vmatmul.mubr.msk.bf16.gmra.mrb[8].mxu1 %vm489_vm2, %v5238_v18  ;;  %v5263_v18 = vld [vmem:[%s9935_s3 + $0x4] ss:$16 sps:$4 sm:$0xff]  }
  0x31   : > { %643 = vmatprep.mubr.bf16.mxu0 %v5370_v6  ;;  %924 = vmatprep.mubr.bf16.mxu1 %v5370_v6 }
  0x38   : > { %5000 = vmatmul.mubr.msk.bf16.gmra.mrb[12].mxu0 %vm489_vm2, %v5239_v19  ;;  %5025 = vmatmul.mubr.msk.bf16.gmra.mrb[12].mxu1 %vm489_vm2, %v5239_v19 }
  0x39   : > { %653 = vmatprep.mubr.bf16.mxu0 %v5370_v6  ;;  %934 = vmatprep.mubr.bf16.mxu1 %v5370_v6 }
  0x40   : > { %5001 = vmatmul.mubr.msk.bf16.gmra.mrb[16].mxu0 %vm489_vm2, %v5240_v20  ;;  %5026 = vmatmul.mubr.msk.bf16.gmra.mrb[16].mxu1 %vm489_vm2, %v5240_v20 }
  0x41   : > { %663 = vmatprep.mubr.bf16.mxu0 %v5370_v6  ;;  %944 = vmatprep.mubr.bf16.mxu1 %v5370_v6 }
  0x48   : > { %5002 = vmatmul.mubr.msk.bf16.gmra.mrb[20].mxu0 %vm489_vm2, %v5241_v21  ;;  %5027 = vmatmul.mubr.msk.bf16.gmra.mrb[20].mxu1 %vm489_vm2, %v5241_v21 }
  0x49   : > { %673 = vmatprep.mubr.bf16.mxu0 %v5370_v6  ;;  %954 = vmatprep.mubr.bf16.mxu1 %v5370_v6 }
  0x50   : > { %5003 = vmatmul.mubr.msk.bf16.gmra.mrb[24].mxu0 %vm489_vm2, %v5242_v22  ;;  %5028 = vmatmul.mubr.msk.bf16.gmra.mrb[24].mxu1 %vm489_vm2, %v5242_v22 }
  0x51   : > { %683 = vmatprep.mubr.bf16.mxu0 %v5370_v6  ;;  %964 = vmatprep.mubr.bf16.mxu1 %v5370_v6 }
  0x58   : > { %5004 = vmatmul.mubr.msk.bf16.gmra.mrb[28].mxu0 %vm489_vm2, %v5243_v23  ;;  %5029 = vmatmul.mubr.msk.bf16.gmra.mrb[28].mxu1 %vm489_vm2, %v5243_v23 }
  0x59   : > { %693 = vmatprep.mubr.bf16.mxu0 %v5370_v6  ;;  %974 = vmatprep.mubr.bf16.mxu1 %v5370_v6 }
  0x60   : > { %5005 = vmatmul.mubr.msk.bf16.gmra.mrb[32].mxu0 %vm489_vm2, %v5244_v24  ;;  %5030 = vmatmul.mubr.msk.bf16.gmra.mrb[32].mxu1 %vm489_vm2, %v5244_v24 }
  0x61   : > { %703 = vmatprep.mubr.bf16.mxu0 %v5370_v6  ;;  %984 = vmatprep.mubr.bf16.mxu1 %v5370_v6 }
  0x68   : > { %5006 = vmatmul.mubr.msk.bf16.gmra.mrb[36].mxu0 %vm489_vm2, %v5245_v25  ;;  %5031 = vmatmul.mubr.msk.bf16.gmra.mrb[36].mxu1 %vm489_vm2, %v5245_v25 }
  0x69   : > { %713 = vmatprep.mubr.bf16.mxu0 %v5370_v6  ;;  %994 = vmatprep.mubr.bf16.mxu1 %v5370_v6 }
  0x70   : > { %5007 = vmatmul.mubr.msk.bf16.gmra.mrb[40].mxu0 %vm489_vm2, %v5246_v26  ;;  %5032 = vmatmul.mubr.msk.bf16.gmra.mrb[40].mxu1 %vm489_vm2, %v5246_v26 }
  0x71   : > { %723 = vmatprep.mubr.bf16.mxu0 %v5370_v6  ;;  %1004 = vmatprep.mubr.bf16.mxu1 %v5370_v6 }
  0x78   : > { %5008 = vmatmul.mubr.msk.bf16.gmra.mrb[44].mxu0 %vm489_vm2, %v5247_v27  ;;  %5033 = vmatmul.mubr.msk.bf16.gmra.mrb[44].mxu1 %vm489_vm2, %v5247_v27 }
  0x79   : > { %733 = vmatprep.mubr.bf16.mxu0 %v5370_v6  ;;  %1014 = vmatprep.mubr.bf16.mxu1 %v5370_v6 }
  0x80   : > { %5009 = vmatmul.mubr.msk.bf16.gmra.mrb[48].mxu0 %vm489_vm2, %v5248_v28  ;;  %5034 = vmatmul.mubr.msk.bf16.gmra.mrb[48].mxu1 %vm489_vm2, %v5248_v28 }
  0x81   : > { %743 = vmatprep.mubr.bf16.mxu0 %v5370_v6  ;;  %1024 = vmatprep.mubr.bf16.mxu1 %v5370_v6 }
  0x88   : > { %5010 = vmatmul.mubr.msk.bf16.gmra.mrb[52].mxu0 %vm489_vm2, %v5249_v29  ;;  %5035 = vmatmul.mubr.msk.bf16.gmra.mrb[52].mxu1 %vm489_vm2, %v5249_v29 }
  0x89   : > { %753 = vmatprep.mubr.bf16.mxu0 %v5370_v6  ;;  %1034 = vmatprep.mubr.bf16.mxu1 %v5370_v6 }
  0x90   : > { %5011 = vmatmul.mubr.msk.bf16.gmra.mrb[56].mxu0 %vm489_vm2, %v5250_v30  ;;  %5036 = vmatmul.mubr.msk.bf16.gmra.mrb[56].mxu1 %vm489_vm2, %v5250_v30 }
  0x91   : > { %763 = vmatprep.mubr.bf16.mxu0 %v5370_v6  ;;  %1044 = vmatprep.mubr.bf16.mxu1 %v5370_v6 }
  0x98   : > { %5012 = vmatmul.mubr.msk.bf16.gmra.mrb[60].mxu0 %vm489_vm2, %v5251_v31  ;;  %5037 = vmatmul.mubr.msk.bf16.gmra.mrb[60].mxu1 %vm489_vm2, %v5251_v31 }
  0x99   : > { %773 = vmatprep.mubr.bf16.mxu0 %v5370_v6  ;;  %1054 = vmatprep.mubr.bf16.mxu1 %v5370_v6 }
  0xa0   : > { %5013 = vmatmul.mubr.msk.bf16.gmra.mrb[64].mxu0 %vm489_vm2, %v5252_v32  ;;  %5038 = vmatmul.mubr.msk.bf16.gmra.mrb[64].mxu1 %vm489_vm2, %v5252_v32 }
  0xa1   : > { %783 = vmatprep.mubr.bf16.mxu0 %v5370_v6  ;;  %1064 = vmatprep.mubr.bf16.mxu1 %v5370_v6 }
  0xa8   : > { %5014 = vmatmul.mubr.msk.bf16.gmra.mrb[68].mxu0 %vm489_vm2, %v5253_v33  ;;  %5039 = vmatmul.mubr.msk.bf16.gmra.mrb[68].mxu1 %vm489_vm2, %v5253_v33 }
  0xa9   : > { %793 = vmatprep.mubr.bf16.mxu0 %v5370_v6  ;;  %1074 = vmatprep.mubr.bf16.mxu1 %v5370_v6 }
  0xb0   : > { %5015 = vmatmul.mubr.msk.bf16.gmra.mrb[72].mxu0 %vm489_vm2, %v5254_v34  ;;  %5040 = vmatmul.mubr.msk.bf16.gmra.mrb[72].mxu1 %vm489_vm2, %v5254_v34 }
  0xb1   : > { %803 = vmatprep.mubr.bf16.mxu0 %v5370_v6  ;;  %1084 = vmatprep.mubr.bf16.mxu1 %v5370_v6 }
  0xb8   : > { %5016 = vmatmul.mubr.msk.bf16.gmra.mrb[76].mxu0 %vm489_vm2, %v5255_v35  ;;  %5041 = vmatmul.mubr.msk.bf16.gmra.mrb[76].mxu1 %vm489_vm2, %v5255_v35 }
  0xb9   : > { %813 = vmatprep.mubr.bf16.mxu0 %v5370_v6  ;;  %1094 = vmatprep.mubr.bf16.mxu1 %v5370_v6 }
  0xc0   : > { %5017 = vmatmul.mubr.msk.bf16.gmra.mrb[80].mxu0 %vm489_vm2, %v5256_v36  ;;  %5042 = vmatmul.mubr.msk.bf16.gmra.mrb[80].mxu1 %vm489_vm2, %v5256_v36 }
  0xc1   : > { %823 = vmatprep.mubr.bf16.mxu0 %v5370_v6  ;;  %1104 = vmatprep.mubr.bf16.mxu1 %v5370_v6 }
  0xc8   : > { %5018 = vmatmul.mubr.msk.bf16.gmra.mrb[84].mxu0 %vm489_vm2, %v5257_v37  ;;  %5043 = vmatmul.mubr.msk.bf16.gmra.mrb[84].mxu1 %vm489_vm2, %v5257_v37 }
  0xc9   : > { %833 = vmatprep.mubr.bf16.mxu0 %v5370_v6  ;;  %1114 = vmatprep.mubr.bf16.mxu1 %v5370_v6 }
  0xd0   : > { %5019 = vmatmul.mubr.msk.bf16.gmra.mrb[88].mxu0 %vm489_vm2, %v5258_v38  ;;  %5044 = vmatmul.mubr.msk.bf16.gmra.mrb[88].mxu1 %vm489_vm2, %v5258_v38 }
  0xd1   : > { %843 = vmatprep.mubr.bf16.mxu0 %v5370_v6  ;;  %1124 = vmatprep.mubr.bf16.mxu1 %v5370_v6 }
  0xd8   : > { %5020 = vmatmul.mubr.msk.bf16.gmra.mrb[92].mxu0 %vm489_vm2, %v5259_v39  ;;  %5045 = vmatmul.mubr.msk.bf16.gmra.mrb[92].mxu1 %vm489_vm2, %v5259_v39 }
  0xd9   : > { %853 = vmatprep.mubr.bf16.mxu0 %v5370_v6  ;;  %1134 = vmatprep.mubr.bf16.mxu1 %v5370_v6 }
  0xe0   : > { %5021 = vmatmul.mubr.msk.bf16.gmra.mrb[96].mxu0 %vm489_vm2, %v5260_v40  ;;  %5046 = vmatmul.mubr.msk.bf16.gmra.mrb[96].mxu1 %vm489_vm2, %v5260_v40  ;;  %vm3360_vm2 = vcmask 1047559  }
  0xe1   : > { %2001 = vmatprep.mubr.bf16.mxu0 %v5263_v18  ;;  %2143 = vmatprep.mubr.bf16.mxu1 %v5263_v18 }
  0xf3   : > { %v615_v52 = vpop.f32.mrb[0].mxu0  ;;  %v896_v53 = vpop.f32.mrb[0].mxu1 }
  0xf4   : > { %v616_v54 = vadd.f32 %v615_v52, %v5621_v48  ;;  %v897_v55 = vadd.f32 %v896_v53, %v5623_v49  ;;  %v617_v56 = vpop.f32.mrb[1].mxu0  ;;  %v898_v57 = vpop.f32.mrb[1].mxu1 }
  0xf5   : > { %v618_v58 = vadd.f32 %v617_v56, %v5625_v50  ;;  %v899_v59 = vadd.f32 %v898_v57, %v5627_v51  ;;  %v619_v60 = vpop.f32.mrb[2].mxu0  ;;  %v900_v61 = vpop.f32.mrb[2].mxu1 }
  0xf6   : > { %v1145_v62 = vmax.f32 %v897_v55, 0.0  ;;  %v620_v63 = vadd.f32 %v619_v60, %v5621_v48  ;;  %v901_v0 = vadd.f32 %v900_v61, %v5623_v49  ;;  %v621_v1 = vpop.f32.mrb[3].mxu0  ;;  %v902_v2 = vpop.f32.mrb[3].mxu1  ;;  %v1143_v6 = vmax.f32 %v616_v54, 0.0 }
  0xf7   : > { %v1146_v3 = vmax.f32 %v899_v59, 0.0  ;;  %v622_v4 = vadd.f32 %v621_v1, %v5625_v50  ;;  %v903_v5 = vadd.f32 %v902_v2, %v5627_v51  ;;  %v1144_v9 = vmax.f32 %v618_v58, 0.0 }
  0xf8   : > { %v1147_v7 = vmax.f32 %v620_v63, 0.0  ;;  %v1149_v8 = vmax.f32 %v901_v0, 0.0 }
  0xf9   : > { %v1148_v10 = vmax.f32 %v622_v4, 0.0  ;;  %v1150_v11 = vmax.f32 %v903_v5, 0.0 }
  0xfa   : > { %v5637_v12 = vpack.c.bf16 %v1147_v7, %v1143_v6  ;;  %v5639_v13 = vpack.c.bf16 %v1149_v8, %v1145_v62 }
  0xfb   : > { %v5641_v14 = vpack.c.bf16 %v1148_v10, %v1144_v9  ;;  %v5643_v15 = vpack.c.bf16 %v1150_v11, %v1146_v3  ;;  %v625_v16 = vpop.f32.mrb[4].mxu0  ;;  %v906_v17 = vpop.f32.mrb[4].mxu1 }
  0xfc   : > { %v626_v19 = vadd.f32 %v625_v16, %v5621_v48  ;;  %v627_v20 = vpop.f32.mrb[5].mxu0  ;;  %v907_v21 = vadd.f32 %v906_v17, %v5623_v49  ;;  %v908_v22 = vpop.f32.mrb[5].mxu1 }
  0xfd   : > { %v628_v23 = vadd.f32 %v627_v20, %v5625_v50  ;;  %1969 = vmatprep.subr.bf16.mxu0 %v5641_v14  ;;  %2111 = vmatprep.subr.bf16.mxu1 %v5643_v15  ;;  %v629_v24 = vpop.f32.mrb[6].mxu0  ;;  %v909_v25 = vadd.f32 %v908_v22, %v5627_v51  ;;  %v910_v26 = vpop.f32.mrb[6].mxu1 }
  0xfe   : > { %v630_v27 = vadd.f32 %v629_v24, %v5621_v48  ;;  %1970 = vmatpush1.bf16.msra.mxu0 %v5637_v12  ;;  %2112 = vmatpush1.bf16.msra.mxu1 %v5639_v13  ;;  %v631_v28 = vpop.f32.mrb[7].mxu0  ;;  %v1153_v29 = vmax.f32 %v907_v21, 0.0  ;;  %v911_v30 = vadd.f32 %v910_v26, %v5623_v49  ;;  %v912_v31 = vpop.f32.mrb[7].mxu1  ;;  %v1151_v35 = vmax.f32 %v626_v19, 0.0 }
  0xff   : > { %v632_v32 = vadd.f32 %v631_v28, %v5625_v50  ;;  %v1154_v33 = vmax.f32 %v909_v25, 0.0  ;;  %v913_v34 = vadd.f32 %v912_v31, %v5627_v51  ;;  %v1152_v38 = vmax.f32 %v628_v23, 0.0 }
 0x100   : > { %v1155_v36 = vmax.f32 %v630_v27, 0.0  ;;  %v1157_v37 = vmax.f32 %v911_v30, 0.0 }
 0x101   : > { %v1156_v39 = vmax.f32 %v632_v32, 0.0  ;;  %v1158_v40 = vmax.f32 %v913_v34, 0.0 }
 0x102   : > { %v5660_v43 = vpack.c.bf16 %v1155_v36, %v1151_v35  ;;  %v5662_v44 = vpack.c.bf16 %v1157_v37, %v1153_v29 }
 0x103   : > { %v5664_v45 = vpack.c.bf16 %v1156_v39, %v1152_v38  ;;  %v5666_v46 = vpack.c.bf16 %v1158_v40, %v1154_v33  ;;  %v635_v47 = vpop.f32.mrb[8].mxu0  ;;  %v916_v52 = vpop.f32.mrb[8].mxu1 }
 0x104   : > { %v636_v53 = vadd.f32 %v635_v47, %v5621_v48  ;;  %v637_v54 = vpop.f32.mrb[9].mxu0  ;;  %v917_v55 = vadd.f32 %v916_v52, %v5623_v49  ;;  %v918_v56 = vpop.f32.mrb[9].mxu1 }
 0x105   : > { %1971 = vmatprep.subr.bf16.mxu0 %v5664_v45  ;;  %v638_v57 = vadd.f32 %v637_v54, %v5625_v50  ;;  %2113 = vmatprep.subr.bf16.mxu1 %v5666_v46  ;;  %v639_v58 = vpop.f32.mrb[10].mxu0  ;;  %v919_v59 = vadd.f32 %v918_v56, %v5627_v51  ;;  %v920_v60 = vpop.f32.mrb[10].mxu1 }
 0x106   : > { %1972 = vmatpush1.bf16.msra.mxu0 %v5660_v43  ;;  %v640_v61 = vadd.f32 %v639_v58, %v5621_v48  ;;  %2114 = vmatpush1.bf16.msra.mxu1 %v5662_v44  ;;  %v641_v62 = vpop.f32.mrb[11].mxu0  ;;  %v1161_v63 = vmax.f32 %v917_v55, 0.0  ;;  %v921_v0 = vadd.f32 %v920_v60, %v5623_v49  ;;  %v922_v1 = vpop.f32.mrb[11].mxu1  ;;  %v1159_v5 = vmax.f32 %v636_v53, 0.0 }
 0x107   : > { %v642_v2 = vadd.f32 %v641_v62, %v5625_v50  ;;  %v1162_v3 = vmax.f32 %v919_v59, 0.0  ;;  %v923_v4 = vadd.f32 %v922_v1, %v5627_v51  ;;  %v1160_v8 = vmax.f32 %v638_v57, 0.0 }
 0x108   : > { %v1163_v6 = vmax.f32 %v640_v61, 0.0  ;;  %v1165_v7 = vmax.f32 %v921_v0, 0.0 }
 0x109   : > { %v1164_v9 = vmax.f32 %v642_v2, 0.0  ;;  %v1166_v10 = vmax.f32 %v923_v4, 0.0 }
 0x10a   : > { %v5680_v11 = vpack.c.bf16 %v1163_v6, %v1159_v5  ;;  %v5682_v16 = vpack.c.bf16 %v1165_v7, %v1161_v63 }
 0x10b   : > { %v5684_v17 = vpack.c.bf16 %v1164_v9, %v1160_v8  ;;  %v5686_v18 = vpack.c.bf16 %v1166_v10, %v1162_v3  ;;  %v645_v19 = vpop.f32.mrb[12].mxu0  ;;  %v926_v20 = vpop.f32.mrb[12].mxu1 }
 0x10c   : > { %v646_v21 = vadd.f32 %v645_v19, %v5621_v48  ;;  %v647_v22 = vpop.f32.mrb[13].mxu0  ;;  %v927_v23 = vadd.f32 %v926_v20, %v5623_v49  ;;  %v928_v24 = vpop.f32.mrb[13].mxu1 }
 0x10d   : > { %1973 = vmatprep.subr.bf16.mxu0 %v5684_v17  ;;  %2115 = vmatprep.subr.bf16.mxu1 %v5686_v18  ;;  %v648_v25 = vadd.f32 %v647_v22, %v5625_v50  ;;  %v649_v26 = vpop.f32.mrb[14].mxu0  ;;  %v929_v27 = vadd.f32 %v928_v24, %v5627_v51  ;;  %v930_v28 = vpop.f32.mrb[14].mxu1 }
 0x10e   : > { %1974 = vmatpush1.bf16.msra.mxu0 %v5680_v11  ;;  %2116 = vmatpush1.bf16.msra.mxu1 %v5682_v16  ;;  %v650_v29 = vadd.f32 %v649_v26, %v5621_v48  ;;  %v651_v30 = vpop.f32.mrb[15].mxu0  ;;  %v1169_v31 = vmax.f32 %v927_v23, 0.0  ;;  %v931_v32 = vadd.f32 %v930_v28, %v5623_v49  ;;  %v932_v33 = vpop.f32.mrb[15].mxu1  ;;  %v1167_v37 = vmax.f32 %v646_v21, 0.0 }
 0x10f   : > { %v652_v34 = vadd.f32 %v651_v30, %v5625_v50  ;;  %v1170_v35 = vmax.f32 %v929_v27, 0.0  ;;  %v933_v36 = vadd.f32 %v932_v33, %v5627_v51  ;;  %v1168_v40 = vmax.f32 %v648_v25, 0.0 }
 0x110   : > { %v1171_v38 = vmax.f32 %v650_v29, 0.0  ;;  %v1173_v39 = vmax.f32 %v931_v32, 0.0 }
 0x111   : > { %v1172_v47 = vmax.f32 %v652_v34, 0.0  ;;  %v1174_v52 = vmax.f32 %v933_v36, 0.0 }
 0x112   : > { %v5700_v53 = vpack.c.bf16 %v1171_v38, %v1167_v37  ;;  %v5702_v54 = vpack.c.bf16 %v1173_v39, %v1169_v31 }
 0x113   : > { %v5704_v55 = vpack.c.bf16 %v1172_v47, %v1168_v40  ;;  %v5706_v56 = vpack.c.bf16 %v1174_v52, %v1170_v35  ;;  %v655_v57 = vpop.f32.mrb[16].mxu0  ;;  %v936_v58 = vpop.f32.mrb[16].mxu1 }
 0x114   : > { %v656_v59 = vadd.f32 %v655_v57, %v5621_v48  ;;  %v657_v60 = vpop.f32.mrb[17].mxu0  ;;  %v937_v61 = vadd.f32 %v936_v58, %v5623_v49  ;;  %v938_v62 = vpop.f32.mrb[17].mxu1 }
 0x115   : > { %1975 = vmatprep.subr.bf16.mxu0 %v5704_v55  ;;  %v658_v63 = vadd.f32 %v657_v60, %v5625_v50  ;;  %2117 = vmatprep.subr.bf16.mxu1 %v5706_v56  ;;  %v659_v0 = vpop.f32.mrb[18].mxu0  ;;  %v939_v1 = vadd.f32 %v938_v62, %v5627_v51  ;;  %v940_v2 = vpop.f32.mrb[18].mxu1 }
 0x116   : > { %1976 = vmatpush1.bf16.msra.mxu0 %v5700_v53  ;;  %v660_v3 = vadd.f32 %v659_v0, %v5621_v48  ;;  %2118 = vmatpush1.bf16.msra.mxu1 %v5702_v54  ;;  %v661_v4 = vpop.f32.mrb[19].mxu0  ;;  %v1177_v5 = vmax.f32 %v937_v61, 0.0  ;;  %v941_v6 = vadd.f32 %v940_v2, %v5623_v49  ;;  %v942_v7 = vpop.f32.mrb[19].mxu1  ;;  %v1175_v19 = vmax.f32 %v656_v59, 0.0 }
 0x117   : > { %v662_v8 = vadd.f32 %v661_v4, %v5625_v50  ;;  %v1178_v9 = vmax.f32 %v939_v1, 0.0  ;;  %v943_v10 = vadd.f32 %v942_v7, %v5627_v51  ;;  %v1176_v22 = vmax.f32 %v658_v63, 0.0 }
 0x118   : > { %v1179_v20 = vmax.f32 %v660_v3, 0.0  ;;  %v1181_v21 = vmax.f32 %v941_v6, 0.0 }
 0x119   : > { %v1180_v23 = vmax.f32 %v662_v8, 0.0  ;;  %v1182_v24 = vmax.f32 %v943_v10, 0.0 }
 0x11a   : > { %v5720_v25 = vpack.c.bf16 %v1179_v20, %v1175_v19  ;;  %v5722_v26 = vpack.c.bf16 %v1181_v21, %v1177_v5 }
 0x11b   : > { %v5724_v27 = vpack.c.bf16 %v1180_v23, %v1176_v22  ;;  %v5726_v28 = vpack.c.bf16 %v1182_v24, %v1178_v9  ;;  %v665_v29 = vpop.f32.mrb[20].mxu0  ;;  %v946_v30 = vpop.f32.mrb[20].mxu1 }
 0x11c   : > { %v666_v31 = vadd.f32 %v665_v29, %v5621_v48  ;;  %v667_v32 = vpop.f32.mrb[21].mxu0  ;;  %v947_v33 = vadd.f32 %v946_v30, %v5623_v49  ;;  %v948_v34 = vpop.f32.mrb[21].mxu1 }
 0x11d   : > { %1977 = vmatprep.subr.bf16.mxu0 %v5724_v27  ;;  %2119 = vmatprep.subr.bf16.mxu1 %v5726_v28  ;;  %v668_v35 = vadd.f32 %v667_v32, %v5625_v50  ;;  %v669_v36 = vpop.f32.mrb[22].mxu0  ;;  %v949_v37 = vadd.f32 %v948_v34, %v5627_v51  ;;  %v950_v38 = vpop.f32.mrb[22].mxu1 }
 0x11e   : > { %1978 = vmatpush1.bf16.msra.mxu0 %v5720_v25  ;;  %2120 = vmatpush1.bf16.msra.mxu1 %v5722_v26  ;;  %v670_v39 = vadd.f32 %v669_v36, %v5621_v48  ;;  %v671_v40 = vpop.f32.mrb[23].mxu0  ;;  %v1185_v47 = vmax.f32 %v947_v33, 0.0  ;;  %v951_v52 = vadd.f32 %v950_v38, %v5623_v49  ;;  %v952_v57 = vpop.f32.mrb[23].mxu1  ;;  %v1183_v61 = vmax.f32 %v666_v31, 0.0 }
 0x11f   : > { %v672_v58 = vadd.f32 %v671_v40, %v5625_v50  ;;  %v1186_v59 = vmax.f32 %v949_v37, 0.0  ;;  %v953_v60 = vadd.f32 %v952_v57, %v5627_v51  ;;  %v1184_v0 = vmax.f32 %v668_v35, 0.0 }
 0x120   : > { %v1187_v62 = vmax.f32 %v670_v39, 0.0  ;;  %v1189_v63 = vmax.f32 %v951_v52, 0.0 }
 0x121   : > { %v1188_v1 = vmax.f32 %v672_v58, 0.0  ;;  %v1190_v2 = vmax.f32 %v953_v60, 0.0 }
 0x122   : > { %v5740_v3 = vpack.c.bf16 %v1187_v62, %v1183_v61  ;;  %v5742_v4 = vpack.c.bf16 %v1189_v63, %v1185_v47 }
 0x123   : > { %v5744_v5 = vpack.c.bf16 %v1188_v1, %v1184_v0  ;;  %v5746_v6 = vpack.c.bf16 %v1190_v2, %v1186_v59  ;;  %v675_v7 = vpop.f32.mrb[24].mxu0  ;;  %v956_v8 = vpop.f32.mrb[24].mxu1 }
 0x124   : > { %v676_v9 = vadd.f32 %v675_v7, %v5621_v48  ;;  %v677_v10 = vpop.f32.mrb[25].mxu0  ;;  %v957_v19 = vadd.f32 %v956_v8, %v5623_v49  ;;  %v958_v20 = vpop.f32.mrb[25].mxu1 }
 0x125   : > { %1979 = vmatprep.subr.bf16.mxu0 %v5744_v5  ;;  %v678_v21 = vadd.f32 %v677_v10, %v5625_v50  ;;  %2121 = vmatprep.subr.bf16.mxu1 %v5746_v6  ;;  %v679_v22 = vpop.f32.mrb[26].mxu0  ;;  %v959_v23 = vadd.f32 %v958_v20, %v5627_v51  ;;  %v960_v24 = vpop.f32.mrb[26].mxu1 }
 0x126   : > { %1980 = vmatpush1.bf16.msra.mxu0 %v5740_v3  ;;  %v680_v29 = vadd.f32 %v679_v22, %v5621_v48  ;;  %2122 = vmatpush1.bf16.msra.mxu1 %v5742_v4  ;;  %v681_v30 = vpop.f32.mrb[27].mxu0  ;;  %v1193_v31 = vmax.f32 %v957_v19, 0.0  ;;  %v961_v32 = vadd.f32 %v960_v24, %v5623_v49  ;;  %v962_v33 = vpop.f32.mrb[27].mxu1  ;;  %v1191_v37 = vmax.f32 %v676_v9, 0.0 }
 0x127   : > { %v682_v34 = vadd.f32 %v681_v30, %v5625_v50  ;;  %v1194_v35 = vmax.f32 %v959_v23, 0.0  ;;  %v963_v36 = vadd.f32 %v962_v33, %v5627_v51  ;;  %v1192_v40 = vmax.f32 %v678_v21, 0.0 }
 0x128   : > { %v1195_v38 = vmax.f32 %v680_v29, 0.0  ;;  %v1197_v39 = vmax.f32 %v961_v32, 0.0 }
 0x129   : > { %v1196_v47 = vmax.f32 %v682_v34, 0.0  ;;  %v1198_v52 = vmax.f32 %v963_v36, 0.0 }
 0x12a   : > { %v5760_v57 = vpack.c.bf16 %v1195_v38, %v1191_v37  ;;  %v5762_v58 = vpack.c.bf16 %v1197_v39, %v1193_v31 }
 0x12b   : > { %v5764_v59 = vpack.c.bf16 %v1196_v47, %v1192_v40  ;;  %v5766_v60 = vpack.c.bf16 %v1198_v52, %v1194_v35  ;;  %v685_v61 = vpop.f32.mrb[28].mxu0  ;;  %v966_v62 = vpop.f32.mrb[28].mxu1 }
 0x12c   : > { %v686_v63 = vadd.f32 %v685_v61, %v5621_v48  ;;  %v687_v0 = vpop.f32.mrb[29].mxu0  ;;  %v967_v1 = vadd.f32 %v966_v62, %v5623_v49  ;;  %v968_v2 = vpop.f32.mrb[29].mxu1 }
 0x12d   : > { %1981 = vmatprep.subr.bf16.mxu0 %v5764_v59  ;;  %2123 = vmatprep.subr.bf16.mxu1 %v5766_v60  ;;  %v688_v7 = vadd.f32 %v687_v0, %v5625_v50  ;;  %v689_v8 = vpop.f32.mrb[30].mxu0  ;;  %v969_v9 = vadd.f32 %v968_v2, %v5627_v51  ;;  %v970_v10 = vpop.f32.mrb[30].mxu1 }
 0x12e   : > { %1982 = vmatpush1.bf16.msra.mxu0 %v5760_v57  ;;  %2124 = vmatpush1.bf16.msra.mxu1 %v5762_v58  ;;  %v690_v19 = vadd.f32 %v689_v8, %v5621_v48  ;;  %v691_v20 = vpop.f32.mrb[31].mxu0  ;;  %v1201_v21 = vmax.f32 %v967_v1, 0.0  ;;  %v971_v22 = vadd.f32 %v970_v10, %v5623_v49  ;;  %v972_v23 = vpop.f32.mrb[31].mxu1  ;;  %v1199_v31 = vmax.f32 %v686_v63, 0.0 }
 0x12f   : > { %v692_v24 = vadd.f32 %v691_v20, %v5625_v50  ;;  %v1202_v29 = vmax.f32 %v969_v9, 0.0  ;;  %v973_v30 = vadd.f32 %v972_v23, %v5627_v51  ;;  %v1200_v34 = vmax.f32 %v688_v7, 0.0 }
 0x130   : > { %v1203_v32 = vmax.f32 %v690_v19, 0.0  ;;  %v1205_v33 = vmax.f32 %v971_v22, 0.0 }
 0x131   : > { %v1204_v35 = vmax.f32 %v692_v24, 0.0  ;;  %v1206_v36 = vmax.f32 %v973_v30, 0.0 }
 0x132   : > { %v5780_v37 = vpack.c.bf16 %v1203_v32, %v1199_v31  ;;  %v5782_v38 = vpack.c.bf16 %v1205_v33, %v1201_v21 }
 0x133   : > { %v5784_v39 = vpack.c.bf16 %v1204_v35, %v1200_v34  ;;  %v5786_v40 = vpack.c.bf16 %v1206_v36, %v1202_v29  ;;  %v695_v47 = vpop.f32.mrb[32].mxu0  ;;  %v976_v52 = vpop.f32.mrb[32].mxu1 }
 0x134   : > { %v696_v61 = vadd.f32 %v695_v47, %v5621_v48  ;;  %v697_v62 = vpop.f32.mrb[33].mxu0  ;;  %v977_v63 = vadd.f32 %v976_v52, %v5623_v49  ;;  %v978_v0 = vpop.f32.mrb[33].mxu1 }
 0x135   : > { %1983 = vmatprep.subr.bf16.mxu0 %v5784_v39  ;;  %v698_v1 = vadd.f32 %v697_v62, %v5625_v50  ;;  %2125 = vmatprep.subr.bf16.mxu1 %v5786_v40  ;;  %v699_v2 = vpop.f32.mrb[34].mxu0  ;;  %v979_v7 = vadd.f32 %v978_v0, %v5627_v51  ;;  %v980_v8 = vpop.f32.mrb[34].mxu1 }
 0x136   : > { %1984 = vmatpush1.bf16.msra.mxu0 %v5780_v37  ;;  %v700_v9 = vadd.f32 %v699_v2, %v5621_v48  ;;  %2126 = vmatpush1.bf16.msra.mxu1 %v5782_v38  ;;  %v701_v10 = vpop.f32.mrb[35].mxu0  ;;  %v1209_v19 = vmax.f32 %v977_v63, 0.0  ;;  %v981_v20 = vadd.f32 %v980_v8, %v5623_v49  ;;  %v982_v21 = vpop.f32.mrb[35].mxu1  ;;  %v1207_v29 = vmax.f32 %v696_v61, 0.0 }
 0x137   : > { %v702_v22 = vadd.f32 %v701_v10, %v5625_v50  ;;  %v1210_v23 = vmax.f32 %v979_v7, 0.0  ;;  %v983_v24 = vadd.f32 %v982_v21, %v5627_v51  ;;  %v1208_v32 = vmax.f32 %v698_v1, 0.0 }
 0x138   : > { %v1211_v30 = vmax.f32 %v700_v9, 0.0  ;;  %v1213_v31 = vmax.f32 %v981_v20, 0.0 }
 0x139   : > { %v1212_v33 = vmax.f32 %v702_v22, 0.0  ;;  %v1214_v34 = vmax.f32 %v983_v24, 0.0 }
 0x13a   : > { %v5800_v35 = vpack.c.bf16 %v1211_v30, %v1207_v29  ;;  %v5802_v36 = vpack.c.bf16 %v1213_v31, %v1209_v19 }
 0x13b   : > { %v5804_v47 = vpack.c.bf16 %v1212_v33, %v1208_v32  ;;  %v5806_v52 = vpack.c.bf16 %v1214_v34, %v1210_v23  ;;  %v705_v62 = vpop.f32.mrb[36].mxu0  ;;  %v986_v63 = vpop.f32.mrb[36].mxu1 }
 0x13c   : > { %v706_v0 = vadd.f32 %v705_v62, %v5621_v48  ;;  %v707_v2 = vpop.f32.mrb[37].mxu0  ;;  %v987_v61 = vadd.f32 %v986_v63, %v5623_v49  ;;  %v988_v7 = vpop.f32.mrb[37].mxu1 }
 0x13d   : > { %1985 = vmatprep.subr.bf16.mxu0 %v5804_v47  ;;  %2127 = vmatprep.subr.bf16.mxu1 %v5806_v52  ;;  %v708_v1 = vadd.f32 %v707_v2, %v5625_v50  ;;  %v709_v8 = vpop.f32.mrb[38].mxu0  ;;  %v989_v9 = vadd.f32 %v988_v7, %v5627_v51  ;;  %v990_v10 = vpop.f32.mrb[38].mxu1 }
 0x13e   : > { %1986 = vmatpush1.bf16.msra.mxu0 %v5800_v35  ;;  %2128 = vmatpush1.bf16.msra.mxu1 %v5802_v36  ;;  %v710_v19 = vadd.f32 %v709_v8, %v5621_v48  ;;  %v711_v20 = vpop.f32.mrb[39].mxu0  ;;  %v1217_v21 = vmax.f32 %v987_v61, 0.0  ;;  %v991_v22 = vadd.f32 %v990_v10, %v5623_v49  ;;  %v992_v23 = vpop.f32.mrb[39].mxu1  ;;  %v1215_v31 = vmax.f32 %v706_v0, 0.0 }
 0x13f   : > { %v712_v24 = vadd.f32 %v711_v20, %v5625_v50  ;;  %v1218_v29 = vmax.f32 %v989_v9, 0.0  ;;  %v993_v30 = vadd.f32 %v992_v23, %v5627_v51  ;;  %v1216_v34 = vmax.f32 %v708_v1, 0.0 }
 0x140   : > { %v1219_v32 = vmax.f32 %v710_v19, 0.0  ;;  %v1221_v33 = vmax.f32 %v991_v22, 0.0 }
 0x141   : > { %v1220_v62 = vmax.f32 %v712_v24, 0.0  ;;  %v1222_v63 = vmax.f32 %v993_v30, 0.0 }
 0x142   : > { %v5820_v2 = vpack.c.bf16 %v1219_v32, %v1215_v31  ;;  %v5822_v7 = vpack.c.bf16 %v1221_v33, %v1217_v21 }
 0x143   : > { %v5824_v8 = vpack.c.bf16 %v1220_v62, %v1216_v34  ;;  %v5826_v61 = vpack.c.bf16 %v1222_v63, %v1218_v29  ;;  %v715_v10 = vpop.f32.mrb[40].mxu0  ;;  %v996_v41 = vpop.f32.mrb[40].mxu1 }
 0x144   : > { %10361 = vst [vmem:[#allocation6_spill] sm:$0xff] %v5820_v2  ;;  %10362 = vst [vmem:[#allocation7_spill] sm:$0xff] %v5822_v7  ;;  %v716_v9 = vadd.f32 %v715_v10, %v5621_v48  ;;  %v717_v20 = vpop.f32.mrb[41].mxu0  ;;  %v997_v0 = vadd.f32 %v996_v41, %v5623_v49  ;;  %v998_v19 = vpop.f32.mrb[41].mxu1 }
 0x145   : > { %10363 = vst [vmem:[#allocation8_spill] sm:$0xff] %v5824_v8  ;;  %10364 = vst [vmem:[#allocation9_spill] sm:$0xff] %v5826_v61  ;;  %v718_v1 = vadd.f32 %v717_v20, %v5625_v50  ;;  %1987 = vmatprep.subr.bf16.mxu0 %v5824_v8  ;;  %v719_v22 = vpop.f32.mrb[42].mxu0  ;;  %v999_v21 = vadd.f32 %v998_v19, %v5627_v51  ;;  %2129 = vmatprep.subr.bf16.mxu1 %v5826_v61  ;;  %v1000_v23 = vpop.f32.mrb[42].mxu1 }
 0x146   : > { %v720_v24 = vadd.f32 %v719_v22, %v5621_v48  ;;  %1988 = vmatpush1.bf16.msra.mxu0 %v5820_v2  ;;  %v721_v29 = vpop.f32.mrb[43].mxu0  ;;  %v1225_v30 = vmax.f32 %v997_v0, 0.0  ;;  %v1001_v31 = vadd.f32 %v1000_v23, %v5623_v49  ;;  %2130 = vmatpush1.bf16.msra.mxu1 %v5822_v7  ;;  %v1002_v41 = vpop.f32.mrb[43].mxu1  ;;  %v1223_v62 = vmax.f32 %v716_v9, 0.0 }
 0x147   : > { %v722_v32 = vadd.f32 %v721_v29, %v5625_v50  ;;  %v1226_v33 = vmax.f32 %v999_v21, 0.0  ;;  %v1003_v34 = vadd.f32 %v1002_v41, %v5627_v51  ;;  %v1224_v20 = vmax.f32 %v718_v1, 0.0 }
 0x148   : > { %v1227_v63 = vmax.f32 %v720_v24, 0.0  ;;  %v1229_v10 = vmax.f32 %v1001_v31, 0.0 }
 0x149   : > { %v1228_v19 = vmax.f32 %v722_v32, 0.0  ;;  %v1230_v22 = vmax.f32 %v1003_v34, 0.0 }
 0x14a   : > { %v5840_v42 = vpack.c.bf16 %v1227_v63, %v1223_v62  ;;  %v5842_v2 = vpack.c.bf16 %v1229_v10, %v1225_v30 }
 0x14b   : > { %v5844_v0 = vpack.c.bf16 %v1228_v19, %v1224_v20  ;;  %v5846_v23 = vpack.c.bf16 %v1230_v22, %v1226_v33  ;;  %v725_v7 = vpop.f32.mrb[44].mxu0  ;;  %v1006_v61 = vpop.f32.mrb[44].mxu1 }
 0x14c   : > { %10365 = vst [vmem:[#allocation10_spill] sm:$0xff] %v5840_v42  ;;  %10366 = vst [vmem:[#allocation11_spill] sm:$0xff] %v5842_v2  ;;  %v726_v21 = vadd.f32 %v725_v7, %v5621_v48  ;;  %v727_v29 = vpop.f32.mrb[45].mxu0  ;;  %v1007_v9 = vadd.f32 %v1006_v61, %v5623_v49  ;;  %v1008_v24 = vpop.f32.mrb[45].mxu1 }
 0x14d   : > { %10367 = vst [vmem:[#allocation12_spill] sm:$0xff] %v5844_v0  ;;  %10368 = vst [vmem:[#allocation13_spill] sm:$0xff] %v5846_v23  ;;  %v728_v1 = vadd.f32 %v727_v29, %v5625_v50  ;;  %v729_v31 = vpop.f32.mrb[46].mxu0  ;;  %1989 = vmatprep.subr.bf16.mxu0 %v5844_v0  ;;  %v1009_v30 = vadd.f32 %v1008_v24, %v5627_v51  ;;  %v1010_v41 = vpop.f32.mrb[46].mxu1  ;;  %2131 = vmatprep.subr.bf16.mxu1 %v5846_v23 }
 0x14e   : > { %v730_v32 = vadd.f32 %v729_v31, %v5621_v48  ;;  %v731_v33 = vpop.f32.mrb[47].mxu0  ;;  %v1233_v34 = vmax.f32 %v1007_v9, 0.0  ;;  %1990 = vmatpush1.bf16.msra.mxu0 %v5840_v42  ;;  %v1011_v7 = vadd.f32 %v1010_v41, %v5623_v49  ;;  %v1012_v61 = vpop.f32.mrb[47].mxu1  ;;  %2132 = vmatpush1.bf16.msra.mxu1 %v5842_v2  ;;  %v1231_v20 = vmax.f32 %v726_v21, 0.0 }
 0x14f   : > { %v732_v62 = vadd.f32 %v731_v33, %v5625_v50  ;;  %v1234_v63 = vmax.f32 %v1009_v30, 0.0  ;;  %v1013_v10 = vadd.f32 %v1012_v61, %v5627_v51  ;;  %v1232_v29 = vmax.f32 %v728_v1, 0.0 }
 0x150   : > { %v1235_v19 = vmax.f32 %v730_v32, 0.0  ;;  %v1237_v22 = vmax.f32 %v1011_v7, 0.0 }
 0x151   : > { %v1236_v24 = vmax.f32 %v732_v62, 0.0  ;;  %v1238_v31 = vmax.f32 %v1013_v10, 0.0 }
 0x152   : > { %v5860_v23 = vpack.c.bf16 %v1235_v19, %v1231_v20  ;;  %v5862_v9 = vpack.c.bf16 %v1237_v22, %v1233_v34 }
 0x153   : > { %v5864_v42 = vpack.c.bf16 %v1236_v24, %v1232_v29  ;;  %v5866_v41 = vpack.c.bf16 %v1238_v31, %v1234_v63  ;;  %v735_v2 = vpop.f32.mrb[48].mxu0  ;;  %v1016_v0 = vpop.f32.mrb[48].mxu1 }
 0x154   : > { %10369 = vst [vmem:[#allocation14_spill] sm:$0xff] %v5860_v23  ;;  %10370 = vst [vmem:[#allocation15_spill] sm:$0xff] %v5862_v9  ;;  %v736_v30 = vadd.f32 %v735_v2, %v5621_v48  ;;  %v737_v33 = vpop.f32.mrb[49].mxu0  ;;  %v1017_v21 = vadd.f32 %v1016_v0, %v5623_v49  ;;  %v1018_v32 = vpop.f32.mrb[49].mxu1 }
 0x155   : > { %10371 = vst [vmem:[#allocation16_spill] sm:$0xff] %v5864_v42  ;;  %10372 = vst [vmem:[#allocation17_spill] sm:$0xff] %v5866_v41  ;;  %v738_v1 = vadd.f32 %v737_v33, %v5625_v50  ;;  %v739_v7 = vpop.f32.mrb[50].mxu0  ;;  %1991 = vmatprep.subr.bf16.mxu0 %v5864_v42  ;;  %v1019_v34 = vadd.f32 %v1018_v32, %v5627_v51  ;;  %v1020_v61 = vpop.f32.mrb[50].mxu1  ;;  %2133 = vmatprep.subr.bf16.mxu1 %v5866_v41 }
 0x156   : > { %v740_v62 = vadd.f32 %v739_v7, %v5621_v48  ;;  %v741_v63 = vpop.f32.mrb[51].mxu0  ;;  %v1241_v10 = vmax.f32 %v1017_v21, 0.0  ;;  %1992 = vmatpush1.bf16.msra.mxu0 %v5860_v23  ;;  %v1021_v2 = vadd.f32 %v1020_v61, %v5623_v49  ;;  %v1022_v0 = vpop.f32.mrb[51].mxu1  ;;  %2134 = vmatpush1.bf16.msra.mxu1 %v5862_v9  ;;  %v1239_v29 = vmax.f32 %v736_v30, 0.0 }
 0x157   : > { %v742_v20 = vadd.f32 %v741_v63, %v5625_v50  ;;  %v1242_v19 = vmax.f32 %v1019_v34, 0.0  ;;  %v1023_v22 = vadd.f32 %v1022_v0, %v5627_v51  ;;  %v1240_v33 = vmax.f32 %v738_v1, 0.0 }
 0x158   : > { %v1243_v24 = vmax.f32 %v740_v62, 0.0  ;;  %v1245_v31 = vmax.f32 %v1021_v2, 0.0 }
 0x159   : > { %v1244_v32 = vmax.f32 %v742_v20, 0.0  ;;  %v1246_v7 = vmax.f32 %v1023_v22, 0.0 }
 0x15a   : > { %v5880_v41 = vpack.c.bf16 %v1243_v24, %v1239_v29  ;;  %v5882_v21 = vpack.c.bf16 %v1245_v31, %v1241_v10 }
 0x15b   : > { %v5884_v23 = vpack.c.bf16 %v1244_v32, %v1240_v33  ;;  %v5886_v61 = vpack.c.bf16 %v1246_v7, %v1242_v19  ;;  %v745_v9 = vpop.f32.mrb[52].mxu0  ;;  %v1026_v42 = vpop.f32.mrb[52].mxu1 }
 0x15c   : > { %10373 = vst [vmem:[#allocation18_spill] sm:$0xff] %v5880_v41  ;;  %10374 = vst [vmem:[#allocation19_spill] sm:$0xff] %v5882_v21  ;;  %v746_v34 = vadd.f32 %v745_v9, %v5621_v48  ;;  %v747_v63 = vpop.f32.mrb[53].mxu0  ;;  %v1027_v30 = vadd.f32 %v1026_v42, %v5623_v49  ;;  %v1028_v62 = vpop.f32.mrb[53].mxu1 }
 0x15d   : > { %10375 = vst [vmem:[#allocation20_spill] sm:$0xff] %v5884_v23  ;;  %10376 = vst [vmem:[#allocation21_spill] sm:$0xff] %v5886_v61  ;;  %v748_v1 = vadd.f32 %v747_v63, %v5625_v50  ;;  %v749_v2 = vpop.f32.mrb[54].mxu0  ;;  %1993 = vmatprep.subr.bf16.mxu0 %v5884_v23  ;;  %v1029_v10 = vadd.f32 %v1028_v62, %v5627_v51  ;;  %v1030_v0 = vpop.f32.mrb[54].mxu1  ;;  %2135 = vmatprep.subr.bf16.mxu1 %v5886_v61 }
 0x15e   : > { %v750_v20 = vadd.f32 %v749_v2, %v5621_v48  ;;  %v751_v19 = vpop.f32.mrb[55].mxu0  ;;  %v1249_v22 = vmax.f32 %v1027_v30, 0.0  ;;  %1994 = vmatpush1.bf16.msra.mxu0 %v5880_v41  ;;  %v1031_v9 = vadd.f32 %v1030_v0, %v5623_v49  ;;  %v1032_v42 = vpop.f32.mrb[55].mxu1  ;;  %2136 = vmatpush1.bf16.msra.mxu1 %v5882_v21  ;;  %v1247_v33 = vmax.f32 %v746_v34, 0.0 }
 0x15f   : > { %v752_v29 = vadd.f32 %v751_v19, %v5625_v50  ;;  %v1250_v24 = vmax.f32 %v1029_v10, 0.0  ;;  %v1033_v31 = vadd.f32 %v1032_v42, %v5627_v51  ;;  %v1248_v63 = vmax.f32 %v748_v1, 0.0 }
 0x160   : > { %v1251_v32 = vmax.f32 %v750_v20, 0.0  ;;  %v1253_v7 = vmax.f32 %v1031_v9, 0.0 }
 0x161   : > { %v1252_v62 = vmax.f32 %v752_v29, 0.0  ;;  %v1254_v2 = vmax.f32 %v1033_v31, 0.0 }
 0x162   : > { %v5900_v61 = vpack.c.bf16 %v1251_v32, %v1247_v33  ;;  %v5902_v30 = vpack.c.bf16 %v1253_v7, %v1249_v22 }
 0x163   : > { %v5904_v41 = vpack.c.bf16 %v1252_v62, %v1248_v63  ;;  %v5906_v0 = vpack.c.bf16 %v1254_v2, %v1250_v24  ;;  %v755_v21 = vpop.f32.mrb[56].mxu0  ;;  %v1036_v23 = vpop.f32.mrb[56].mxu1 }
 0x164   : > { %10377 = vst [vmem:[#allocation22_spill] sm:$0xff] %v5900_v61  ;;  %10378 = vst [vmem:[#allocation23_spill] sm:$0xff] %v5902_v30  ;;  %v756_v10 = vadd.f32 %v755_v21, %v5621_v48  ;;  %v1037_v19 = vadd.f32 %v1036_v23, %v5623_v49  ;;  %v757_v34 = vpop.f32.mrb[57].mxu0  ;;  %v1038_v20 = vpop.f32.mrb[57].mxu1 }
 0x165   : > { %10379 = vst [vmem:[#allocation24_spill] sm:$0xff] %v5904_v41  ;;  %10380 = vst [vmem:[#allocation25_spill] sm:$0xff] %v5906_v0  ;;  %v758_v1 = vadd.f32 %v757_v34, %v5625_v50  ;;  %v1039_v9 = vadd.f32 %v1038_v20, %v5627_v51  ;;  %v759_v42 = vpop.f32.mrb[58].mxu0  ;;  %v1040_v29 = vpop.f32.mrb[58].mxu1  ;;  %1995 = vmatprep.subr.bf16.mxu0 %v5904_v41  ;;  %2137 = vmatprep.subr.bf16.mxu1 %v5906_v0 }
 0x166   : > { %v1257_v22 = vmax.f32 %v1037_v19, 0.0  ;;  %v760_v24 = vadd.f32 %v759_v42, %v5621_v48  ;;  %v1041_v31 = vadd.f32 %v1040_v29, %v5623_v49  ;;  %v761_v21 = vpop.f32.mrb[59].mxu0  ;;  %v1042_v33 = vpop.f32.mrb[59].mxu1  ;;  %1996 = vmatpush1.bf16.msra.mxu0 %v5900_v61  ;;  %2138 = vmatpush1.bf16.msra.mxu1 %v5902_v30  ;;  %v1255_v63 = vmax.f32 %v756_v10, 0.0 }
 0x167   : > { %v1258_v23 = vmax.f32 %v1039_v9, 0.0  ;;  %v762_v32 = vadd.f32 %v761_v21, %v5625_v50  ;;  %v1043_v7 = vadd.f32 %v1042_v33, %v5627_v51  ;;  %v1256_v34 = vmax.f32 %v758_v1, 0.0 }
 0x168   : > { %v1259_v62 = vmax.f32 %v760_v24, 0.0  ;;  %v1261_v2 = vmax.f32 %v1041_v31, 0.0 }
 0x169   : > { %v1260_v19 = vmax.f32 %v762_v32, 0.0  ;;  %v1262_v20 = vmax.f32 %v1043_v7, 0.0 }
 0x16a   : > { %v5920_v42 = vpack.c.bf16 %v1259_v62, %v1255_v63  ;;  %v5922_v29 = vpack.c.bf16 %v1261_v2, %v1257_v22 }
 0x16b   : > { %v5924_v0 = vpack.c.bf16 %v1260_v19, %v1256_v34  ;;  %v5926_v61 = vpack.c.bf16 %v1262_v20, %v1258_v23  ;;  %v765_v30 = vpop.f32.mrb[60].mxu0  ;;  %v1046_v9 = vpop.f32.mrb[60].mxu1 }
 0x16c   : > { %10381 = vst [vmem:[#allocation26_spill] sm:$0xff] %v5920_v42  ;;  %10382 = vst [vmem:[#allocation27_spill] sm:$0xff] %v5922_v29  ;;  %v766_v21 = vadd.f32 %v765_v30, %v5621_v48  ;;  %v1047_v33 = vadd.f32 %v1046_v9, %v5623_v49  ;;  %v767_v10 = vpop.f32.mrb[61].mxu0  ;;  %v1048_v24 = vpop.f32.mrb[61].mxu1 }
 0x16d   : > { %10383 = vst [vmem:[#allocation28_spill] sm:$0xff] %v5924_v0  ;;  %10384 = vst [vmem:[#allocation29_spill] sm:$0xff] %v5926_v61  ;;  %v768_v1 = vadd.f32 %v767_v10, %v5625_v50  ;;  %v1049_v31 = vadd.f32 %v1048_v24, %v5627_v51  ;;  %v769_v32 = vpop.f32.mrb[62].mxu0  ;;  %v1050_v7 = vpop.f32.mrb[62].mxu1  ;;  %1997 = vmatprep.subr.bf16.mxu0 %v5924_v0  ;;  %2139 = vmatprep.subr.bf16.mxu1 %v5926_v61 }
 0x16e   : > { %v1265_v22 = vmax.f32 %v1047_v33, 0.0  ;;  %v770_v23 = vadd.f32 %v769_v32, %v5621_v48  ;;  %v1051_v63 = vadd.f32 %v1050_v7, %v5623_v49  ;;  %v771_v30 = vpop.f32.mrb[63].mxu0  ;;  %v1052_v62 = vpop.f32.mrb[63].mxu1  ;;  %1998 = vmatpush1.bf16.msra.mxu0 %v5920_v42  ;;  %2140 = vmatpush1.bf16.msra.mxu1 %v5922_v29  ;;  %v1263_v20 = vmax.f32 %v766_v21, 0.0 }
 0x16f   : > { %v1266_v2 = vmax.f32 %v1049_v31, 0.0  ;;  %v772_v34 = vadd.f32 %v771_v30, %v5625_v50  ;;  %v1053_v19 = vadd.f32 %v1052_v62, %v5627_v51  ;;  %v1264_v24 = vmax.f32 %v768_v1, 0.0 }
 0x170   : > { %v1267_v9 = vmax.f32 %v770_v23, 0.0  ;;  %v1269_v10 = vmax.f32 %v1051_v63, 0.0 }
 0x171   : > { %v1268_v33 = vmax.f32 %v772_v34, 0.0  ;;  %v1270_v61 = vmax.f32 %v1053_v19, 0.0 }
 0x172   : > { %v5940_v32 = vpack.c.bf16 %v1267_v9, %v1263_v20  ;;  %v5942_v7 = vpack.c.bf16 %v1269_v10, %v1265_v22  ;;  %v5264_v10 = vld [vmem:[%s9935_s3 + $0x24] ss:$16 sps:$4 sm:$0xff]  }
 0x173   : > { %v5944_v0 = vpack.c.bf16 %v1268_v33, %v1264_v24  ;;  %v5946_v42 = vpack.c.bf16 %v1270_v61, %v1266_v2  ;;  %v775_v29 = vpop.f32.mrb[64].mxu0  ;;  %v1056_v31 = vpop.f32.mrb[64].mxu1  ;;  %v5261_v61 = vld [vmem:[%s9935_s3] ss:$16 sps:$4 sm:$0xff]  }
 0x174   : > { %10385 = vst [vmem:[#allocation30_spill] sm:$0xff] %v5940_v32  ;;  %10386 = vst [vmem:[#allocation31_spill] sm:$0xff] %v5942_v7  ;;  %v776_v30 = vadd.f32 %v775_v29, %v5621_v48  ;;  %v1057_v62 = vadd.f32 %v1056_v31, %v5623_v49  ;;  %v777_v21 = vpop.f32.mrb[65].mxu0  ;;  %v1058_v23 = vpop.f32.mrb[65].mxu1 }
 0x175   : > { %10387 = vst [vmem:[#allocation32_spill] sm:$0xff] %v5944_v0  ;;  %10388 = vst [vmem:[#allocation33_spill] sm:$0xff] %v5946_v42  ;;  %v778_v1 = vadd.f32 %v777_v21, %v5625_v50  ;;  %v1059_v63 = vadd.f32 %v1058_v23, %v5627_v51  ;;  %v779_v34 = vpop.f32.mrb[66].mxu0  ;;  %v1060_v19 = vpop.f32.mrb[66].mxu1  ;;  %1999 = vmatprep.subr.bf16.mxu0 %v5944_v0  ;;  %2141 = vmatprep.subr.bf16.mxu1 %v5946_v42 }
 0x176   : > { %v1273_v22 = vmax.f32 %v1057_v62, 0.0  ;;  %v780_v29 = vadd.f32 %v779_v34, %v5621_v48  ;;  %v1061_v2 = vadd.f32 %v1060_v19, %v5623_v49  ;;  %v781_v20 = vpop.f32.mrb[67].mxu0  ;;  %v1062_v9 = vpop.f32.mrb[67].mxu1  ;;  %2000 = vmatpush1.bf16.msra.mxu0 %v5940_v32  ;;  %2142 = vmatpush1.bf16.msra.mxu1 %v5942_v7  ;;  %v1271_v62 = vmax.f32 %v776_v30, 0.0 }
 0x177   : > { %v1274_v24 = vmax.f32 %v1059_v63, 0.0  ;;  %v782_v33 = vadd.f32 %v781_v20, %v5625_v50  ;;  %v1063_v31 = vadd.f32 %v1062_v9, %v5627_v51  ;;  %v1272_v34 = vmax.f32 %v778_v1, 0.0 }
 0x178   : > { %v1275_v21 = vmax.f32 %v780_v29, 0.0  ;;  %v1277_v23 = vmax.f32 %v1061_v2, 0.0 }
 0x179   : > { %v1276_v19 = vmax.f32 %v782_v33, 0.0  ;;  %v1278_v42 = vmax.f32 %v1063_v31, 0.0  ;;  %2002 = vmatmul.mubr.bf16.vlgmr.msra.gmra.mrb[100].mxu0 %v5261_v61  ;;  %2144 = vmatmul.mubr.bf16.vlgmr.msra.gmra.mrb[100].mxu1 %v5261_v61 }
 0x17a   : > { %v5966_v32 = vpack.c.bf16 %v1275_v21, %v1271_v62  ;;  %v5968_v7 = vpack.c.bf16 %v1277_v23, %v1273_v22  ;;  %2011 = vmatprep.mubr.bf16.mxu0 %v5264_v10  ;;  %2153 = vmatprep.mubr.bf16.mxu1 %v5264_v10 }
 0x17b   : > { %v5970_v0 = vpack.c.bf16 %v1276_v19, %v1272_v34  ;;  %v5972_v63 = vpack.c.bf16 %v1278_v42, %v1274_v24  ;;  %v785_v20 = vpop.f32.mrb[68].mxu0  ;;  %v1066_v9 = vpop.f32.mrb[68].mxu1  ;;  %v5266_v42 = vld [vmem:[%s9935_s3 + $0x20] ss:$16 sps:$4 sm:$0xff]   ;;  %v5267_v34 = vld [vmem:[%s9935_s3 + $0x44] ss:$16 sps:$4 sm:$0xff]  }
 0x17c   : > { %10389 = vst [vmem:[#allocation34_spill] sm:$0xff] %v5966_v32  ;;  %10390 = vst [vmem:[#allocation35_spill] sm:$0xff] %v5968_v7  ;;  %v786_v30 = vadd.f32 %v785_v20, %v5621_v48  ;;  %v1067_v1 = vadd.f32 %v1066_v9, %v5623_v49  ;;  %v787_v29 = vpop.f32.mrb[69].mxu0  ;;  %v1068_v2 = vpop.f32.mrb[69].mxu1 }
 0x17d   : > { %10391 = vst [vmem:[#allocation36_spill] sm:$0xff] %v5970_v0  ;;  %10392 = vst [vmem:[#allocation37_spill] sm:$0xff] %v5972_v63  ;;  %v788_v61 = vadd.f32 %v787_v29, %v5625_v50  ;;  %v1069_v33 = vadd.f32 %v1068_v2, %v5627_v51  ;;  %v789_v22 = vpop.f32.mrb[70].mxu0  ;;  %v1070_v31 = vpop.f32.mrb[70].mxu1  ;;  %2040 = vmatprep.subr.bf16.mxu0 %v5970_v0  ;;  %2182 = vmatprep.subr.bf16.mxu1 %v5972_v63 }
 0x17e   : > { %v1281_v10 = vmax.f32 %v1067_v1, 0.0  ;;  %v790_v24 = vadd.f32 %v789_v22, %v5621_v48  ;;  %v1071_v62 = vadd.f32 %v1070_v31, %v5623_v49  ;;  %v791_v21 = vpop.f32.mrb[71].mxu0  ;;  %v1072_v23 = vpop.f32.mrb[71].mxu1  ;;  %2041 = vmatpush1.bf16.msra.mxu0 %v5966_v32  ;;  %2183 = vmatpush1.bf16.msra.mxu1 %v5968_v7  ;;  %v1279_v1 = vmax.f32 %v786_v30, 0.0  ;;  %v1871_v30 = vld [vmem:[%s9935_s3 + $0x60] sm:$0x11] }
 0x17f   : > { %v1282_v19 = vmax.f32 %v1069_v33, 0.0  ;;  %v792_v20 = vadd.f32 %v791_v21, %v5625_v50  ;;  %v1073_v9 = vadd.f32 %v1072_v23, %v5627_v51  ;;  %v1280_v22 = vmax.f32 %v788_v61, 0.0 }
 0x180   : > { %v1283_v29 = vmax.f32 %v790_v24, 0.0  ;;  %v1285_v2 = vmax.f32 %v1071_v62, 0.0 }
 0x181   : > { %v1284_v31 = vmax.f32 %v792_v20, 0.0  ;;  %v1286_v63 = vmax.f32 %v1073_v9, 0.0  ;;  %2012 = vmatmul.mubr.bf16.gmra.mrb[104].mxu0 %v5266_v42  ;;  %2154 = vmatmul.mubr.bf16.gmra.mrb[104].mxu1 %v5266_v42 }
 0x182   : > { %v5992_v32 = vpack.c.bf16 %v1283_v29, %v1279_v1  ;;  %v5994_v7 = vpack.c.bf16 %v1285_v2, %v1281_v10  ;;  %2021 = vmatprep.mubr.bf16.mxu0 %v5267_v34  ;;  %2163 = vmatprep.mubr.bf16.mxu1 %v5267_v34 }
 0x183   : > { %v5996_v0 = vpack.c.bf16 %v1284_v31, %v1280_v22  ;;  %v5998_v33 = vpack.c.bf16 %v1286_v63, %v1282_v19  ;;  %v795_v21 = vpop.f32.mrb[72].mxu0  ;;  %v1076_v23 = vpop.f32.mrb[72].mxu1  ;;  %v5269_v63 = vld [vmem:[%s9935_s3 + $0x40] ss:$16 sps:$4 sm:$0xff]   ;;  %v5060_v31 = vcombine.high %v1871_v30, %v1871_v30 }
 0x184   : > { %10393 = vst [vmem:[#allocation38_spill] sm:$0xff] %v5994_v7  ;;  %v796_v61 = vadd.f32 %v795_v21, %v5621_v48  ;;  %v1077_v42 = vadd.f32 %v1076_v23, %v5623_v49  ;;  %v797_v24 = vpop.f32.mrb[73].mxu0  ;;  %v1078_v62 = vpop.f32.mrb[73].mxu1 }
 0x185   : > { %10394 = vst [vmem:[#allocation39_spill] sm:$0xff] %v5996_v0  ;;  %10395 = vst [vmem:[#allocation40_spill] sm:$0xff] %v5998_v33  ;;  %v798_v10 = vadd.f32 %v797_v24, %v5625_v50  ;;  %v1079_v34 = vadd.f32 %v1078_v62, %v5627_v51  ;;  %v799_v20 = vpop.f32.mrb[74].mxu0  ;;  %v1080_v9 = vpop.f32.mrb[74].mxu1  ;;  %2042 = vmatprep.subr.bf16.mxu0 %v5996_v0  ;;  %2184 = vmatprep.subr.bf16.mxu1 %v5998_v33 }
 0x186   : > { %v1289_v19 = vmax.f32 %v1077_v42, 0.0  ;;  %v800_v1 = vadd.f32 %v799_v20, %v5621_v48  ;;  %v1081_v29 = vadd.f32 %v1080_v9, %v5623_v49  ;;  %v801_v2 = vpop.f32.mrb[75].mxu0  ;;  %v1082_v22 = vpop.f32.mrb[75].mxu1  ;;  %2043 = vmatpush1.bf16.msra.mxu0 %v5992_v32  ;;  %2185 = vmatpush1.bf16.msra.mxu1 %v5994_v7  ;;  %v1287_v62 = vmax.f32 %v796_v61, 0.0 }
 0x187   : > { %v1290_v21 = vmax.f32 %v1079_v34, 0.0  ;;  %v802_v23 = vadd.f32 %v801_v2, %v5625_v50  ;;  %v1083_v24 = vadd.f32 %v1082_v22, %v5627_v51  ;;  %v1288_v42 = vmax.f32 %v798_v10, 0.0 }
 0x188   : > { %v1291_v33 = vmax.f32 %v800_v1, 0.0  ;;  %v1293_v0 = vmax.f32 %v1081_v29, 0.0 }
 0x189   : > { %v1292_v41 = vmax.f32 %v802_v23, 0.0  ;;  %v1294_v20 = vmax.f32 %v1083_v24, 0.0  ;;  %2022 = vmatmul.mubr.bf16.gmra.mrb[108].mxu0 %v5269_v63  ;;  %2164 = vmatmul.mubr.bf16.gmra.mrb[108].mxu1 %v5269_v63 }
 0x18a   : > { %v6018_v9 = vpack.c.bf16 %v1291_v33, %v1287_v62  ;;  %v6020_v8 = vpack.c.bf16 %v1293_v0, %v1289_v19  ;;  %2031 = vmatprep.mubr.bf16.mxu0 %v5060_v31  ;;  %2173 = vmatprep.mubr.bf16.mxu1 %v5060_v31 }
 0x18b   : > { %v6022_v7 = vpack.c.bf16 %v1292_v41, %v1288_v42  ;;  %v6024_v34 = vpack.c.bf16 %v1294_v20, %v1290_v21  ;;  %v805_v2 = vpop.f32.mrb[76].mxu0  ;;  %v1086_v22 = vpop.f32.mrb[76].mxu1  ;;  %v5059_v41 = vcombine.low %v1871_v30, %v1871_v30  ;;  %v5274_v42 = vld [vmem:[%s9935_s3 + $0xc] ss:$16 sps:$4 sm:$0xff]  }
 0x18c   : > { %10396 = vst [vmem:[#allocation41_spill] sm:$0xff] %v6018_v9  ;;  %10397 = vst [vmem:[#allocation42_spill] sm:$0xff] %v6020_v8  ;;  %v806_v61 = vadd.f32 %v805_v2, %v5621_v48  ;;  %v1087_v10 = vadd.f32 %v1086_v22, %v5623_v49  ;;  %v807_v1 = vpop.f32.mrb[77].mxu0  ;;  %v1088_v29 = vpop.f32.mrb[77].mxu1 }
 0x18d   : > { %10398 = vst [vmem:[#allocation43_spill] sm:$0xff] %v6024_v34  ;;  %v808_v63 = vadd.f32 %v807_v1, %v5625_v50  ;;  %v1089_v33 = vadd.f32 %v1088_v29, %v5627_v51  ;;  %v809_v0 = vpop.f32.mrb[78].mxu0  ;;  %v1090_v19 = vpop.f32.mrb[78].mxu1  ;;  %2044 = vmatprep.subr.bf16.mxu0 %v6022_v7  ;;  %2186 = vmatprep.subr.bf16.mxu1 %v6024_v34 }
 0x18e   : > { %v1297_v31 = vmax.f32 %v1087_v10, 0.0  ;;  %v810_v21 = vadd.f32 %v809_v0, %v5621_v48  ;;  %v1091_v23 = vadd.f32 %v1090_v19, %v5623_v49  ;;  %v811_v24 = vpop.f32.mrb[79].mxu0  ;;  %v1092_v62 = vpop.f32.mrb[79].mxu1  ;;  %2045 = vmatpush1.bf16.msra.mxu0 %v6018_v9  ;;  %2187 = vmatpush1.bf16.msra.mxu1 %v6020_v8  ;;  %v1295_v22 = vmax.f32 %v806_v61, 0.0 }
 0x18f   : > { %v1298_v20 = vmax.f32 %v1089_v33, 0.0  ;;  %v812_v2 = vadd.f32 %v811_v24, %v5625_v50  ;;  %v1093_v30 = vadd.f32 %v1092_v62, %v5627_v51  ;;  %v1296_v29 = vmax.f32 %v808_v63, 0.0 }
 0x190   : > { %v1299_v10 = vmax.f32 %v810_v21, 0.0  ;;  %v1301_v1 = vmax.f32 %v1091_v23, 0.0 }
 0x191   : > { %v1300_v0 = vmax.f32 %v812_v2, 0.0  ;;  %v1302_v19 = vmax.f32 %v1093_v30, 0.0  ;;  %2032 = vmatmul.mubr.bf16.gmra.mrb[112].mxu0 %v5059_v41  ;;  %2174 = vmatmul.mubr.bf16.gmra.mrb[112].mxu1 %v5059_v41 }
 0x192   : > { %v6041_v9 = vpack.c.bf16 %v1299_v10, %v1295_v22  ;;  %v6043_v8 = vpack.c.bf16 %v1301_v1, %v1297_v31  ;;  %5064 = vmatprep.mubr.msk.bf16.mxu0 %vm1943_vm3, %v5274_v42  ;;  %5069 = vmatprep.mubr.msk.bf16.mxu1 %vm1943_vm3, %v5274_v42 }
 0x193   : > { %v6047_v33 = vpack.c.bf16 %v1300_v0, %v1296_v29  ;;  %v6049_v24 = vpack.c.bf16 %v1302_v19, %v1298_v20  ;;  %v815_v61 = vpop.f32.mrb[80].mxu0  ;;  %v1096_v21 = vpop.f32.mrb[80].mxu1 }
 0x194   : > { %10399 = vst [vmem:[#allocation44_spill] sm:$0xff] %v6041_v9  ;;  %10400 = vst [vmem:[#allocation45_spill] sm:$0xff] %v6043_v8  ;;  %v816_v63 = vadd.f32 %v815_v61, %v5621_v48  ;;  %v1097_v23 = vadd.f32 %v1096_v21, %v5623_v49  ;;  %v817_v62 = vpop.f32.mrb[81].mxu0  ;;  %v1098_v41 = vpop.f32.mrb[81].mxu1 }
 0x195   : > { %10401 = vst [vmem:[#allocation46_spill] sm:$0xff] %v6047_v33  ;;  %10402 = vst [vmem:[#allocation47_spill] sm:$0xff] %v6049_v24  ;;  %v818_v2 = vadd.f32 %v817_v62, %v5625_v50  ;;  %v1099_v31 = vadd.f32 %v1098_v41, %v5627_v51  ;;  %v819_v30 = vpop.f32.mrb[82].mxu0  ;;  %v1100_v22 = vpop.f32.mrb[82].mxu1  ;;  %2046 = vmatprep.subr.bf16.mxu0 %v6047_v33  ;;  %2188 = vmatprep.subr.bf16.mxu1 %v6049_v24 }
 0x196   : > { %v1305_v42 = vmax.f32 %v1097_v23, 0.0  ;;  %v820_v20 = vadd.f32 %v819_v30, %v5621_v48  ;;  %v1101_v10 = vadd.f32 %v1100_v22, %v5623_v49  ;;  %v821_v1 = vpop.f32.mrb[83].mxu0  ;;  %v1102_v29 = vpop.f32.mrb[83].mxu1  ;;  %2047 = vmatpush1.bf16.msra.mxu0 %v6041_v9  ;;  %2189 = vmatpush1.bf16.msra.mxu1 %v6043_v8  ;;  %v1303_v21 = vmax.f32 %v816_v63, 0.0 }
 0x197   : > { %v1306_v0 = vmax.f32 %v1099_v31, 0.0  ;;  %v822_v19 = vadd.f32 %v821_v1, %v5625_v50  ;;  %v1103_v61 = vadd.f32 %v1102_v29, %v5627_v51  ;;  %v1304_v24 = vmax.f32 %v818_v2, 0.0 }
 0x198   : > { %v1307_v62 = vmax.f32 %v820_v20, 0.0  ;;  %v1309_v41 = vmax.f32 %v1101_v10, 0.0 }
 0x199   : > { %v1308_v23 = vmax.f32 %v822_v19, 0.0  ;;  %v1310_v33 = vmax.f32 %v1103_v61, 0.0 }
 0x19a   : > { %v6063_v30 = vpack.c.bf16 %v1307_v62, %v1303_v21  ;;  %v6065_v22 = vpack.c.bf16 %v1309_v41, %v1305_v42 }
 0x19b   : > { %v6067_v34 = vpack.c.bf16 %v1308_v23, %v1304_v24  ;;  %v6069_v9 = vpack.c.bf16 %v1310_v33, %v1306_v0  ;;  %v825_v8 = vpop.f32.mrb[84].mxu0  ;;  %v1106_v31 = vpop.f32.mrb[84].mxu1 }
 0x19c   : > { %10403 = vst [vmem:[#allocation48_spill] sm:$0xff] %v6063_v30  ;;  %10404 = vst [vmem:[#allocation49_spill] sm:$0xff] %v6065_v22  ;;  %v826_v1 = vadd.f32 %v825_v8, %v5621_v48  ;;  %v1107_v29 = vadd.f32 %v1106_v31, %v5623_v49  ;;  %v827_v63 = vpop.f32.mrb[85].mxu0  ;;  %v1108_v20 = vpop.f32.mrb[85].mxu1 }
 0x19d   : > { %10405 = vst [vmem:[#allocation50_spill] sm:$0xff] %v6067_v34  ;;  %10406 = vst [vmem:[#allocation51_spill] sm:$0xff] %v6069_v9  ;;  %v828_v2 = vadd.f32 %v827_v63, %v5625_v50  ;;  %v1109_v10 = vadd.f32 %v1108_v20, %v5627_v51  ;;  %v829_v19 = vpop.f32.mrb[86].mxu0  ;;  %v1110_v61 = vpop.f32.mrb[86].mxu1  ;;  %2048 = vmatprep.subr.bf16.mxu0 %v6067_v34  ;;  %2190 = vmatprep.subr.bf16.mxu1 %v6069_v9 }
 0x19e   : > { %v1313_v33 = vmax.f32 %v1107_v29, 0.0  ;;  %v830_v24 = vadd.f32 %v829_v19, %v5621_v48  ;;  %v1111_v42 = vadd.f32 %v1110_v61, %v5623_v49  ;;  %v831_v8 = vpop.f32.mrb[87].mxu0  ;;  %v1112_v0 = vpop.f32.mrb[87].mxu1  ;;  %2049 = vmatpush1.bf16.msra.mxu0 %v6063_v30  ;;  %2191 = vmatpush1.bf16.msra.mxu1 %v6065_v22  ;;  %v1311_v23 = vmax.f32 %v826_v1, 0.0 }
 0x19f   : > { %v1314_v21 = vmax.f32 %v1109_v10, 0.0  ;;  %v832_v62 = vadd.f32 %v831_v8, %v5625_v50  ;;  %v1113_v41 = vadd.f32 %v1112_v0, %v5627_v51  ;;  %v1312_v20 = vmax.f32 %v828_v2, 0.0 }
 0x1a0   : > { %v1315_v31 = vmax.f32 %v830_v24, 0.0  ;;  %v1317_v63 = vmax.f32 %v1111_v42, 0.0 }
 0x1a1   : > { %v1316_v29 = vmax.f32 %v832_v62, 0.0  ;;  %v1318_v9 = vmax.f32 %v1113_v41, 0.0 }
 0x1a2   : > { %v6083_v19 = vpack.c.bf16 %v1315_v31, %v1311_v23  ;;  %v6085_v61 = vpack.c.bf16 %v1317_v63, %v1313_v33 }
 0x1a3   : > { %v6087_v34 = vpack.c.bf16 %v1316_v29, %v1312_v20  ;;  %v6089_v30 = vpack.c.bf16 %v1318_v9, %v1314_v21  ;;  %v835_v22 = vpop.f32.mrb[88].mxu0  ;;  %v1116_v10 = vpop.f32.mrb[88].mxu1 }
 0x1a4   : > { %10407 = vst [vmem:[#allocation52_spill] sm:$0xff] %v6083_v19  ;;  %10408 = vst [vmem:[#allocation53_spill] sm:$0xff] %v6085_v61  ;;  %v836_v8 = vadd.f32 %v835_v22, %v5621_v48  ;;  %v1117_v0 = vadd.f32 %v1116_v10, %v5623_v49  ;;  %v837_v1 = vpop.f32.mrb[89].mxu0  ;;  %v1118_v24 = vpop.f32.mrb[89].mxu1 }
 0x1a5   : > { %10409 = vst [vmem:[#allocation54_spill] sm:$0xff] %v6087_v34  ;;  %10410 = vst [vmem:[#allocation55_spill] sm:$0xff] %v6089_v30  ;;  %v838_v2 = vadd.f32 %v837_v1, %v5625_v50  ;;  %v1119_v42 = vadd.f32 %v1118_v24, %v5627_v51  ;;  %v839_v62 = vpop.f32.mrb[90].mxu0  ;;  %v1120_v41 = vpop.f32.mrb[90].mxu1  ;;  %2050 = vmatprep.subr.bf16.mxu0 %v6087_v34  ;;  %2192 = vmatprep.subr.bf16.mxu1 %v6089_v30 }
 0x1a6   : > { %v1321_v9 = vmax.f32 %v1117_v0, 0.0  ;;  %v840_v33 = vadd.f32 %v839_v62, %v5621_v48  ;;  %v1121_v21 = vadd.f32 %v1120_v41, %v5623_v49  ;;  %v841_v22 = vpop.f32.mrb[91].mxu0  ;;  %v1122_v23 = vpop.f32.mrb[91].mxu1  ;;  %2051 = vmatpush1.bf16.msra.mxu0 %v6083_v19  ;;  %2193 = vmatpush1.bf16.msra.mxu1 %v6085_v61  ;;  %v1319_v29 = vmax.f32 %v836_v8, 0.0 }
 0x1a7   : > { %v1322_v31 = vmax.f32 %v1119_v42, 0.0  ;;  %v842_v63 = vadd.f32 %v841_v22, %v5625_v50  ;;  %v1123_v20 = vadd.f32 %v1122_v23, %v5627_v51  ;;  %v1320_v24 = vmax.f32 %v838_v2, 0.0 }
 0x1a8   : > { %v1323_v10 = vmax.f32 %v840_v33, 0.0  ;;  %v1325_v1 = vmax.f32 %v1121_v21, 0.0 }
 0x1a9   : > { %v1324_v0 = vmax.f32 %v842_v63, 0.0  ;;  %v1326_v30 = vmax.f32 %v1123_v20, 0.0 }
 0x1aa   : > { %v6103_v62 = vpack.c.bf16 %v1323_v10, %v1319_v29  ;;  %v6105_v41 = vpack.c.bf16 %v1325_v1, %v1321_v9 }
 0x1ab   : > { %v6107_v34 = vpack.c.bf16 %v1324_v0, %v1320_v24  ;;  %v6109_v19 = vpack.c.bf16 %v1326_v30, %v1322_v31  ;;  %v845_v61 = vpop.f32.mrb[92].mxu0  ;;  %v1126_v42 = vpop.f32.mrb[92].mxu1 }
 0x1ac   : > { %10411 = vst [vmem:[#allocation56_spill] sm:$0xff] %v6103_v62  ;;  %10412 = vst [vmem:[#allocation57_spill] sm:$0xff] %v6105_v41  ;;  %v846_v22 = vadd.f32 %v845_v61, %v5621_v48  ;;  %v1127_v23 = vadd.f32 %v1126_v42, %v5623_v49  ;;  %v847_v8 = vpop.f32.mrb[93].mxu0  ;;  %v1128_v33 = vpop.f32.mrb[93].mxu1 }
 0x1ad   : > { %10413 = vst [vmem:[#allocation58_spill] sm:$0xff] %v6107_v34  ;;  %10414 = vst [vmem:[#allocation59_spill] sm:$0xff] %v6109_v19  ;;  %v848_v2 = vadd.f32 %v847_v8, %v5625_v50  ;;  %v1129_v21 = vadd.f32 %v1128_v33, %v5627_v51  ;;  %v849_v63 = vpop.f32.mrb[94].mxu0  ;;  %v1130_v20 = vpop.f32.mrb[94].mxu1  ;;  %2052 = vmatprep.subr.bf16.mxu0 %v6107_v34  ;;  %2194 = vmatprep.subr.bf16.mxu1 %v6109_v19 }
 0x1ae   : > { %v1329_v30 = vmax.f32 %v1127_v23, 0.0  ;;  %v850_v9 = vadd.f32 %v849_v63, %v5621_v48  ;;  %v1131_v31 = vadd.f32 %v1130_v20, %v5623_v49  ;;  %v851_v61 = vpop.f32.mrb[95].mxu0  ;;  %v1132_v29 = vpop.f32.mrb[95].mxu1  ;;  %2053 = vmatpush1.bf16.msra.mxu0 %v6103_v62  ;;  %2195 = vmatpush1.bf16.msra.mxu1 %v6105_v41  ;;  %v1327_v0 = vmax.f32 %v846_v22, 0.0 }
 0x1af   : > { %v1330_v10 = vmax.f32 %v1129_v21, 0.0  ;;  %v852_v1 = vadd.f32 %v851_v61, %v5625_v50  ;;  %v1133_v24 = vadd.f32 %v1132_v29, %v5627_v51  ;;  %v1328_v33 = vmax.f32 %v848_v2, 0.0 }
 0x1b0   : > { %v1331_v42 = vmax.f32 %v850_v9, 0.0  ;;  %v1333_v8 = vmax.f32 %v1131_v31, 0.0 }
 0x1b1   : > { %v1332_v23 = vmax.f32 %v852_v1, 0.0  ;;  %v1334_v19 = vmax.f32 %v1133_v24, 0.0 }
 0x1b2   : > { %v6123_v63 = vpack.c.bf16 %v1331_v42, %v1327_v0  ;;  %v6125_v20 = vpack.c.bf16 %v1333_v8, %v1329_v30 }
 0x1b3   : > { %v6127_v34 = vpack.c.bf16 %v1332_v23, %v1328_v33  ;;  %v6129_v62 = vpack.c.bf16 %v1334_v19, %v1330_v10  ;;  %v855_v41 = vpop.f32.mrb[96].mxu0  ;;  %v1136_v21 = vpop.f32.mrb[96].mxu1  ;;  %v5272_v23 = vld [vmem:[%s9935_s3 + $0x8] ss:$16 sps:$4 sm:$0xff]  }
 0x1b4   : > { %v856_v61 = vadd.f32 %v855_v41, %v5621_v48  ;;  %v1137_v29 = vadd.f32 %v1136_v21, %v5623_v49  ;;  %v857_v22 = vpop.f32.mrb[97].mxu0  ;;  %v1138_v9 = vpop.f32.mrb[97].mxu1  ;;  %v5275_v21 = vld [vmem:[%s9935_s3 + $0x2c] ss:$16 sps:$4 sm:$0xff]  }
 0x1b5   : > { %v858_v2 = vadd.f32 %v857_v22, %v5625_v50  ;;  %v1139_v31 = vadd.f32 %v1138_v9, %v5627_v51  ;;  %2054 = vmatprep.subr.bf16.mxu0 %v6127_v34  ;;  %2196 = vmatprep.subr.bf16.mxu1 %v6129_v62  ;;  %v859_v30 = vpop.f32.mrb[98].mxu0  ;;  %v1140_v1 = vpop.f32.mrb[98].mxu1  ;;  %v5286_v22 = vld [vmem:[%s9935_s3 + $0x94] ss:$16 sps:$4 sm:$0xff]   ;;  %v10445_v9 = vld [vmem:[#allocation34_spill] sm:$0xff] }
 0x1b6   : > { %v1335_v19 = vmax.f32 %v856_v61, 0.0  ;;  %v1337_v10 = vmax.f32 %v1137_v29, 0.0  ;;  %2055 = vmatpush1.bf16.msra.mxu0 %v6123_v63  ;;  %2197 = vmatpush1.bf16.msra.mxu1 %v6125_v20  ;;  %v860_v48 = vpop.f32.mrb[99].mxu0  ;;  %v1141_v49 = vpop.f32.mrb[99].mxu1  ;;  %v10443_v61 = vld [vmem:[#allocation36_spill] sm:$0xff]  ;;  %v10444_v29 = vld [vmem:[#allocation37_spill] sm:$0xff] }
 0x1b7   : > { %v1336_v41 = vmax.f32 %v858_v2, 0.0  ;;  %v1338_v24 = vmax.f32 %v1139_v31, 0.0  ;;  %v10446_v2 = vld [vmem:[#allocation35_spill] sm:$0xff]  ;;  %v10448_v30 = vld [vmem:[#allocation40_spill] sm:$0xff]  ;;  %v10451_v49 = vld [vmem:[#allocation41_spill] sm:$0xff] }
 0x1b8   : > { %v1435_v50 = vpack.c.bf16 %v1335_v19, %v1335_v19  ;;  %v1437_v0 = vpack.c.bf16 %v1337_v10, %v1337_v10  ;;  %v10447_v31 = vld [vmem:[#allocation39_spill] sm:$0xff]  ;;  %v5288_v1 = vld [vmem:[%s9935_s3 + $0x90] ss:$16 sps:$4 sm:$0xff]  }
 0x1b9   : > { %v6139_v51 = vpack.c.bf16 %v1336_v41, %v1336_v41  ;;  %v6141_v42 = vpack.c.bf16 %v1338_v24, %v1338_v24  ;;  %v10449_v19 = vld [vmem:[#allocation38_spill] sm:$0xff]  ;;  %v10450_v10 = vld [vmem:[#allocation43_spill] sm:$0xff] }
 0x1ba   : > { %v6144_v8 = vsel %vm1956_vm4, %v1435_v50, 0  ;;  %v6147_v33 = vsel %vm1956_vm4, %v1437_v0, 0  ;;  %v5289_v48 = vld [vmem:[%s9935_s3 + $0xb4] ss:$16 sps:$4 sm:$0xff]   ;;  %v10452_v41 = vld [vmem:[#allocation42_spill] sm:$0xff]  ;;  %v10455_v0 = vld [vmem:[#allocation44_spill] sm:$0xff] }
 0x1bb   : > { %5063 = vmatprep.subr.msk.bf16.mxu0 %vm1956_vm4, %v6139_v51  ;;  %5068 = vmatprep.subr.msk.bf16.mxu1 %vm1956_vm4, %v6141_v42  ;;  %v10453_v24 = vld [vmem:[#allocation46_spill] sm:$0xff]  ;;  %v10454_v50 = vld [vmem:[#allocation47_spill] sm:$0xff] }
 0x1bc   : > { %2057 = vmatpush1.bf16.msra.mxu0 %v6144_v8  ;;  %2199 = vmatpush1.bf16.msra.mxu1 %v6147_v33 }
 0x1bd   : > { %3470 = vmatprep.subr.bf16.mxu0 %v5641_v14  ;;  %3612 = vmatprep.subr.bf16.mxu1 %v5643_v15  ;;  %v5277_v14 = vld [vmem:[%s9935_s3 + $0x28] ss:$16 sps:$4 sm:$0xff]  }
 0x1be   : > { %v1872_v15 = vld [vmem:[%s9935_s3 + $0x68] sm:$0x11] }
 0x1bf   : > { %2073 = vmatmul.mubr.bf16.vlgmr.msra.gmra.mrb[100].mxu0 %v5272_v23  ;;  %2215 = vmatmul.mubr.bf16.vlgmr.msra.gmra.mrb[100].mxu1 %v5272_v23  ;;  %v10456_v23 = vld [vmem:[#allocation45_spill] sm:$0xff] }
 0x1c0   : > { %3471 = vmatpush1.bf16.msra.mxu0 %v5637_v12  ;;  %3613 = vmatpush1.bf16.msra.mxu1 %v5639_v13  ;;  %v5278_v12 = vld [vmem:[%s9935_s3 + $0x4c] ss:$16 sps:$4 sm:$0xff]   ;;  %v5280_v13 = vld [vmem:[%s9935_s3 + $0x48] ss:$16 sps:$4 sm:$0xff]  }
 0x1c1   : > { %3472 = vmatprep.subr.bf16.mxu0 %v5664_v45  ;;  %3614 = vmatprep.subr.bf16.mxu1 %v5666_v46  ;;  %v5285_v45 = vld [vmem:[%s9935_s3 + $0x74] ss:$16 sps:$4 sm:$0xff]   ;;  %v10415_v46 = vld [vmem:[#allocation8_spill] sm:$0xff] }
 0x1c2   : > { %5065 = vmatprep.mubr.msk.bf16.mxu0 %vm1943_vm3, %v5275_v21  ;;  %5070 = vmatprep.mubr.msk.bf16.mxu1 %vm1943_vm3, %v5275_v21  ;;  %v10457_v21 = vld [vmem:[#allocation50_spill] sm:$0xff] }
 0x1c4   : > { %3473 = vmatpush1.bf16.msra.mxu0 %v5660_v43  ;;  %3615 = vmatpush1.bf16.msra.mxu1 %v5662_v44  ;;  %v5062_v43 = vcombine.high %v1872_v15, %v1872_v15  ;;  %v5061_v44 = vcombine.low %v1872_v15, %v1872_v15  ;;  %v10460_v15 = vld [vmem:[#allocation49_spill] sm:$0xff] }
 0x1c5   : > { %3474 = vmatprep.subr.bf16.mxu0 %v5684_v17  ;;  %3616 = vmatprep.subr.bf16.mxu1 %v5686_v18  ;;  %v10418_v17 = vld [vmem:[#allocation7_spill] sm:$0xff]  ;;  %v10419_v18 = vld [vmem:[#allocation12_spill] sm:$0xff] }
 0x1c7   : > { %2083 = vmatmul.mubr.bf16.gmra.mrb[104].mxu0 %v5277_v14  ;;  %2225 = vmatmul.mubr.bf16.gmra.mrb[104].mxu1 %v5277_v14  ;;  %v10458_v14 = vld [vmem:[#allocation51_spill] sm:$0xff] }
 0x1c8   : > { %3475 = vmatpush1.bf16.msra.mxu0 %v5680_v11  ;;  %3617 = vmatpush1.bf16.msra.mxu1 %v5682_v16  ;;  %v10416_v11 = vld [vmem:[#allocation9_spill] sm:$0xff]  ;;  %v10417_v16 = vld [vmem:[#allocation6_spill] sm:$0xff] }
 0x1c9   : > { %3476 = vmatprep.subr.bf16.mxu0 %v5704_v55  ;;  %3618 = vmatprep.subr.bf16.mxu1 %v5706_v56  ;;  %v10422_v55 = vld [vmem:[#allocation11_spill] sm:$0xff]  ;;  %v10423_v56 = vld [vmem:[#allocation16_spill] sm:$0xff] }
 0x1ca   : > { %5066 = vmatprep.mubr.msk.bf16.mxu0 %vm1943_vm3, %v5278_v12  ;;  %5071 = vmatprep.mubr.msk.bf16.mxu1 %vm1943_vm3, %v5278_v12 }
 0x1cc   : > { %3477 = vmatpush1.bf16.msra.mxu0 %v5700_v53  ;;  %3619 = vmatpush1.bf16.msra.mxu1 %v5702_v54  ;;  %v10420_v53 = vld [vmem:[#allocation13_spill] sm:$0xff]  ;;  %v10421_v54 = vld [vmem:[#allocation10_spill] sm:$0xff] }
 0x1cd   : > { %3478 = vmatprep.subr.bf16.mxu0 %v5724_v27  ;;  %3620 = vmatprep.subr.bf16.mxu1 %v5726_v28  ;;  %v10426_v27 = vld [vmem:[#allocation15_spill] sm:$0xff]  ;;  %v10427_v28 = vld [vmem:[#allocation20_spill] sm:$0xff] }
 0x1cf   : > { %2093 = vmatmul.mubr.bf16.gmra.mrb[108].mxu0 %v5280_v13  ;;  %2235 = vmatmul.mubr.bf16.gmra.mrb[108].mxu1 %v5280_v13  ;;  %v10459_v13 = vld [vmem:[#allocation48_spill] sm:$0xff] }
 0x1d0   : > { %3479 = vmatpush1.bf16.msra.mxu0 %v5720_v25  ;;  %3621 = vmatpush1.bf16.msra.mxu1 %v5722_v26  ;;  %v10424_v25 = vld [vmem:[#allocation17_spill] sm:$0xff]  ;;  %v10425_v26 = vld [vmem:[#allocation14_spill] sm:$0xff] }
 0x1d1   : > { %3480 = vmatprep.subr.bf16.mxu0 %v5744_v5  ;;  %3622 = vmatprep.subr.bf16.mxu1 %v5746_v6  ;;  %v10430_v5 = vld [vmem:[#allocation19_spill] sm:$0xff]  ;;  %v10431_v6 = vld [vmem:[#allocation24_spill] sm:$0xff] }
 0x1d2   : > { %5067 = vmatprep.mubr.msk.bf16.mxu0 %vm1943_vm3, %v5062_v43  ;;  %5072 = vmatprep.mubr.msk.bf16.mxu1 %vm1943_vm3, %v5062_v43  ;;  %v10461_v43 = vld [vmem:[#allocation54_spill] sm:$0xff] }
 0x1d4   : > { %3481 = vmatpush1.bf16.msra.mxu0 %v5740_v3  ;;  %3623 = vmatpush1.bf16.msra.mxu1 %v5742_v4  ;;  %v10428_v3 = vld [vmem:[#allocation21_spill] sm:$0xff]  ;;  %v10429_v4 = vld [vmem:[#allocation18_spill] sm:$0xff] }
 0x1d5   : > { %3482 = vmatprep.subr.bf16.mxu0 %v5764_v59  ;;  %3624 = vmatprep.subr.bf16.mxu1 %v5766_v60  ;;  %v10434_v59 = vld [vmem:[#allocation23_spill] sm:$0xff]  ;;  %v10435_v60 = vld [vmem:[#allocation28_spill] sm:$0xff] }
 0x1d7   : > { %2103 = vmatmul.mubr.bf16.gmra.mrb[112].mxu0 %v5061_v44  ;;  %2245 = vmatmul.mubr.bf16.gmra.mrb[112].mxu1 %v5061_v44  ;;  %v10462_v44 = vld [vmem:[#allocation55_spill] sm:$0xff] }
 0x1d8   : > { %3483 = vmatpush1.bf16.msra.mxu0 %v5760_v57  ;;  %3625 = vmatpush1.bf16.msra.mxu1 %v5762_v58  ;;  %v10432_v57 = vld [vmem:[#allocation25_spill] sm:$0xff]  ;;  %v10433_v58 = vld [vmem:[#allocation22_spill] sm:$0xff] }
 0x1d9   : > { %3484 = vmatprep.subr.bf16.mxu0 %v5784_v39  ;;  %3626 = vmatprep.subr.bf16.mxu1 %v5786_v40  ;;  %v10438_v39 = vld [vmem:[#allocation27_spill] sm:$0xff]  ;;  %v10439_v40 = vld [vmem:[#allocation32_spill] sm:$0xff] }
 0x1da   : > { %3502 = vmatprep.mubr.bf16.mxu0 %v5285_v45  ;;  %3644 = vmatprep.mubr.bf16.mxu1 %v5285_v45 }
 0x1dc   : > { %3485 = vmatpush1.bf16.msra.mxu0 %v5780_v37  ;;  %3627 = vmatpush1.bf16.msra.mxu1 %v5782_v38  ;;  %v10436_v37 = vld [vmem:[#allocation29_spill] sm:$0xff]  ;;  %v10437_v38 = vld [vmem:[#allocation26_spill] sm:$0xff] }
 0x1dd   : > { %3486 = vmatprep.subr.bf16.mxu0 %v5804_v47  ;;  %3628 = vmatprep.subr.bf16.mxu1 %v5806_v52  ;;  %v10441_v47 = vld [vmem:[#allocation30_spill] sm:$0xff]  ;;  %v10442_v52 = vld [vmem:[#allocation31_spill] sm:$0xff] }
 0x1e0   : > { %3487 = vmatpush1.bf16.msra.mxu0 %v5800_v35  ;;  %3629 = vmatpush1.bf16.msra.mxu1 %v5802_v36  ;;  %v10440_v35 = vld [vmem:[#allocation33_spill] sm:$0xff]  ;;  %v5283_v36 = vld [vmem:[%s9935_s3 + $0x70] ss:$16 sps:$4 sm:$0xff]  }
 0x1e1   : > { %3488 = vmatprep.subr.bf16.mxu0 %v10415_v46  ;;  %3630 = vmatprep.subr.bf16.mxu1 %v10416_v11  ;;  %v10463_v46 = vld [vmem:[#allocation52_spill] sm:$0xff]  ;;  %v10464_v11 = vld [vmem:[#allocation53_spill] sm:$0xff] }
 0x1e4   : > { %3489 = vmatpush1.bf16.msra.mxu0 %v10417_v16  ;;  %3631 = vmatpush1.bf16.msra.mxu1 %v10418_v17  ;;  %v10465_v16 = vld [vmem:[#allocation58_spill] sm:$0xff]  ;;  %v10466_v17 = vld [vmem:[#allocation59_spill] sm:$0xff] }
 0x1e5   : > { %3490 = vmatprep.subr.bf16.mxu0 %v10419_v18  ;;  %3632 = vmatprep.subr.bf16.mxu1 %v10420_v53  ;;  %v5296_v18 = vld [vmem:[%s9935_s3 + $0x7c] ss:$16 sps:$4 sm:$0xff]  }
 0x1e6   : > { %v10467_v53 = vld [vmem:[#allocation56_spill] sm:$0xff] }
 0x1e8   : > { %3491 = vmatpush1.bf16.msra.mxu0 %v10421_v54  ;;  %3633 = vmatpush1.bf16.msra.mxu1 %v10422_v55  ;;  %v10468_v54 = vld [vmem:[#allocation57_spill] sm:$0xff]  ;;  %v6334_v55 = vld [vmem:[%s9936_s4 + $0x70] sm:$0xff] }
 0x1e9   : > { %3492 = vmatprep.subr.bf16.mxu0 %v10423_v56  ;;  %3634 = vmatprep.subr.bf16.mxu1 %v10424_v25  ;;  %10469 = vst [vmem:[#allocation8_spill] sm:$0xff] %v6334_v55  ;;  %v6339_v56 = vld [vmem:[%s9936_s4 + $0x78] sm:$0xff]  ;;  %v6344_v25 = vld [vmem:[%s9936_s4] sm:$0xff] }
 0x1ea   : > { %10470 = vst [vmem:[#allocation9_spill] sm:$0xff] %v6339_v56  ;;  %10471 = vst [vmem:[#allocation6_spill] sm:$0xff] %v6344_v25 }
 0x1ec   : > { %3493 = vmatpush1.bf16.msra.mxu0 %v10425_v26  ;;  %3635 = vmatpush1.bf16.msra.mxu1 %v10426_v27  ;;  %v6349_v26 = vld [vmem:[%s9936_s4 + $0x8] sm:$0xff]  ;;  %v6354_v27 = vld [vmem:[%s9936_s4 + $0x150] sm:$0xff] }
 0x1ed   : > { %3494 = vmatprep.subr.bf16.mxu0 %v10427_v28  ;;  %3636 = vmatprep.subr.bf16.mxu1 %v10428_v3  ;;  %10472 = vst [vmem:[#allocation7_spill] sm:$0xff] %v6349_v26  ;;  %10473 = vst [vmem:[#allocation12_spill] sm:$0xff] %v6354_v27  ;;  %v6359_v28 = vld [vmem:[%s9936_s4 + $0x158] sm:$0xff] }
 0x1ee   : > { %10474 = vst [vmem:[#allocation13_spill] sm:$0xff] %v6359_v28  ;;  %v6737_v3 = vld [vmem:[%s9936_s4 + $0x418] sm:$0xff] }
 0x1ef   : > { %10522 = vst [vmem:[#allocation57_spill] sm:$0xff] %v6737_v3  ;;  %v6872_v3 = vld [vmem:[%s9936_s4 + $0x420] sm:$0xff] }
 0x1f0   : > { %3495 = vmatpush1.bf16.msra.mxu0 %v10429_v4  ;;  %3637 = vmatpush1.bf16.msra.mxu1 %v10430_v5  ;;  %v6788_v5 = vld [vmem:[%s9936_s4 + $0x1f0] sm:$0xff]  ;;  %v6858_v4 = vld [vmem:[%s9936_s4 + $0x340] sm:$0xff]  ;;  %10541 = vst [vmem:[#allocation78_spill] sm:$0xff] %v6872_v3 }
 0x1f1   : > { %3496 = vmatprep.subr.bf16.mxu0 %v10431_v6  ;;  %3638 = vmatprep.subr.bf16.mxu1 %v10432_v57  ;;  %v6368_v57 = vld [vmem:[%s9936_s4 + $0xe0] sm:$0xff]  ;;  %v6723_v6 = vld [vmem:[%s9936_s4 + $0x3a8] sm:$0xff]  ;;  %10529 = vst [vmem:[#allocation66_spill] sm:$0xff] %v6788_v5  ;;  %10539 = vst [vmem:[#allocation76_spill] sm:$0xff] %v6858_v4 }
 0x1f2   : > { %10475 = vst [vmem:[#allocation10_spill] sm:$0xff] %v6368_v57  ;;  %10520 = vst [vmem:[#allocation59_spill] sm:$0xff] %v6723_v6  ;;  %v6793_v6 = vld [vmem:[%s9936_s4 + $0x1f8] sm:$0xff]  ;;  %v6998_v5 = vld [vmem:[%s9936_s4 + $0x2e0] sm:$0xff] }
 0x1f3   : > { %10530 = vst [vmem:[#allocation67_spill] sm:$0xff] %v6793_v6  ;;  %v6849_v6 = vld [vmem:[%s9936_s4 + $0x3b8] sm:$0xff]  ;;  %10559 = vst [vmem:[#allocation96_spill] sm:$0xff] %v6998_v5  ;;  %v7026_v3 = vld [vmem:[%s9936_s4 + $0x50] sm:$0xff] }
 0x1f4   : > { %3497 = vmatpush1.bf16.msra.mxu0 %v10433_v58  ;;  %3639 = vmatpush1.bf16.msra.mxu1 %v10434_v59  ;;  %v6373_v58 = vld [vmem:[%s9936_s4 + $0xe8] sm:$0xff]  ;;  %v6709_v59 = vld [vmem:[%s9936_s4 + $0x338] sm:$0xff]  ;;  %10538 = vst [vmem:[#allocation75_spill] sm:$0xff] %v6849_v6  ;;  %10563 = vst [vmem:[#allocation100_spill] sm:$0xff] %v7026_v3 }
 0x1f5   : > { %3498 = vmatprep.subr.bf16.mxu0 %v10435_v60  ;;  %3640 = vmatprep.subr.bf16.mxu1 %v10436_v37  ;;  %v6695_v37 = vld [vmem:[%s9936_s4 + $0x2c8] sm:$0xff]  ;;  %10518 = vst [vmem:[#allocation53_spill] sm:$0xff] %v6709_v59  ;;  %v6760_v60 = vld [vmem:[%s9936_s4 + $0x110] sm:$0xff]  ;;  %v6765_v59 = vld [vmem:[%s9936_s4 + $0x118] sm:$0xff] }
 0x1f6   : > { %10516 = vst [vmem:[#allocation55_spill] sm:$0xff] %v6695_v37  ;;  %v6751_v37 = vld [vmem:[%s9936_s4 + $0x38] sm:$0xff]  ;;  %10525 = vst [vmem:[#allocation62_spill] sm:$0xff] %v6760_v60  ;;  %v7059_v5 = vld [vmem:[%s9936_s4 + $0xc8] sm:$0xff] }
 0x1f7   : > { %10524 = vst [vmem:[#allocation61_spill] sm:$0xff] %v6751_v37  ;;  %10526 = vst [vmem:[#allocation63_spill] sm:$0xff] %v6765_v59  ;;  %v6821_v60 = vld [vmem:[%s9936_s4 + $0x2d8] sm:$0xff]  ;;  %v6956_v37 = vld [vmem:[%s9936_s4 + $0x120] sm:$0xff] }
 0x1f8   : > { %3499 = vmatpush1.bf16.msra.mxu0 %v10437_v38  ;;  %3641 = vmatpush1.bf16.msra.mxu1 %v10438_v39  ;;  %v6382_v39 = vld [vmem:[%s9936_s4 + $0x230] sm:$0xff]  ;;  %10534 = vst [vmem:[#allocation71_spill] sm:$0xff] %v6821_v60  ;;  %v6877_v60 = vld [vmem:[%s9936_s4 + $0x428] sm:$0xff]  ;;  %v6905_v6 = vld [vmem:[%s9936_s4 + $0x198] sm:$0xff] }
 0x1f9   : > { %3500 = vmatprep.subr.bf16.mxu0 %v10439_v40  ;;  %3642 = vmatprep.subr.bf16.mxu1 %v10440_v35  ;;  %10476 = vst [vmem:[#allocation11_spill] sm:$0xff] %v6382_v39  ;;  %v6387_v40 = vld [vmem:[%s9936_s4 + $0x238] sm:$0xff]  ;;  %v6746_v38 = vld [vmem:[%s9936_s4 + $0x30] sm:$0xff]  ;;  %10542 = vst [vmem:[#allocation79_spill] sm:$0xff] %v6877_v60 }
 0x1fa   : > { %10477 = vst [vmem:[#allocation16_spill] sm:$0xff] %v6387_v40  ;;  %v6681_v35 = vld [vmem:[%s9936_s4 + $0x258] sm:$0xff]  ;;  %10523 = vst [vmem:[#allocation60_spill] sm:$0xff] %v6746_v38  ;;  %v6942_v38 = vld [vmem:[%s9936_s4 + $0x350] sm:$0xff] }
 0x1fb   : > { %10514 = vst [vmem:[#allocation49_spill] sm:$0xff] %v6681_v35  ;;  %v6844_v35 = vld [vmem:[%s9936_s4 + $0x3b0] sm:$0xff]  ;;  %10546 = vst [vmem:[#allocation83_spill] sm:$0xff] %v6905_v6  ;;  %v6919_v4 = vld [vmem:[%s9936_s4 + $0x278] sm:$0xff] }
 0x1fc   : > { %3501 = vmatpush1.bf16.msra.mxu0 %v10441_v47  ;;  %3643 = vmatpush1.bf16.msra.mxu1 %v10442_v52  ;;  %v6662_v47 = vld [vmem:[%s9936_s4 + $0x1e0] sm:$0xff]  ;;  %v6667_v52 = vld [vmem:[%s9936_s4 + $0x1e8] sm:$0xff]  ;;  %10537 = vst [vmem:[#allocation74_spill] sm:$0xff] %v6844_v35  ;;  %10548 = vst [vmem:[#allocation85_spill] sm:$0xff] %v6919_v4 }
 0x1fd   : > { %3541 = vmatprep.subr.bf16.mxu0 %v10443_v61  ;;  %3683 = vmatprep.subr.bf16.mxu1 %v10444_v29  ;;  %v6396_v61 = vld [vmem:[%s9936_s4 + $0x1c0] sm:$0xff]  ;;  %v6401_v29 = vld [vmem:[%s9936_s4 + $0x1c8] sm:$0xff]  ;;  %10511 = vst [vmem:[#allocation50_spill] sm:$0xff] %v6662_v47  ;;  %10512 = vst [vmem:[#allocation51_spill] sm:$0xff] %v6667_v52 }
 0x1fe   : > { %10478 = vst [vmem:[#allocation17_spill] sm:$0xff] %v6396_v61  ;;  %10479 = vst [vmem:[#allocation14_spill] sm:$0xff] %v6401_v29  ;;  %v6802_v47 = vld [vmem:[%s9936_s4 + $0x180] sm:$0xff]  ;;  %v6816_v52 = vld [vmem:[%s9936_s4 + $0x2d0] sm:$0xff] }
 0x1ff   : > { %3503 = vmatmul.mubr.bf16.vlgmr.msra.gmra.mrb[116].mxu0 %v5283_v36  ;;  %3645 = vmatmul.mubr.bf16.vlgmr.msra.gmra.mrb[116].mxu1 %v5283_v36  ;;  %v6732_v36 = vld [vmem:[%s9936_s4 + $0x410] sm:$0xff]  ;;  %10531 = vst [vmem:[#allocation68_spill] sm:$0xff] %v6802_v47  ;;  %10533 = vst [vmem:[#allocation70_spill] sm:$0xff] %v6816_v52  ;;  %v6928_v47 = vld [vmem:[%s9936_s4 + $0x40] sm:$0xff] }
 0x200   : > { %3542 = vmatpush1.bf16.msra.mxu0 %v10445_v9  ;;  %3684 = vmatpush1.bf16.msra.mxu1 %v10446_v2  ;;  %v6639_v2 = vld [vmem:[%s9936_s4 + $0x108] sm:$0xff]  ;;  %v6690_v9 = vld [vmem:[%s9936_s4 + $0x2c0] sm:$0xff]  ;;  %10521 = vst [vmem:[#allocation56_spill] sm:$0xff] %v6732_v36  ;;  %v6886_v36 = vld [vmem:[%s9936_s4 + $0xb0] sm:$0xff] }
 0x201   : > { %3543 = vmatprep.subr.bf16.mxu0 %v10447_v31  ;;  %3685 = vmatprep.subr.bf16.mxu1 %v10448_v30  ;;  %v6410_v30 = vld [vmem:[%s9936_s4 + $0x310] sm:$0xff]  ;;  %v6630_v31 = vld [vmem:[%s9936_s4 + $0x100] sm:$0xff]  ;;  %10508 = vst [vmem:[#allocation47_spill] sm:$0xff] %v6639_v2  ;;  %10515 = vst [vmem:[#allocation54_spill] sm:$0xff] %v6690_v9 }
 0x202   : > { %3512 = vmatprep.mubr.bf16.mxu0 %v5286_v22  ;;  %3654 = vmatprep.mubr.bf16.mxu1 %v5286_v22  ;;  %10480 = vst [vmem:[#allocation15_spill] sm:$0xff] %v6410_v30  ;;  %10507 = vst [vmem:[#allocation46_spill] sm:$0xff] %v6630_v31  ;;  %v6676_v22 = vld [vmem:[%s9936_s4 + $0x250] sm:$0xff]  ;;  %v6770_v9 = vld [vmem:[%s9936_s4 + $0xa0] sm:$0xff] }
 0x203   : > { %10513 = vst [vmem:[#allocation48_spill] sm:$0xff] %v6676_v22  ;;  %10527 = vst [vmem:[#allocation64_spill] sm:$0xff] %v6770_v9  ;;  %v6830_v22 = vld [vmem:[%s9936_s4 + $0x260] sm:$0xff]  ;;  %v6900_v9 = vld [vmem:[%s9936_s4 + $0x190] sm:$0xff] }
 0x204   : > { %3544 = vmatpush1.bf16.msra.mxu0 %v5992_v32  ;;  %3686 = vmatpush1.bf16.msra.mxu1 %v10449_v19  ;;  %v5291_v32 = vld [vmem:[%s9935_s3 + $0xb0] ss:$16 sps:$4 sm:$0xff]   ;;  %v6653_v19 = vld [vmem:[%s9936_s4 + $0x178] sm:$0xff]  ;;  %10535 = vst [vmem:[#allocation72_spill] sm:$0xff] %v6830_v22  ;;  %10543 = vst [vmem:[#allocation80_spill] sm:$0xff] %v6886_v36 }
 0x205   : > { %3545 = vmatprep.subr.bf16.mxu0 %v6022_v7  ;;  %3687 = vmatprep.subr.bf16.mxu1 %v10450_v10  ;;  %v5085_v7 = vld [vmem:[%s9935_s3 + $0xd0] sm:$0x11]  ;;  %v6625_v10 = vld [vmem:[%s9936_s4 + $0x98] sm:$0xff]  ;;  %10510 = vst [vmem:[#allocation45_spill] sm:$0xff] %v6653_v19  ;;  %10545 = vst [vmem:[#allocation82_spill] sm:$0xff] %v6900_v9 }
 0x206   : > { %v5100_v12 = vcombine.high %v5085_v7, %v5085_v7  ;;  %v5099_v45 = vcombine.low %v5085_v7, %v5085_v7  ;;  %v6583_v7 = vld [vmem:[%s9936_s4 + $0x328] sm:$0xff]  ;;  %10506 = vst [vmem:[#allocation42_spill] sm:$0xff] %v6625_v10  ;;  %v6910_v22 = vld [vmem:[%s9936_s4 + $0x270] sm:$0xff]  ;;  %10549 = vst [vmem:[#allocation86_spill] sm:$0xff] %v6928_v47  ;;  %v10599_v10 = vunpack.c.l.bf16 %v6359_v28 }
 0x207   : > { %3513 = vmatmul.mubr.bf16.gmra.mrb[120].mxu0 %v5288_v1  ;;  %3655 = vmatmul.mubr.bf16.gmra.mrb[120].mxu1 %v5288_v1  ;;  %v6415_v1 = vld [vmem:[%s9936_s4 + $0x318] sm:$0xff]  ;;  %10500 = vst [vmem:[#allocation35_spill] sm:$0xff] %v6583_v7  ;;  %10547 = vst [vmem:[#allocation84_spill] sm:$0xff] %v6910_v22  ;;  %v6961_v9 = vld [vmem:[%s9936_s4 + $0x128] sm:$0xff] }
 0x208   : > { %3546 = vmatpush1.bf16.msra.mxu0 %v10451_v49  ;;  %3688 = vmatpush1.bf16.msra.mxu1 %v10452_v41  ;;  %10481 = vst [vmem:[#allocation20_spill] sm:$0xff] %v6415_v1  ;;  %v6424_v41 = vld [vmem:[%s9936_s4 + $0x2a0] sm:$0xff]  ;;  %v6597_v49 = vld [vmem:[%s9936_s4 + $0x408] sm:$0xff]  ;;  %10551 = vst [vmem:[#allocation88_spill] sm:$0xff] %v6942_v38 }
 0x209   : > { %3547 = vmatprep.subr.bf16.mxu0 %v10453_v24  ;;  %3689 = vmatprep.subr.bf16.mxu1 %v10454_v50  ;;  %10482 = vst [vmem:[#allocation21_spill] sm:$0xff] %v6424_v41  ;;  %v6429_v24 = vld [vmem:[%s9936_s4 + $0x2a8] sm:$0xff]  ;;  %10502 = vst [vmem:[#allocation40_spill] sm:$0xff] %v6597_v49  ;;  %v6704_v50 = vld [vmem:[%s9936_s4 + $0x330] sm:$0xff] }
 0x20a   : > { %3522 = vmatprep.mubr.bf16.mxu0 %v5289_v48  ;;  %3664 = vmatprep.mubr.bf16.mxu1 %v5289_v48  ;;  %10483 = vst [vmem:[#allocation18_spill] sm:$0xff] %v6429_v24  ;;  %v6611_v48 = vld [vmem:[%s9936_s4 + $0x28] sm:$0xff]  ;;  %10517 = vst [vmem:[#allocation52_spill] sm:$0xff] %v6704_v50  ;;  %v6947_v35 = vld [vmem:[%s9936_s4 + $0x358] sm:$0xff] }
 0x20b   : > { %10504 = vst [vmem:[#allocation43_spill] sm:$0xff] %v6611_v48  ;;  %v6807_v50 = vld [vmem:[%s9936_s4 + $0x188] sm:$0xff]  ;;  %10552 = vst [vmem:[#allocation89_spill] sm:$0xff] %v6947_v35  ;;  %v6970_v59 = vld [vmem:[%s9936_s4 + $0x430] sm:$0xff] }
 0x20c   : > { %3548 = vmatpush1.bf16.msra.mxu0 %v10455_v0  ;;  %3690 = vmatpush1.bf16.msra.mxu1 %v10456_v23  ;;  %v6438_v23 = vld [vmem:[%s9936_s4 + $0x3f0] sm:$0xff]  ;;  %v6569_v0 = vld [vmem:[%s9936_s4 + $0x248] sm:$0xff]  ;;  %10532 = vst [vmem:[#allocation69_spill] sm:$0xff] %v6807_v50  ;;  %10553 = vst [vmem:[#allocation90_spill] sm:$0xff] %v6956_v37 }
 0x20d   : > { %3549 = vmatprep.subr.bf16.mxu0 %v10457_v21  ;;  %3691 = vmatprep.subr.bf16.mxu1 %v10458_v14  ;;  %10484 = vst [vmem:[#allocation19_spill] sm:$0xff] %v6438_v23  ;;  %v6443_v21 = vld [vmem:[%s9936_s4 + $0x3f8] sm:$0xff]  ;;  %10499 = vst [vmem:[#allocation34_spill] sm:$0xff] %v6569_v0  ;;  %v6718_v14 = vld [vmem:[%s9936_s4 + $0x3a0] sm:$0xff] }
 0x20e   : > { %10485 = vst [vmem:[#allocation24_spill] sm:$0xff] %v6443_v21  ;;  %10519 = vst [vmem:[#allocation58_spill] sm:$0xff] %v6718_v14  ;;  %v6779_v14 = vld [vmem:[%s9936_s4 + $0xa8] sm:$0xff]  ;;  %v6975_v4 = vld [vmem:[%s9936_s4 + $0x438] sm:$0xff] }
 0x20f   : > { %3523 = vmatmul.mubr.bf16.gmra.mrb[124].mxu0 %v5291_v32  ;;  %3665 = vmatmul.mubr.bf16.gmra.mrb[124].mxu1 %v5291_v32  ;;  %v6648_v32 = vld [vmem:[%s9936_s4 + $0x170] sm:$0xff]  ;;  %10528 = vst [vmem:[#allocation65_spill] sm:$0xff] %v6779_v14  ;;  %v6835_v14 = vld [vmem:[%s9936_s4 + $0x268] sm:$0xff]  ;;  %10554 = vst [vmem:[#allocation91_spill] sm:$0xff] %v6961_v9 }
 0x210   : > { %3550 = vmatpush1.bf16.msra.mxu0 %v10459_v13  ;;  %3692 = vmatpush1.bf16.msra.mxu1 %v10460_v15  ;;  %v6555_v13 = vld [vmem:[%s9936_s4 + $0x398] sm:$0xff]  ;;  %v6606_v15 = vld [vmem:[%s9936_s4 + $0x20] sm:$0xff]  ;;  %10509 = vst [vmem:[#allocation44_spill] sm:$0xff] %v6648_v32  ;;  %10536 = vst [vmem:[#allocation73_spill] sm:$0xff] %v6835_v14 }
 0x211   : > { %3551 = vmatprep.subr.bf16.mxu0 %v10461_v43  ;;  %3693 = vmatprep.subr.bf16.mxu1 %v10462_v44  ;;  %v6452_v43 = vld [vmem:[%s9936_s4 + $0x380] sm:$0xff]  ;;  %v6457_v44 = vld [vmem:[%s9936_s4 + $0x388] sm:$0xff]  ;;  %10497 = vst [vmem:[#allocation36_spill] sm:$0xff] %v6555_v13  ;;  %10503 = vst [vmem:[#allocation38_spill] sm:$0xff] %v6606_v15 }
 0x212   : > { %3532 = vmatprep.mubr.bf16.mxu0 %v5100_v12  ;;  %3674 = vmatprep.mubr.bf16.mxu1 %v5100_v12  ;;  %v6620_v12 = vld [vmem:[%s9936_s4 + $0x90] sm:$0xff]  ;;  %v6863_v50 = vld [vmem:[%s9936_s4 + $0x348] sm:$0xff]  ;;  %v6891_v14 = vld [vmem:[%s9936_s4 + $0xb8] sm:$0xff]  ;;  %10555 = vst [vmem:[#allocation92_spill] sm:$0xff] %v6970_v59 }
 0x213   : > { %10505 = vst [vmem:[#allocation41_spill] sm:$0xff] %v6620_v12  ;;  %10540 = vst [vmem:[#allocation77_spill] sm:$0xff] %v6863_v50  ;;  %v6933_v50 = vld [vmem:[%s9936_s4 + $0x48] sm:$0xff]  ;;  %v6984_v52 = vld [vmem:[%s9936_s4 + $0x200] sm:$0xff] }
 0x214   : > { %3552 = vmatpush1.bf16.msra.mxu0 %v10463_v46  ;;  %3694 = vmatpush1.bf16.msra.mxu1 %v10464_v11  ;;  %v6527_v11 = vld [vmem:[%s9936_s4 + $0x2b8] sm:$0xff]  ;;  %v6592_v46 = vld [vmem:[%s9936_s4 + $0x400] sm:$0xff]  ;;  %10544 = vst [vmem:[#allocation81_spill] sm:$0xff] %v6891_v14  ;;  %10550 = vst [vmem:[#allocation87_spill] sm:$0xff] %v6933_v50 }
 0x215   : > { %3553 = vmatprep.subr.bf16.mxu0 %v10465_v16  ;;  %3695 = vmatprep.subr.bf16.mxu1 %v10466_v17  ;;  %v6466_v17 = vld [vmem:[%s9936_s4 + $0xf0] sm:$0xff]  ;;  %v6513_v16 = vld [vmem:[%s9936_s4 + $0x88] sm:$0xff]  ;;  %10495 = vst [vmem:[#allocation30_spill] sm:$0xff] %v6527_v11  ;;  %10501 = vst [vmem:[#allocation39_spill] sm:$0xff] %v6592_v46  ;;  %v10600_v46 = vunpack.c.l.bf16 %v6368_v57 }
 0x216   : > { %10486 = vst [vmem:[#allocation25_spill] sm:$0xff] %v6466_v17  ;;  %10493 = vst [vmem:[#allocation32_spill] sm:$0xff] %v6513_v16  ;;  %v6989_v50 = vld [vmem:[%s9936_s4 + $0x208] sm:$0xff]  ;;  %v7012_v60 = vld [vmem:[%s9936_s4 + $0x3c0] sm:$0xff] }
 0x217   : > { %3533 = vmatmul.mubr.bf16.gmra.mrb[128].mxu0 %v5099_v45  ;;  %3675 = vmatmul.mubr.bf16.gmra.mrb[128].mxu1 %v5099_v45  ;;  %v6541_v45 = vld [vmem:[%s9936_s4 + $0x168] sm:$0xff]  ;;  %10556 = vst [vmem:[#allocation93_spill] sm:$0xff] %v6975_v4  ;;  %10557 = vst [vmem:[#allocation94_spill] sm:$0xff] %v6984_v52  ;;  %v7031_v4 = vld [vmem:[%s9936_s4 + $0x58] sm:$0xff] }
 0x218   : > { %3554 = vmatpush1.bf16.msra.mxu0 %v10467_v53  ;;  %3696 = vmatpush1.bf16.msra.mxu1 %v10468_v54  ;;  %v6564_v54 = vld [vmem:[%s9936_s4 + $0x240] sm:$0xff]  ;;  %10558 = vst [vmem:[#allocation95_spill] sm:$0xff] %v6989_v50  ;;  %v7003_v35 = vld [vmem:[%s9936_s4 + $0x2e8] sm:$0xff]  ;;  %10561 = vst [vmem:[#allocation98_spill] sm:$0xff] %v7012_v60 }
 0x219   : > { %3555 = vmatprep.subr.bf16.mxu0 %v6127_v34  ;;  %3697 = vmatprep.subr.bf16.mxu1 %v6129_v62  ;;  %v5294_v34 = vld [vmem:[%s9935_s3 + $0x78] ss:$16 sps:$4 sm:$0xff]   ;;  %v5297_v62 = vld [vmem:[%s9935_s3 + $0x9c] ss:$16 sps:$4 sm:$0xff]   ;;  %10498 = vst [vmem:[#allocation37_spill] sm:$0xff] %v6564_v54  ;;  %v6578_v53 = vld [vmem:[%s9936_s4 + $0x320] sm:$0xff] }
 0x21a   : > { %5104 = vmatprep.mubr.msk.bf16.mxu0 %vm1943_vm3, %v5296_v18  ;;  %5109 = vmatprep.mubr.msk.bf16.mxu1 %vm1943_vm3, %v5296_v18  ;;  %v6471_v18 = vld [vmem:[%s9936_s4 + $0xf8] sm:$0xff]  ;;  %10560 = vst [vmem:[#allocation97_spill] sm:$0xff] %v7003_v35  ;;  %v7017_v9 = vld [vmem:[%s9936_s4 + $0x3c8] sm:$0xff]  ;;  %10564 = vst [vmem:[#allocation101_spill] sm:$0xff] %v7031_v4  ;;  %v10591_v4 = vunpack.c.l.bf16 %v6344_v25 }
 0x21b   : > { %10487 = vst [vmem:[#allocation22_spill] sm:$0xff] %v6471_v18  ;;  %10562 = vst [vmem:[#allocation99_spill] sm:$0xff] %v7017_v9  ;;  %v7040_v22 = vld [vmem:[%s9936_s4 + $0x130] sm:$0xff]  ;;  %v7045_v50 = vld [vmem:[%s9936_s4 + $0x138] sm:$0xff] }
 0x21c   : > { %3556 = vmatpush1.bf16.msra.mxu0 %v6123_v63  ;;  %3698 = vmatpush1.bf16.msra.mxu1 %v6125_v20  ;;  %v5299_v63 = vld [vmem:[%s9935_s3 + $0x98] ss:$16 sps:$4 sm:$0xff]   ;;  %v5300_v20 = vld [vmem:[%s9935_s3 + $0xbc] ss:$16 sps:$4 sm:$0xff]   ;;  %10565 = vst [vmem:[#allocation102_spill] sm:$0xff] %v7040_v22  ;;  %10566 = vst [vmem:[#allocation103_spill] sm:$0xff] %v7045_v50 }
 0x21d   : > { %5103 = vmatprep.subr.msk.bf16.mxu0 %vm1956_vm4, %v6139_v51  ;;  %5108 = vmatprep.subr.msk.bf16.mxu1 %vm1956_vm4, %v6141_v42  ;;  %v5086_v51 = vld [vmem:[%s9935_s3 + $0xd8] sm:$0x11]  ;;  %v7050_v59 = vld [vmem:[%s9936_s4 + $0xc0] sm:$0xff]  ;;  %10568 = vst [vmem:[#allocation105_spill] sm:$0xff] %v7059_v5  ;;  %v7068_v38 = vld [vmem:[%s9936_s4 + $0x210] sm:$0xff]  ;;  %vm3369_vm4 = vcmask 394240  }
 0x21e   : > { %v5302_v42 = vld [vmem:[%s9935_s3 + $0xb8] ss:$16 sps:$4 sm:$0xff]   ;;  %10567 = vst [vmem:[#allocation104_spill] sm:$0xff] %v7050_v59  ;;  %10569 = vst [vmem:[#allocation106_spill] sm:$0xff] %v7068_v38  ;;  %v7082_v36 = vld [vmem:[%s9936_s4 + $0x1a0] sm:$0xff]  ;;  %v10590_v38 = vunpack.c.l.bf16 %v6339_v56 }
 0x21f   : > { %v7073_v35 = vld [vmem:[%s9936_s4 + $0x218] sm:$0xff]  ;;  %10571 = vst [vmem:[#allocation108_spill] sm:$0xff] %v7082_v36  ;;  %v7087_v52 = vld [vmem:[%s9936_s4 + $0x1a8] sm:$0xff]  ;;  %v7096_v14 = vld [vmem:[%s9936_s4 + $0x2f0] sm:$0xff] }
 0x220   : > { %3558 = vmatpush1.bf16.msra.mxu0 %v6144_v8  ;;  %3700 = vmatpush1.bf16.msra.mxu1 %v6147_v33  ;;  %v5102_v8 = vcombine.high %v5086_v51, %v5086_v51  ;;  %v5101_v33 = vcombine.low %v5086_v51, %v5086_v51  ;;  %v6550_v51 = vld [vmem:[%s9936_s4 + $0x390] sm:$0xff]  ;;  %10570 = vst [vmem:[#allocation107_spill] sm:$0xff] %v7073_v35  ;;  %10572 = vst [vmem:[#allocation109_spill] sm:$0xff] %v7087_v52  ;;  %v7101_v22 = vld [vmem:[%s9936_s4 + $0x2f8] sm:$0xff] }
 0x221   : > { %10496 = vst [vmem:[#allocation31_spill] sm:$0xff] %v6550_v51  ;;  %10573 = vst [vmem:[#allocation110_spill] sm:$0xff] %v7096_v14  ;;  %v7110_v6 = vld [vmem:[%s9936_s4 + $0x280] sm:$0xff]  ;;  %v7115_v5 = vld [vmem:[%s9936_s4 + $0x288] sm:$0xff]  ;;  %v10589_v14 = vunpack.c.l.bf16 %v6334_v55 }
 0x222   : > { %10574 = vst [vmem:[#allocation111_spill] sm:$0xff] %v7101_v22  ;;  %10575 = vst [vmem:[#allocation112_spill] sm:$0xff] %v7110_v6  ;;  %v7124_v37 = vld [vmem:[%s9936_s4 + $0x3d0] sm:$0xff]  ;;  %v7129_v35 = vld [vmem:[%s9936_s4 + $0x3d8] sm:$0xff] }
 0x223   : > { %3574 = vmatmul.mubr.bf16.vlgmr.msra.gmra.mrb[116].mxu0 %v5294_v34  ;;  %3716 = vmatmul.mubr.bf16.vlgmr.msra.gmra.mrb[116].mxu1 %v5294_v34  ;;  %v6499_v34 = vld [vmem:[%s9936_s4 + $0x1d8] sm:$0xff]  ;;  %10576 = vst [vmem:[#allocation113_spill] sm:$0xff] %v7115_v5  ;;  %10577 = vst [vmem:[#allocation114_spill] sm:$0xff] %v7124_v37  ;;  %v7138_v47 = vld [vmem:[%s9936_s4 + $0x360] sm:$0xff] }
 0x224   : > { %5105 = vmatprep.mubr.msk.bf16.mxu0 %vm1943_vm3, %v5297_v62  ;;  %5110 = vmatprep.mubr.msk.bf16.mxu1 %vm1943_vm3, %v5297_v62  ;;  %v6494_v62 = vld [vmem:[%s9936_s4 + $0x1d0] sm:$0xff]  ;;  %10491 = vst [vmem:[#allocation26_spill] sm:$0xff] %v6499_v34  ;;  %10578 = vst [vmem:[#allocation115_spill] sm:$0xff] %v7129_v35  ;;  %v7143_v52 = vld [vmem:[%s9936_s4 + $0x368] sm:$0xff] }
 0x225   : > { %10490 = vst [vmem:[#allocation29_spill] sm:$0xff] %v6494_v62  ;;  %10579 = vst [vmem:[#allocation116_spill] sm:$0xff] %v7138_v47  ;;  %v7152_v9 = vld [vmem:[%s9936_s4 + $0x440] sm:$0xff]  ;;  %v7157_v22 = vld [vmem:[%s9936_s4 + $0x448] sm:$0xff] }
 0x226   : > { %10580 = vst [vmem:[#allocation117_spill] sm:$0xff] %v7143_v52  ;;  %10581 = vst [vmem:[#allocation118_spill] sm:$0xff] %v7152_v9  ;;  %v7166_v60 = vld [vmem:[%s9936_s4 + $0xd0] sm:$0x11]  ;;  %v7171_v5 = vld [vmem:[%s9936_s4 + $0xd8] sm:$0x11] }
 0x227   : > { %10582 = vst [vmem:[#allocation119_spill] sm:$0xff] %v7157_v22  ;;  %10583 = vst [vmem:[#allocation120_spill] sm:$0xff] %v7166_v60  ;;  %v7180_v59 = vld [vmem:[%s9936_s4 + $0x1b0] sm:$0x11]  ;;  %v7185_v35 = vld [vmem:[%s9936_s4 + $0x1b8] sm:$0x11] }
 0x228   : > { %10584 = vst [vmem:[#allocation121_spill] sm:$0xff] %v7171_v5  ;;  %10585 = vst [vmem:[#allocation122_spill] sm:$0xff] %v7180_v59  ;;  %v7190_v6 = vld [vmem:[%s9936_s4 + $0x290] sm:$0x11]  ;;  %v7199_v47 = vld [vmem:[%s9936_s4 + $0x298] sm:$0x11] }
 0x229   : > { %10586 = vst [vmem:[#allocation123_spill] sm:$0xff] %v7185_v35  ;;  %10587 = vst [vmem:[#allocation124_spill] sm:$0xff] %v7190_v6  ;;  %v7208_v36 = vld [vmem:[%s9936_s4 + $0x60] sm:$0x11] }
 0x22a   : > { %10588 = vst [vmem:[#allocation125_spill] sm:$0xff] %v7199_v47  ;;  %v10592_v47 = vunpack.c.h.bf16 %v6334_v55  ;;  %v10596_v55 = vunpack.c.h.bf16 %v6349_v26 }
 0x22b   : > { %3584 = vmatmul.mubr.bf16.gmra.mrb[120].mxu0 %v5299_v63  ;;  %3726 = vmatmul.mubr.bf16.gmra.mrb[120].mxu1 %v5299_v63  ;;  %v6480_v63 = vld [vmem:[%s9936_s4 + $0x10] sm:$0xff] }
 0x22c   : > { %5106 = vmatprep.mubr.msk.bf16.mxu0 %vm1943_vm3, %v5300_v20  ;;  %5111 = vmatprep.mubr.msk.bf16.mxu1 %vm1943_vm3, %v5300_v20  ;;  %10488 = vst [vmem:[#allocation23_spill] sm:$0xff] %v6480_v63  ;;  %v6485_v20 = vld [vmem:[%s9936_s4 + $0x18] sm:$0xff] }
 0x22d   : > { %10489 = vst [vmem:[#allocation28_spill] sm:$0xff] %v6485_v20 }
 0x233   : > { %3594 = vmatmul.mubr.bf16.gmra.mrb[124].mxu0 %v5302_v42  ;;  %3736 = vmatmul.mubr.bf16.gmra.mrb[124].mxu1 %v5302_v42  ;;  %v6536_v42 = vld [vmem:[%s9936_s4 + $0x160] sm:$0xff] }
 0x234   : > { %5107 = vmatprep.mubr.msk.bf16.mxu0 %vm1943_vm3, %v5102_v8  ;;  %5112 = vmatprep.mubr.msk.bf16.mxu1 %vm1943_vm3, %v5102_v8  ;;  %v6522_v8 = vld [vmem:[%s9936_s4 + $0x2b0] sm:$0xff]  ;;  %vm3365_vm3 = vcmask 400384  }
 0x235   : > { %10494 = vst [vmem:[#allocation33_spill] sm:$0xff] %v6522_v8 }
 0x23b   : > { %3604 = vmatmul.mubr.bf16.gmra.mrb[128].mxu0 %v5101_v33  ;;  %3746 = vmatmul.mubr.bf16.gmra.mrb[128].mxu1 %v5101_v33  ;;  %v6508_v33 = vld [vmem:[%s9936_s4 + $0x80] sm:$0xff] }
 0x23c   : > { %10492 = vst [vmem:[#allocation27_spill] sm:$0xff] %v6508_v33 }
 0x292   : > { %v7214_v37 = vpop.f32.mrb[100].mxu0  ;;  %v7216_v50 = vpop.f32.mrb[100].mxu1 }
 0x293   : > { %v7222_v60 = vpop.f32.mrb[101].mxu0  ;;  %v7224_v52 = vpop.f32.mrb[101].mxu1  ;;  %v2281_v22 = vmul.f32 %v7214_v37, %v10589_v14  ;;  %v2283_v59 = vmul.f32 %v7216_v50, %v10590_v38  ;;  %v2253_v3 = vmul.f32 %v7214_v37, %v10591_v4  ;;  %v10593_v14 = vunpack.c.h.bf16 %v6339_v56 }
 0x294   : > { %v7236_v6 = vpop.f32.mrb[102].mxu0  ;;  %v7238_v5 = vpop.f32.mrb[102].mxu1  ;;  %v2282_v35 = vmul.f32 %v7222_v60, %v10592_v47  ;;  %v10594_v38 = vunpack.c.h.bf16 %v6344_v25  ;;  %v10595_v4 = vunpack.c.l.bf16 %v6349_v26  ;;  %v2256_v47 = vmul.f32 %v7224_v52, %v10596_v55 }
 0x295   : > { %v2284_v19 = vmul.f32 %v7224_v52, %v10593_v14  ;;  %v7252_v2 = vpop.f32.mrb[103].mxu0  ;;  %v7254_v31 = vpop.f32.mrb[103].mxu1  ;;  %v10597_v56 = vunpack.c.l.bf16 %v6354_v27  ;;  %v10598_v25 = vunpack.c.h.bf16 %v6354_v27  ;;  %v2309_v26 = vmul.f32 %v7214_v37, %v10600_v46 }
 0x296   : > { %v2254_v32 = vmul.f32 %v7222_v60, %v10594_v38  ;;  %v2255_v9 = vmul.f32 %v7216_v50, %v10595_v4  ;;  %v2339_v4 = vmul.f32 %v7216_v50, %v10599_v10  ;;  %v2573_v12 = vadd.f32 %v2282_v35, %v2281_v22 }
 0x297   : > { %v2337_v14 = vmul.f32 %v7214_v37, %v10597_v56  ;;  %v2338_v38 = vmul.f32 %v7222_v60, %v10598_v25  ;;  %v10601_v55 = vunpack.c.h.bf16 %v6368_v57  ;;  %v10602_v56 = vunpack.c.h.bf16 %v6359_v28 }
 0x298   : > { %v2533_v49 = vadd.f32 %v2254_v32, %v2253_v3  ;;  %v10603_v25 = vunpack.c.l.bf16 %v6373_v58  ;;  %v10604_v35 = vunpack.c.l.bf16 %v6382_v39  ;;  %v2574_v22 = vadd.f32 %v2573_v12, %v2283_v59 }
 0x299   : > { %v2310_v48 = vmul.f32 %v7222_v60, %v10601_v55  ;;  %v2340_v27 = vmul.f32 %v7224_v52, %v10602_v56  ;;  %v2651_v15 = vadd.f32 %v2338_v38, %v2337_v14  ;;  %v10605_v46 = vunpack.c.h.bf16 %v6382_v39 }
 0x29a   : > { %v2311_v7 = vmul.f32 %v7216_v50, %v10603_v25  ;;  %v2393_v3 = vmul.f32 %v7214_v37, %v10604_v35  ;;  %v2534_v10 = vadd.f32 %v2533_v49, %v2255_v9  ;;  %v10606_v28 = vunpack.c.h.bf16 %v6373_v58  ;;  %v7297_v49 = vpop.f32.mrb[104].mxu1 }
 0x29b   : > { %v2612_v32 = vadd.f32 %v2310_v48, %v2309_v26  ;;  %v2394_v55 = vmul.f32 %v7222_v60, %v10605_v46  ;;  %v2652_v57 = vadd.f32 %v2651_v15, %v2339_v4  ;;  %v10607_v38 = vunpack.c.l.bf16 %v6387_v40  ;;  %v7295_v48 = vpop.f32.mrb[104].mxu0 }
 0x29c   : > { %v2312_v14 = vmul.f32 %v7224_v52, %v10606_v28  ;;  %v10608_v25 = vunpack.c.l.bf16 %v6396_v61  ;;  %v2575_v59 = vadd.f32 %v2574_v22, %v2284_v19  ;;  %v2535_v9 = vadd.f32 %v2534_v10, %v2256_v47  ;;  %v7299_v4 = vpop.f32.mrb[105].mxu0  ;;  %v7301_v28 = vpop.f32.mrb[105].mxu1 }
 0x29d   : > { %v2395_v56 = vmul.f32 %v7216_v50, %v10607_v38  ;;  %v2613_v26 = vadd.f32 %v2612_v32, %v2311_v7  ;;  %v2729_v12 = vadd.f32 %v2394_v55, %v2393_v3  ;;  %v2653_v15 = vadd.f32 %v2652_v57, %v2340_v27  ;;  %v7312_v27 = vpop.f32.mrb[106].mxu0  ;;  %v7314_v22 = vpop.f32.mrb[106].mxu1 }
 0x29e   : > { %v2365_v35 = vmul.f32 %v7214_v37, %v10608_v25  ;;  %v10609_v46 = vunpack.c.h.bf16 %v6387_v40  ;;  %v10610_v39 = vunpack.c.h.bf16 %v6396_v61  ;;  %v10611_v7 = vunpack.c.l.bf16 %v6401_v29  ;;  %2576 = vadd.xlane.f32.xlu1 %v2575_v59  ;;  %2536 = vadd.xlane.f32.xlu0 %v2535_v9  ;;  %v7320_v25 = vpop.f32.mrb[107].mxu0  ;;  %v7325_v9 = vpop.f32.mrb[107].mxu1 }
 0x29f   : > { %v2614_v3 = vadd.f32 %v2613_v26, %v2312_v14  ;;  %v2730_v57 = vadd.f32 %v2729_v12, %v2395_v56  ;;  %v10612_v10 = vunpack.c.l.bf16 %v6410_v30  ;;  %v10614_v14 = vunpack.c.h.bf16 %v6410_v30 }
 0x2a0   : > { %v2396_v38 = vmul.f32 %v7224_v52, %v10609_v46  ;;  %v2366_v19 = vmul.f32 %v7222_v60, %v10610_v39  ;;  %v2367_v47 = vmul.f32 %v7216_v50, %v10611_v7  ;;  %v10613_v39 = vunpack.c.h.bf16 %v6401_v29  ;;  %v7336_v7 = vld [vmem:[%s9936_s4 + $0x68] sm:$0x11] }
 0x2a1   : > { %v2449_v32 = vmul.f32 %v7214_v37, %v10612_v10  ;;  %v2450_v56 = vmul.f32 %v7222_v60, %v10614_v14  ;;  %v10615_v26 = vunpack.c.l.bf16 %v6415_v1  ;;  %10616 = vst [vmem:[#allocation126_spill] sm:$0xff] %v7336_v7  ;;  %v10617_v55 = vunpack.c.h.bf16 %v6415_v1 }
 0x2a2   : > { %v2368_v46 = vmul.f32 %v7224_v52, %v10613_v39  ;;  %v2690_v59 = vadd.f32 %v2366_v19, %v2365_v35  ;;  %v2731_v10 = vadd.f32 %v2730_v57, %v2396_v38  ;;  %v10618_v19 = vunpack.c.l.bf16 %v6424_v41  ;;  %2654 = vadd.xlane.f32.xlu1 %v2653_v15  ;;  %2615 = vadd.xlane.f32.xlu0 %v2614_v3 }
 0x2a3   : > { %v2451_v12 = vmul.f32 %v7216_v50, %v10615_v26  ;;  %v2452_v35 = vmul.f32 %v7224_v52, %v10617_v55  ;;  %v10619_v14 = vunpack.c.h.bf16 %v6424_v41  ;;  %v2807_v26 = vadd.f32 %v2450_v56, %v2449_v32 }
 0x2a4   : > { %v2421_v39 = vmul.f32 %v7214_v37, %v10618_v19  ;;  %v2691_v40 = vadd.f32 %v2690_v59, %v2367_v47  ;;  %v10620_v29 = vunpack.c.l.bf16 %v6429_v24  ;;  %v10621_v38 = vunpack.c.l.bf16 %v6438_v23 }
 0x2a5   : > { %v2422_v30 = vmul.f32 %v7222_v60, %v10619_v14  ;;  %v10622_v55 = vunpack.c.h.bf16 %v6429_v24  ;;  %v10623_v41 = vunpack.c.h.bf16 %v6438_v23  ;;  %v2808_v56 = vadd.f32 %v2807_v26, %v2451_v12  ;;  %v7366_v24 = vpop.f32.mrb[108].mxu0 }
 0x2a6   : > { %v2423_v61 = vmul.f32 %v7216_v50, %v10620_v29  ;;  %v2505_v57 = vmul.f32 %v7214_v37, %v10621_v38  ;;  %v2692_v59 = vadd.f32 %v2691_v40, %v2368_v46  ;;  %v10624_v29 = vunpack.c.l.bf16 %v6443_v21  ;;  %v7376_v26 = vpop.f32.mrb[109].mxu0  ;;  %2732 = vadd.xlane.f32.xlu1 %v2731_v10 }
 0x2a7   : > { %v2424_v19 = vmul.f32 %v7224_v52, %v10622_v55  ;;  %v2768_v1 = vadd.f32 %v2422_v30, %v2421_v39  ;;  %v2506_v47 = vmul.f32 %v7222_v60, %v10623_v41  ;;  %v10625_v15 = vunpack.c.l.bf16 %v6452_v43  ;;  %v7368_v30 = vpop.f32.mrb[108].mxu1 }
 0x2a8   : > { %v2507_v14 = vmul.f32 %v7216_v50, %v10624_v29  ;;  %v10626_v39 = vunpack.c.h.bf16 %v6443_v21  ;;  %v10627_v40 = vunpack.c.h.bf16 %v6452_v43  ;;  %v2809_v12 = vadd.f32 %v2808_v56, %v2452_v35  ;;  %v7378_v29 = vpop.f32.mrb[109].mxu1  ;;  %2693 = vadd.xlane.f32.xlu0 %v2692_v59  ;;  %v7389_v35 = vpop.f32.mrb[110].mxu0 }
 0x2a9   : > { %v2477_v3 = vmul.f32 %v7214_v37, %v10625_v15  ;;  %v2769_v38 = vadd.f32 %v2768_v1, %v2423_v61  ;;  %v2885_v55 = vadd.f32 %v2506_v47, %v2505_v57  ;;  %v10628_v37 = vunpack.c.l.bf16 %v6457_v44 }
 0x2aa   : > { %v2508_v41 = vmul.f32 %v7224_v52, %v10626_v39  ;;  %v2478_v46 = vmul.f32 %v7222_v60, %v10627_v40  ;;  %v10629_v1 = vunpack.c.l.bf16 %v6466_v17  ;;  %v10630_v39 = vunpack.c.h.bf16 %v6466_v17  ;;  %v7391_v40 = vpop.f32.mrb[110].mxu1  ;;  %2810 = vadd.xlane.f32.xlu1 %v2809_v12 }
 0x2ab   : > { %v2479_v61 = vmul.f32 %v7216_v50, %v10628_v37  ;;  %v2770_v60 = vadd.f32 %v2769_v38, %v2424_v19  ;;  %v2886_v47 = vadd.f32 %v2885_v55, %v2507_v14  ;;  %v7394_v50 = vpop.f32.mrb[111].mxu0  ;;  %v10631_v37 = vunpack.c.h.bf16 %v6457_v44  ;;  %v7399_v17 = vpop.f32.mrb[111].mxu1  ;;  %v7410_v38 = vld [vmem:[%s9936_s4 + $0x370] sm:$0x11] }
 0x2ac   : > { %v2313_v15 = vmul.f32 %v7236_v6, %v10629_v1  ;;  %v2314_v57 = vmul.f32 %v7252_v2, %v10630_v39  ;;  %v2846_v56 = vadd.f32 %v2478_v46, %v2477_v3  ;;  %v10632_v10 = vunpack.c.l.bf16 %v6471_v18  ;;  %10634 = vst [vmem:[#allocation127_spill] sm:$0xff] %v7410_v38 }
 0x2ad   : > { %v2480_v1 = vmul.f32 %v7224_v52, %v10631_v37  ;;  %v10633_v14 = vunpack.c.l.bf16 %v6480_v63  ;;  %v2887_v55 = vadd.f32 %v2886_v47, %v2508_v41  ;;  %v10635_v52 = vunpack.c.h.bf16 %v6471_v18  ;;  %2771 = vadd.xlane.f32.xlu0 %v2770_v60  ;;  %v7437_v60 = vpop.f32.mrb[112].mxu0 }
 0x2ae   : > { %v2315_v19 = vmul.f32 %v7238_v5, %v10632_v10  ;;  %v2617_v59 = vadd.f32 %v2314_v57, %v2313_v15  ;;  %v2847_v46 = vadd.f32 %v2846_v56, %v2479_v61  ;;  %v10636_v37 = vunpack.c.h.bf16 %v6480_v63 }
 0x2af   : > { %v2257_v3 = vmul.f32 %v7236_v6, %v10633_v14  ;;  %v2316_v39 = vmul.f32 %v7254_v31, %v10635_v52  ;;  %v10637_v57 = vunpack.c.l.bf16 %v6485_v20  ;;  %v10638_v32 = vunpack.c.l.bf16 %v6494_v62  ;;  %2888 = vadd.xlane.f32.xlu1 %v2887_v55 }
 0x2b0   : > { %v2258_v10 = vmul.f32 %v7252_v2, %v10636_v37  ;;  %v2618_v15 = vadd.f32 %v2617_v59, %v2315_v19  ;;  %v10639_v41 = vunpack.c.h.bf16 %v6494_v62  ;;  %v2848_v47 = vadd.f32 %v2847_v46, %v2480_v1  ;;  %v7439_v1 = vpop.f32.mrb[112].mxu1 }
 0x2b1   : > { %v2259_v14 = vmul.f32 %v7238_v5, %v10637_v57  ;;  %v2369_v21 = vmul.f32 %v7236_v6, %v10638_v32  ;;  %v10640_v56 = vunpack.c.h.bf16 %v6485_v20  ;;  %v10641_v57 = vunpack.c.l.bf16 %v6499_v34 }
 0x2b2   : > { %v2370_v61 = vmul.f32 %v7252_v2, %v10639_v41  ;;  %v2538_v19 = vadd.f32 %v2258_v10, %v2257_v3  ;;  %v2619_v37 = vadd.f32 %v2618_v15, %v2316_v39  ;;  %v10642_v63 = vunpack.c.l.bf16 %v6508_v33  ;;  %2849 = vadd.xlane.f32.xlu0 %v2848_v47  ;;  %v7476_v47 = vld [vmem:[%s9936_s4 + $0x378] sm:$0x11] }
 0x2b3   : > { %v2260_v52 = vmul.f32 %v7254_v31, %v10640_v56  ;;  %v2371_v18 = vmul.f32 %v7238_v5, %v10641_v57  ;;  %v10643_v46 = vunpack.c.h.bf16 %v6499_v34  ;;  %v10644_v39 = vunpack.c.h.bf16 %v6508_v33  ;;  %10652 = vst [vmem:[#allocation128_spill] sm:$0xff] %v7476_v47 }
 0x2b4   : > { %v2695_v32 = vadd.f32 %v2370_v61, %v2369_v21  ;;  %v2285_v41 = vmul.f32 %v7236_v6, %v10642_v63  ;;  %v2539_v12 = vadd.f32 %v2538_v19, %v2259_v14  ;;  %v10645_v15 = vunpack.c.l.bf16 %v6513_v16  ;;  %v7450_v61 = vpop.f32.mrb[113].mxu0  ;;  %v7455_v19 = vpop.f32.mrb[113].mxu1  ;;  %2620 = vadd.xlane.f32.xlu1 %v2619_v37 }
 0x2b5   : > { %v2372_v3 = vmul.f32 %v7254_v31, %v10643_v46  ;;  %v2286_v10 = vmul.f32 %v7252_v2, %v10644_v39  ;;  %v10646_v14 = vunpack.c.h.bf16 %v6513_v16  ;;  %v10647_v57 = vunpack.c.l.bf16 %v6522_v8  ;;  %v2108_v33 = vpop.f32.mrb[114].mxu0  ;;  %v10668_v16 = vld [vmem:[#allocation38_spill] sm:$0xff] }
 0x2b6   : > { %v2287_v21 = vmul.f32 %v7238_v5, %v10645_v15  ;;  %v2696_v63 = vadd.f32 %v2695_v32, %v2371_v18  ;;  %v10648_v59 = vunpack.c.h.bf16 %v6522_v8  ;;  %v2540_v15 = vadd.f32 %v2539_v12, %v2260_v52  ;;  %v2250_v18 = vpop.f32.mrb[114].mxu1  ;;  %v2109_v62 = vpop.f32.mrb[115].mxu0 }
 0x2b7   : > { %v2288_v56 = vmul.f32 %v7254_v31, %v10646_v14  ;;  %v2425_v46 = vmul.f32 %v7236_v6, %v10647_v57  ;;  %v2578_v20 = vadd.f32 %v2286_v10, %v2285_v41  ;;  %v10649_v32 = vunpack.c.l.bf16 %v6527_v11  ;;  %v2251_v23 = vpop.f32.mrb[115].mxu1 }
 0x2b8   : > { %v2426_v39 = vmul.f32 %v7252_v2, %v10648_v59  ;;  %v2697_v34 = vadd.f32 %v2696_v63, %v2372_v3  ;;  %v10650_v8 = vunpack.c.l.bf16 %v6536_v42  ;;  %v10651_v55 = vunpack.c.h.bf16 %v6536_v42  ;;  %2541 = vadd.xlane.f32.xlu0 %v2540_v15 }
 0x2b9   : > { %v2427_v14 = vmul.f32 %v7238_v5, %v10649_v32  ;;  %v2579_v52 = vadd.f32 %v2578_v20, %v2287_v21  ;;  %v10653_v41 = vunpack.c.h.bf16 %v6527_v11  ;;  %v10654_v23 = vunpack.c.l.bf16 %v6541_v45 }
 0x2ba   : > { %v2773_v57 = vadd.f32 %v2426_v39, %v2425_v46  ;;  %v2341_v59 = vmul.f32 %v7236_v6, %v10650_v8  ;;  %v2342_v33 = vmul.f32 %v7252_v2, %v10651_v55  ;;  %v10655_v8 = vunpack.c.l.bf16 %v6550_v51  ;;  %2698 = vadd.xlane.f32.xlu1 %v2697_v34 }
 0x2bb   : > { %v2428_v62 = vmul.f32 %v7254_v31, %v10653_v41  ;;  %v2343_v12 = vmul.f32 %v7238_v5, %v10654_v23  ;;  %v10656_v63 = vunpack.c.h.bf16 %v6541_v45  ;;  %v10657_v20 = vunpack.c.h.bf16 %v6550_v51 }
 0x2bc   : > { %v2481_v3 = vmul.f32 %v7236_v6, %v10655_v8  ;;  %v2774_v10 = vadd.f32 %v2773_v57, %v2427_v14  ;;  %v2656_v39 = vadd.f32 %v2342_v33, %v2341_v59  ;;  %v2580_v18 = vadd.f32 %v2579_v52, %v2288_v56 }
 0x2bd   : > { %v2344_v46 = vmul.f32 %v7254_v31, %v10656_v63  ;;  %v2482_v21 = vmul.f32 %v7252_v2, %v10657_v20  ;;  %v10658_v32 = vunpack.c.l.bf16 %v6555_v13  ;;  %v10659_v41 = vunpack.c.l.bf16 %v6564_v54 }
 0x2be   : > { %v2775_v23 = vadd.f32 %v2774_v10, %v2428_v62  ;;  %v2657_v8 = vadd.f32 %v2656_v39, %v2343_v12  ;;  %v10660_v33 = vunpack.c.h.bf16 %v6564_v54  ;;  %v10661_v37 = vunpack.c.h.bf16 %v6555_v13  ;;  %2581 = vadd.xlane.f32.xlu0 %v2580_v18  ;;  %v10681_v54 = vld [vmem:[#allocation41_spill] sm:$0xff] }
 0x2bf   : > { %v2483_v55 = vmul.f32 %v7238_v5, %v10658_v32  ;;  %v2397_v14 = vmul.f32 %v7236_v6, %v10659_v41  ;;  %v2851_v59 = vadd.f32 %v2482_v21, %v2481_v3  ;;  %v10662_v15 = vunpack.c.l.bf16 %v6569_v0 }
 0x2c0   : > { %v2398_v63 = vmul.f32 %v7252_v2, %v10660_v33  ;;  %v2484_v56 = vmul.f32 %v7254_v31, %v10661_v37  ;;  %v10663_v20 = vunpack.c.l.bf16 %v6578_v53  ;;  %v10664_v62 = vunpack.c.h.bf16 %v6578_v53  ;;  %v10666_v33 = vld [vmem:[#allocation35_spill] sm:$0xff]  ;;  %2776 = vadd.xlane.f32.xlu1 %v2775_v23 }
 0x2c1   : > { %v2399_v52 = vmul.f32 %v7238_v5, %v10662_v15  ;;  %v2658_v3 = vadd.f32 %v2657_v8, %v2344_v46  ;;  %v2852_v10 = vadd.f32 %v2851_v59, %v2483_v55  ;;  %v10665_v39 = vunpack.c.h.bf16 %v6569_v0 }
 0x2c2   : > { %v2453_v32 = vmul.f32 %v7236_v6, %v10663_v20  ;;  %v2454_v12 = vmul.f32 %v7252_v2, %v10664_v62  ;;  %v2734_v41 = vadd.f32 %v2398_v63, %v2397_v14  ;;  %v10667_v37 = vunpack.c.l.bf16 %v10666_v33  ;;  %v7534_v14 = vld [vmem:[%s9936_s4 + $0x140] sm:$0x11] }
 0x2c3   : > { %v2400_v21 = vmul.f32 %v7254_v31, %v10665_v39  ;;  %v10669_v20 = vunpack.c.l.bf16 %v10668_v16  ;;  %v2853_v46 = vadd.f32 %v2852_v10, %v2484_v56  ;;  %v10670_v8 = vunpack.c.h.bf16 %v10666_v33  ;;  %10672 = vst [vmem:[#allocation129_spill] sm:$0xff] %v7534_v14  ;;  %v10675_v56 = vld [vmem:[#allocation39_spill] sm:$0xff]  ;;  %2659 = vadd.xlane.f32.xlu0 %v2658_v3 }
 0x2c4   : > { %v2455_v15 = vmul.f32 %v7238_v5, %v10667_v37  ;;  %v2812_v57 = vadd.f32 %v2454_v12, %v2453_v32  ;;  %v2735_v55 = vadd.f32 %v2734_v41, %v2399_v52  ;;  %v10671_v34 = vunpack.c.h.bf16 %v10668_v16  ;;  %v10673_v32 = vld [vmem:[#allocation43_spill] sm:$0xff]  ;;  %v10679_v16 = vld [vmem:[#allocation40_spill] sm:$0xff] }
 0x2c5   : > { %v2261_v11 = vmul.f32 %v7295_v48, %v10669_v20  ;;  %v2456_v59 = vmul.f32 %v7254_v31, %v10670_v8  ;;  %v10674_v12 = vunpack.c.l.bf16 %v10673_v32  ;;  %v10676_v52 = vunpack.c.l.bf16 %v10675_v56  ;;  %2854 = vadd.xlane.f32.xlu1 %v2853_v46 }
 0x2c6   : > { %v2262_v18 = vmul.f32 %v7299_v4, %v10671_v34  ;;  %v2813_v63 = vadd.f32 %v2812_v57, %v2455_v15  ;;  %v10677_v41 = vunpack.c.h.bf16 %v10675_v56  ;;  %v2736_v20 = vadd.f32 %v2735_v55, %v2400_v21 }
 0x2c7   : > { %v2263_v39 = vmul.f32 %v7297_v49, %v10674_v12  ;;  %v2509_v10 = vmul.f32 %v7236_v6, %v10676_v52  ;;  %v10678_v8 = vunpack.c.h.bf16 %v10673_v32  ;;  %v10680_v57 = vunpack.c.l.bf16 %v10679_v16 }
 0x2c8   : > { %v2510_v37 = vmul.f32 %v7252_v2, %v10677_v41  ;;  %v2543_v62 = vadd.f32 %v2262_v18, %v2261_v11  ;;  %v2814_v12 = vadd.f32 %v2813_v63, %v2456_v59  ;;  %v10682_v6 = vunpack.c.l.bf16 %v10681_v54  ;;  %v7567_v59 = vld [vmem:[%s9936_s4 + $0x148] sm:$0x11]  ;;  %2737 = vadd.xlane.f32.xlu0 %v2736_v20 }
 0x2c9   : > { %v2264_v34 = vmul.f32 %v7301_v28, %v10678_v8  ;;  %v2511_v15 = vmul.f32 %v7238_v5, %v10680_v57  ;;  %v10683_v55 = vunpack.c.h.bf16 %v10679_v16  ;;  %v10684_v11 = vunpack.c.h.bf16 %v10681_v54  ;;  %v10685_v5 = vld [vmem:[#allocation42_spill] sm:$0xff]  ;;  %10687 = vst [vmem:[#allocation130_spill] sm:$0xff] %v7567_v59  ;;  %v10694_v54 = vld [vmem:[#allocation44_spill] sm:$0xff] }
 0x2ca   : > { %v2890_v0 = vadd.f32 %v2510_v37, %v2509_v10  ;;  %v2289_v52 = vmul.f32 %v7295_v48, %v10682_v6  ;;  %v2544_v21 = vadd.f32 %v2543_v62, %v2263_v39  ;;  %v10686_v23 = vunpack.c.l.bf16 %v10685_v5  ;;  %v10689_v10 = vld [vmem:[#allocation46_spill] sm:$0xff] }
 0x2cb   : > { %v2512_v41 = vmul.f32 %v7254_v31, %v10683_v55  ;;  %v2290_v18 = vmul.f32 %v7299_v4, %v10684_v11  ;;  %v10688_v62 = vunpack.c.h.bf16 %v10685_v5  ;;  %v10690_v31 = vunpack.c.l.bf16 %v10689_v10  ;;  %v10692_v11 = vld [vmem:[#allocation47_spill] sm:$0xff] }
 0x2cc   : > { %v2291_v3 = vmul.f32 %v7297_v49, %v10686_v23  ;;  %v2891_v63 = vadd.f32 %v2890_v0, %v2511_v15  ;;  %v10691_v8 = vunpack.c.h.bf16 %v10689_v10  ;;  %v2545_v6 = vadd.f32 %v2544_v21, %v2264_v34  ;;  %2815 = vadd.xlane.f32.xlu0 %v2814_v12 }
 0x2cd   : > { %v2292_v39 = vmul.f32 %v7301_v28, %v10688_v62  ;;  %v2317_v37 = vmul.f32 %v7295_v48, %v10690_v31  ;;  %v2583_v55 = vadd.f32 %v2290_v18, %v2289_v52  ;;  %v10693_v23 = vunpack.c.l.bf16 %v10692_v11  ;;  %v10698_v18 = vld [vmem:[#allocation45_spill] sm:$0xff] }
 0x2ce   : > { %v2318_v57 = vmul.f32 %v7299_v4, %v10691_v8  ;;  %v10695_v0 = vunpack.c.l.bf16 %v10694_v54  ;;  %v2892_v62 = vadd.f32 %v2891_v63, %v2512_v41  ;;  %v10696_v31 = vunpack.c.h.bf16 %v10694_v54  ;;  %2546 = vadd.xlane.f32.xlu1 %v2545_v6 }
 0x2cf   : > { %v2319_v2 = vmul.f32 %v7297_v49, %v10693_v23  ;;  %v2584_v34 = vadd.f32 %v2583_v55, %v2291_v3  ;;  %v10697_v52 = vunpack.c.h.bf16 %v10692_v11  ;;  %v10699_v23 = vunpack.c.l.bf16 %v10698_v18 }
 0x2d0   : > { %v2345_v15 = vmul.f32 %v7295_v48, %v10695_v0  ;;  %v2622_v5 = vadd.f32 %v2318_v57, %v2317_v37  ;;  %v2346_v10 = vmul.f32 %v7299_v4, %v10696_v31  ;;  %v10700_v0 = vld [vmem:[#allocation50_spill] sm:$0xff]  ;;  %v10702_v63 = vunpack.c.h.bf16 %v10698_v18  ;;  %2893 = vadd.xlane.f32.xlu0 %v2892_v62  ;;  %v7650_v62 = vld [vmem:[%s9936_s4 + $0x3e0] sm:$0x11] }
 0x2d1   : > { %v2320_v21 = vmul.f32 %v7301_v28, %v10697_v52  ;;  %v2347_v32 = vmul.f32 %v7297_v49, %v10699_v23  ;;  %v10701_v46 = vunpack.c.l.bf16 %v10700_v0  ;;  %v10703_v3 = vunpack.c.h.bf16 %v10700_v0  ;;  %v10704_v52 = vld [vmem:[#allocation51_spill] sm:$0xff]  ;;  %v10706_v23 = vld [vmem:[#allocation48_spill] sm:$0xff]  ;;  %v10712_v18 = vld [vmem:[#allocation54_spill] sm:$0xff]  ;;  %10726 = vst [vmem:[#allocation131_spill] sm:$0xff] %v7650_v62 }
 0x2d2   : > { %v2623_v41 = vadd.f32 %v2622_v5, %v2319_v2  ;;  %v2348_v37 = vmul.f32 %v7301_v28, %v10702_v63  ;;  %v2661_v57 = vadd.f32 %v2346_v10, %v2345_v15  ;;  %v2585_v31 = vadd.f32 %v2584_v34, %v2292_v39 }
 0x2d3   : > { %v2373_v20 = vmul.f32 %v7295_v48, %v10701_v46  ;;  %v2374_v55 = vmul.f32 %v7299_v4, %v10703_v3  ;;  %v10705_v8 = vunpack.c.l.bf16 %v10704_v52  ;;  %v10707_v11 = vunpack.c.l.bf16 %v10706_v23 }
 0x2d4   : > { %v10708_v2 = vunpack.c.h.bf16 %v10706_v23  ;;  %v2624_v10 = vadd.f32 %v2623_v41, %v2320_v21  ;;  %v2662_v15 = vadd.f32 %v2661_v57, %v2347_v32  ;;  %v10709_v39 = vunpack.c.h.bf16 %v10704_v52  ;;  %2586 = vadd.xlane.f32.xlu1 %v2585_v31 }
 0x2d5   : > { %v2375_v54 = vmul.f32 %v7297_v49, %v10705_v8  ;;  %v2401_v16 = vmul.f32 %v7295_v48, %v10707_v11  ;;  %v2700_v46 = vadd.f32 %v2374_v55, %v2373_v20  ;;  %v10710_v8 = vld [vmem:[#allocation49_spill] sm:$0xff]  ;;  %v10713_v23 = vunpack.c.l.bf16 %v10712_v18  ;;  %v10716_v55 = vld [vmem:[#allocation55_spill] sm:$0xff] }
 0x2d6   : > { %v2402_v5 = vmul.f32 %v7299_v4, %v10708_v2  ;;  %v2376_v34 = vmul.f32 %v7301_v28, %v10709_v39  ;;  %v10711_v3 = vunpack.c.l.bf16 %v10710_v8  ;;  %v2663_v12 = vadd.f32 %v2662_v15, %v2348_v37  ;;  %2625 = vadd.xlane.f32.xlu0 %v2624_v10  ;;  %v7683_v10 = vld [vmem:[%s9936_s4 + $0x3e8] sm:$0x11] }
 0x2d7   : > { %v2429_v2 = vmul.f32 %v7295_v48, %v10713_v23  ;;  %v2701_v6 = vadd.f32 %v2700_v46, %v2375_v54  ;;  %v10714_v32 = vunpack.c.h.bf16 %v10710_v8  ;;  %v10715_v20 = vunpack.c.h.bf16 %v10712_v18  ;;  %v10724_v18 = vld [vmem:[#allocation58_spill] sm:$0xff]  ;;  %10740 = vst [vmem:[#allocation132_spill] sm:$0xff] %v7683_v10 }
 0x2d8   : > { %v2403_v0 = vmul.f32 %v7297_v49, %v10711_v3  ;;  %v2739_v11 = vadd.f32 %v2402_v5, %v2401_v16  ;;  %v10717_v39 = vunpack.c.l.bf16 %v10716_v55  ;;  %v10718_v16 = vld [vmem:[#allocation52_spill] sm:$0xff]  ;;  %v10721_v15 = vunpack.c.h.bf16 %v10716_v55  ;;  %2664 = vadd.xlane.f32.xlu1 %v2663_v12 }
 0x2d9   : > { %v2404_v21 = vmul.f32 %v7301_v28, %v10714_v32  ;;  %v2430_v41 = vmul.f32 %v7299_v4, %v10715_v20  ;;  %v10719_v5 = vunpack.c.l.bf16 %v10718_v16  ;;  %v10720_v37 = vunpack.c.h.bf16 %v10718_v16  ;;  %v10722_v20 = vld [vmem:[#allocation53_spill] sm:$0xff] }
 0x2da   : > { %v2740_v57 = vadd.f32 %v2739_v11, %v2403_v0  ;;  %v2431_v3 = vmul.f32 %v7297_v49, %v10717_v39  ;;  %v2702_v23 = vadd.f32 %v2701_v6, %v2376_v34  ;;  %v2432_v46 = vmul.f32 %v7301_v28, %v10721_v15 }
 0x2db   : > { %v2457_v63 = vmul.f32 %v7295_v48, %v10719_v5  ;;  %v2458_v54 = vmul.f32 %v7299_v4, %v10720_v37  ;;  %v2778_v0 = vadd.f32 %v2430_v41, %v2429_v2  ;;  %v10723_v39 = vunpack.c.l.bf16 %v10722_v20  ;;  %v10729_v41 = vld [vmem:[#allocation59_spill] sm:$0xff] }
 0x2dc   : > { %v2741_v32 = vadd.f32 %v2740_v57, %v2404_v21  ;;  %v10725_v16 = vunpack.c.l.bf16 %v10724_v18  ;;  %v10727_v34 = vunpack.c.h.bf16 %v10722_v20  ;;  %v10728_v6 = vunpack.c.h.bf16 %v10724_v18  ;;  %v10735_v20 = vld [vmem:[#allocation61_spill] sm:$0xff]  ;;  %2703 = vadd.xlane.f32.xlu0 %v2702_v23 }
 0x2dd   : > { %v2459_v8 = vmul.f32 %v7297_v49, %v10723_v39  ;;  %v2817_v5 = vadd.f32 %v2458_v54, %v2457_v63  ;;  %v2779_v31 = vadd.f32 %v2778_v0, %v2431_v3  ;;  %v10730_v63 = vunpack.c.l.bf16 %v10729_v41  ;;  %v10732_v39 = vld [vmem:[#allocation60_spill] sm:$0xff] }
 0x2de   : > { %v2485_v37 = vmul.f32 %v7295_v48, %v10725_v16  ;;  %v2460_v2 = vmul.f32 %v7301_v28, %v10727_v34  ;;  %v2486_v21 = vmul.f32 %v7299_v4, %v10728_v6  ;;  %v10731_v16 = vunpack.c.h.bf16 %v10729_v41  ;;  %v10737_v41 = vld [vmem:[#allocation56_spill] sm:$0xff]  ;;  %2742 = vadd.xlane.f32.xlu1 %v2741_v32 }
 0x2df   : > { %v2487_v57 = vmul.f32 %v7297_v49, %v10730_v63  ;;  %v2818_v54 = vadd.f32 %v2817_v5, %v2459_v8  ;;  %v10733_v11 = vunpack.c.l.bf16 %v10732_v39  ;;  %v10734_v0 = vunpack.c.h.bf16 %v10732_v39 }
 0x2e0   : > { %v2488_v15 = vmul.f32 %v7301_v28, %v10731_v16  ;;  %v2780_v6 = vadd.f32 %v2779_v31, %v2432_v46  ;;  %v2856_v18 = vadd.f32 %v2486_v21, %v2485_v37  ;;  %v10736_v55 = vunpack.c.l.bf16 %v10735_v20  ;;  %v10742_v37 = vld [vmem:[#allocation57_spill] sm:$0xff]  ;;  %v10744_v21 = vld [vmem:[#allocation62_spill] sm:$0xff] }
 0x2e1   : > { %v2265_v3 = vmul.f32 %v7312_v27, %v10733_v11  ;;  %v2266_v34 = vmul.f32 %v7320_v25, %v10734_v0  ;;  %v2819_v63 = vadd.f32 %v2818_v54, %v2460_v2  ;;  %v10738_v52 = vunpack.c.l.bf16 %v10737_v41 }
 0x2e2   : > { %v2267_v8 = vmul.f32 %v7314_v22, %v10736_v55  ;;  %v10739_v39 = vunpack.c.h.bf16 %v10737_v41  ;;  %v2857_v12 = vadd.f32 %v2856_v18, %v2487_v57  ;;  %v10741_v55 = vunpack.c.h.bf16 %v10735_v20  ;;  %2781 = vadd.xlane.f32.xlu0 %v2780_v6 }
 0x2e3   : > { %v2548_v16 = vadd.f32 %v2266_v34, %v2265_v3  ;;  %v2513_v11 = vmul.f32 %v7295_v48, %v10738_v52  ;;  %v10743_v31 = vunpack.c.l.bf16 %v10742_v37  ;;  %v10745_v48 = vunpack.c.l.bf16 %v10744_v21  ;;  %2820 = vadd.xlane.f32.xlu1 %v2819_v63 }
 0x2e4   : > { %v2514_v0 = vmul.f32 %v7299_v4, %v10739_v39  ;;  %v2268_v46 = vmul.f32 %v7325_v9, %v10741_v55  ;;  %v10746_v4 = vunpack.c.h.bf16 %v10742_v37  ;;  %v10747_v18 = vunpack.c.h.bf16 %v10744_v21  ;;  %v10748_v55 = vld [vmem:[#allocation63_spill] sm:$0xff] }
 0x2e5   : > { %v2515_v2 = vmul.f32 %v7297_v49, %v10743_v31  ;;  %v2321_v52 = vmul.f32 %v7312_v27, %v10745_v48  ;;  %v2549_v54 = vadd.f32 %v2548_v16, %v2267_v8  ;;  %v2858_v34 = vadd.f32 %v2857_v12, %v2488_v15  ;;  %v10750_v31 = vld [vmem:[#allocation64_spill] sm:$0xff]  ;;  %v10754_v15 = vld [vmem:[#allocation65_spill] sm:$0xff] }
 0x2e6   : > { %v2516_v39 = vmul.f32 %v7301_v28, %v10746_v4  ;;  %v2895_v3 = vadd.f32 %v2514_v0, %v2513_v11  ;;  %v2322_v57 = vmul.f32 %v7320_v25, %v10747_v18  ;;  %v10749_v5 = vunpack.c.l.bf16 %v10748_v55  ;;  %v10756_v18 = vld [vmem:[#allocation66_spill] sm:$0xff] }
 0x2e7   : > { %v10751_v20 = vunpack.c.l.bf16 %v10750_v31  ;;  %v2550_v48 = vadd.f32 %v2549_v54, %v2268_v46  ;;  %v10752_v0 = vunpack.c.h.bf16 %v10750_v31  ;;  %v10753_v23 = vunpack.c.h.bf16 %v10748_v55  ;;  %v10762_v31 = vld [vmem:[#allocation68_spill] sm:$0xff]  ;;  %2859 = vadd.xlane.f32.xlu0 %v2858_v34 }
 0x2e8   : > { %v2323_v49 = vmul.f32 %v7314_v22, %v10749_v5  ;;  %v2896_v28 = vadd.f32 %v2895_v3, %v2515_v2  ;;  %v2627_v11 = vadd.f32 %v2322_v57, %v2321_v52  ;;  %v10755_v12 = vunpack.c.l.bf16 %v10754_v15 }
 0x2e9   : > { %v2293_v8 = vmul.f32 %v7312_v27, %v10751_v20  ;;  %v2294_v4 = vmul.f32 %v7320_v25, %v10752_v0  ;;  %v2324_v32 = vmul.f32 %v7325_v9, %v10753_v23  ;;  %v10757_v21 = vunpack.c.l.bf16 %v10756_v18  ;;  %v10760_v23 = vld [vmem:[#allocation67_spill] sm:$0xff]  ;;  %2551 = vadd.xlane.f32.xlu1 %v2550_v48 }
 0x2ea   : > { %v2295_v5 = vmul.f32 %v7314_v22, %v10755_v12  ;;  %v10758_v46 = vunpack.c.h.bf16 %v10756_v18  ;;  %v2897_v52 = vadd.f32 %v2896_v28, %v2516_v39  ;;  %v2628_v54 = vadd.f32 %v2627_v11, %v2323_v49 }
 0x2eb   : > { %v2377_v20 = vmul.f32 %v7312_v27, %v10757_v21  ;;  %v10759_v3 = vunpack.c.h.bf16 %v10754_v15  ;;  %v2588_v0 = vadd.f32 %v2294_v4, %v2293_v8  ;;  %v10761_v16 = vunpack.c.l.bf16 %v10760_v23  ;;  %v10766_v4 = vld [vmem:[#allocation69_spill] sm:$0xff]  ;;  %v10786_v15 = vld [vmem:[#allocation76_spill] sm:$0xff] }
 0x2ec   : > { %v2378_v2 = vmul.f32 %v7320_v25, %v10758_v46  ;;  %v10763_v21 = vunpack.c.l.bf16 %v10762_v31  ;;  %v2629_v39 = vadd.f32 %v2628_v54, %v2324_v32  ;;  %v10764_v28 = vunpack.c.h.bf16 %v10760_v23  ;;  %2898 = vadd.xlane.f32.xlu0 %v2897_v52 }
 0x2ed   : > { %v2296_v57 = vmul.f32 %v7325_v9, %v10759_v3  ;;  %v2379_v12 = vmul.f32 %v7314_v22, %v10761_v16  ;;  %v2589_v49 = vadd.f32 %v2588_v0, %v2295_v5  ;;  %v10765_v6 = vunpack.c.h.bf16 %v10762_v31  ;;  %v10774_v31 = vld [vmem:[#allocation72_spill] sm:$0xff] }
 0x2ee   : > { %v2705_v55 = vadd.f32 %v2378_v2, %v2377_v20  ;;  %v2349_v18 = vmul.f32 %v7312_v27, %v10763_v21  ;;  %v2380_v11 = vmul.f32 %v7325_v9, %v10764_v28  ;;  %v10767_v16 = vunpack.c.l.bf16 %v10766_v4  ;;  %v10768_v2 = vld [vmem:[#allocation70_spill] sm:$0xff]  ;;  %2630 = vadd.xlane.f32.xlu1 %v2629_v39 }
 0x2ef   : > { %v2350_v63 = vmul.f32 %v7320_v25, %v10765_v6  ;;  %v10769_v3 = vunpack.c.l.bf16 %v10768_v2  ;;  %v10770_v32 = vunpack.c.h.bf16 %v10768_v2  ;;  %v2590_v54 = vadd.f32 %v2589_v49, %v2296_v57  ;;  %v10772_v6 = vld [vmem:[#allocation71_spill] sm:$0xff] }
 0x2f0   : > { %v2706_v8 = vadd.f32 %v2705_v55, %v2379_v12  ;;  %v2351_v20 = vmul.f32 %v7314_v22, %v10767_v16  ;;  %v10771_v0 = vunpack.c.h.bf16 %v10766_v4  ;;  %v10773_v55 = vunpack.c.l.bf16 %v10772_v6 }
 0x2f1   : > { %v2433_v21 = vmul.f32 %v7312_v27, %v10769_v3  ;;  %v2434_v5 = vmul.f32 %v7320_v25, %v10770_v32  ;;  %v2666_v46 = vadd.f32 %v2350_v63, %v2349_v18  ;;  %v10775_v3 = vunpack.c.l.bf16 %v10774_v31  ;;  %2591 = vadd.xlane.f32.xlu0 %v2590_v54 }
 0x2f2   : > { %v2352_v28 = vmul.f32 %v7325_v9, %v10771_v0  ;;  %v2435_v12 = vmul.f32 %v7314_v22, %v10773_v55  ;;  %v2707_v16 = vadd.f32 %v2706_v8, %v2380_v11  ;;  %v10776_v49 = vunpack.c.h.bf16 %v10772_v6  ;;  %v10778_v55 = vld [vmem:[#allocation73_spill] sm:$0xff]  ;;  %v10784_v6 = vld [vmem:[#allocation75_spill] sm:$0xff] }
 0x2f3   : > { %v2783_v23 = vadd.f32 %v2434_v5, %v2433_v21  ;;  %v2405_v2 = vmul.f32 %v7312_v27, %v10775_v3  ;;  %v2667_v57 = vadd.f32 %v2666_v46, %v2351_v20  ;;  %v10777_v18 = vunpack.c.h.bf16 %v10774_v31  ;;  %v7769_v11 = vld [vmem:[%s9936_s4 + $0x220] sm:$0x11]  ;;  %v10781_v21 = vld [vmem:[#allocation74_spill] sm:$0xff] }
 0x2f4   : > { %v2436_v0 = vmul.f32 %v7325_v9, %v10776_v49  ;;  %v10779_v34 = vunpack.c.l.bf16 %v10778_v55  ;;  %v10780_v46 = vunpack.c.h.bf16 %v10778_v55  ;;  %v10782_v5 = vunpack.c.l.bf16 %v10781_v21  ;;  %2708 = vadd.xlane.f32.xlu1 %v2707_v16 }
 0x2f5   : > { %v2406_v63 = vmul.f32 %v7320_v25, %v10777_v18  ;;  %v2784_v8 = vadd.f32 %v2783_v23, %v2435_v12  ;;  %v10783_v49 = vunpack.c.h.bf16 %v10781_v21  ;;  %v2668_v32 = vadd.f32 %v2667_v57, %v2352_v28 }
 0x2f6   : > { %v2407_v48 = vmul.f32 %v7314_v22, %v10779_v34  ;;  %v2408_v20 = vmul.f32 %v7325_v9, %v10780_v46  ;;  %v2489_v3 = vmul.f32 %v7312_v27, %v10782_v5  ;;  %v10785_v31 = vunpack.c.l.bf16 %v10784_v6 }
 0x2f7   : > { %v2490_v18 = vmul.f32 %v7320_v25, %v10783_v49  ;;  %v2744_v34 = vadd.f32 %v2406_v63, %v2405_v2  ;;  %v10787_v23 = vunpack.c.l.bf16 %v10786_v15  ;;  %v2785_v46 = vadd.f32 %v2784_v8, %v2436_v0  ;;  %v7802_v0 = vld [vmem:[%s9936_s4 + $0x228] sm:$0x11]  ;;  %2669 = vadd.xlane.f32.xlu0 %v2668_v32 }
 0x2f8   : > { %v2491_v4 = vmul.f32 %v7314_v22, %v10785_v31  ;;  %v10788_v5 = vunpack.c.h.bf16 %v10786_v15  ;;  %v10789_v2 = vunpack.c.h.bf16 %v10784_v6  ;;  %v10790_v31 = vld [vmem:[#allocation77_spill] sm:$0xff]  ;;  %10794 = vst [vmem:[#allocation133_spill] sm:$0xff] %v7802_v0  ;;  %v10799_v15 = vld [vmem:[#allocation78_spill] sm:$0xff] }
 0x2f9   : > { %v2461_v12 = vmul.f32 %v7312_v27, %v10787_v23  ;;  %v2861_v55 = vadd.f32 %v2490_v18, %v2489_v3  ;;  %v2745_v28 = vadd.f32 %v2744_v34, %v2407_v48  ;;  %v10791_v63 = vunpack.c.l.bf16 %v10790_v31  ;;  %v10792_v23 = vld [vmem:[#allocation80_spill] sm:$0xff]  ;;  %2786 = vadd.xlane.f32.xlu1 %v2785_v46 }
 0x2fa   : > { %v2462_v21 = vmul.f32 %v7320_v25, %v10788_v5  ;;  %v2492_v57 = vmul.f32 %v7325_v9, %v10789_v2  ;;  %v10793_v52 = vunpack.c.l.bf16 %v10792_v23  ;;  %v10795_v48 = vunpack.c.h.bf16 %v10790_v31 }
 0x2fb   : > { %v2463_v37 = vmul.f32 %v7314_v22, %v10791_v63  ;;  %v2862_v8 = vadd.f32 %v2861_v55, %v2491_v4  ;;  %v10796_v34 = vunpack.c.h.bf16 %v10792_v23  ;;  %v2746_v2 = vadd.f32 %v2745_v28, %v2408_v20  ;;  %v10797_v63 = vld [vmem:[#allocation81_spill] sm:$0xff] }
 0x2fc   : > { %v2297_v39 = vmul.f32 %v7366_v24, %v10793_v52  ;;  %v2464_v3 = vmul.f32 %v7325_v9, %v10795_v48  ;;  %v2822_v18 = vadd.f32 %v2462_v21, %v2461_v12  ;;  %v10798_v49 = vunpack.c.l.bf16 %v10797_v63 }
 0x2fd   : > { %v2298_v5 = vmul.f32 %v7376_v26, %v10796_v34  ;;  %v10800_v6 = vunpack.c.l.bf16 %v10799_v15  ;;  %v10801_v4 = vunpack.c.h.bf16 %v10799_v15  ;;  %v2863_v21 = vadd.f32 %v2862_v8, %v2492_v57  ;;  %2747 = vadd.xlane.f32.xlu0 %v2746_v2  ;;  %v7885_v2 = vld [vmem:[%s9936_s4 + $0x300] sm:$0x11] }
 0x2fe   : > { %v2299_v52 = vmul.f32 %v7368_v30, %v10798_v49  ;;  %v2823_v12 = vadd.f32 %v2822_v18, %v2463_v37  ;;  %v10802_v20 = vunpack.c.h.bf16 %v10797_v63  ;;  %v10803_v49 = vld [vmem:[#allocation79_spill] sm:$0xff]  ;;  %10832 = vst [vmem:[#allocation134_spill] sm:$0xff] %v7885_v2 }
 0x2ff   : > { %v2517_v41 = vmul.f32 %v7312_v27, %v10800_v6  ;;  %v2518_v55 = vmul.f32 %v7320_v25, %v10801_v4  ;;  %v2593_v48 = vadd.f32 %v2298_v5, %v2297_v39  ;;  %v10804_v23 = vunpack.c.l.bf16 %v10803_v49  ;;  %v10805_v6 = vld [vmem:[#allocation82_spill] sm:$0xff]  ;;  %v10809_v5 = vld [vmem:[#allocation83_spill] sm:$0xff]  ;;  %2864 = vadd.xlane.f32.xlu1 %v2863_v21 }
 0x300   : > { %v2300_v28 = vmul.f32 %v7378_v29, %v10802_v20  ;;  %v10806_v15 = vunpack.c.l.bf16 %v10805_v6  ;;  %v2824_v54 = vadd.f32 %v2823_v12, %v2464_v3  ;;  %v10807_v37 = vunpack.c.h.bf16 %v10803_v49 }
 0x301   : > { %v2519_v31 = vmul.f32 %v7314_v22, %v10804_v23  ;;  %v2900_v27 = vadd.f32 %v2518_v55, %v2517_v41  ;;  %v2594_v16 = vadd.f32 %v2593_v48, %v2299_v52  ;;  %v10808_v39 = vunpack.c.h.bf16 %v10805_v6  ;;  %v10811_v41 = vld [vmem:[#allocation84_spill] sm:$0xff] }
 0x302   : > { %v2353_v25 = vmul.f32 %v7366_v24, %v10806_v15  ;;  %v2520_v57 = vmul.f32 %v7325_v9, %v10807_v37  ;;  %v10810_v4 = vunpack.c.l.bf16 %v10809_v5  ;;  %v10812_v23 = vunpack.c.l.bf16 %v10811_v41  ;;  %2825 = vadd.xlane.f32.xlu0 %v2824_v54 }
 0x303   : > { %v2354_v8 = vmul.f32 %v7376_v26, %v10808_v39  ;;  %v2901_v18 = vadd.f32 %v2900_v27, %v2519_v31  ;;  %v10813_v15 = vunpack.c.h.bf16 %v10811_v41  ;;  %v2595_v9 = vadd.f32 %v2594_v16, %v2300_v28  ;;  %v10815_v27 = vld [vmem:[#allocation85_spill] sm:$0xff] }
 0x304   : > { %v2355_v22 = vmul.f32 %v7368_v30, %v10810_v4  ;;  %v2409_v55 = vmul.f32 %v7366_v24, %v10812_v23  ;;  %v10814_v52 = vunpack.c.h.bf16 %v10809_v5  ;;  %v10816_v37 = vunpack.c.l.bf16 %v10815_v27  ;;  %v10817_v23 = vld [vmem:[#allocation86_spill] sm:$0xff]  ;;  %v10827_v5 = vld [vmem:[#allocation89_spill] sm:$0xff] }
 0x305   : > { %v2410_v3 = vmul.f32 %v7376_v26, %v10813_v15  ;;  %v2671_v31 = vadd.f32 %v2354_v8, %v2353_v25  ;;  %v2902_v20 = vadd.f32 %v2901_v18, %v2520_v57  ;;  %v10818_v34 = vunpack.c.l.bf16 %v10817_v23  ;;  %v10821_v8 = vld [vmem:[#allocation87_spill] sm:$0xff]  ;;  %2596 = vadd.xlane.f32.xlu1 %v2595_v9 }
 0x306   : > { %v2356_v12 = vmul.f32 %v7378_v29, %v10814_v52  ;;  %v2411_v39 = vmul.f32 %v7368_v30, %v10816_v37  ;;  %v10819_v46 = vunpack.c.h.bf16 %v10815_v27  ;;  %v10820_v16 = vunpack.c.h.bf16 %v10817_v23  ;;  %v10824_v37 = vld [vmem:[#allocation88_spill] sm:$0xff]  ;;  %v10842_v27 = vld [vmem:[#allocation94_spill] sm:$0xff] }
 0x307   : > { %v2749_v4 = vadd.f32 %v2410_v3, %v2409_v55  ;;  %v2269_v15 = vmul.f32 %v7366_v24, %v10818_v34  ;;  %v2672_v32 = vadd.f32 %v2671_v31, %v2355_v22  ;;  %v10822_v57 = vunpack.c.l.bf16 %v10821_v8  ;;  %2903 = vadd.xlane.f32.xlu0 %v2902_v20 }
 0x308   : > { %v2412_v28 = vmul.f32 %v7378_v29, %v10819_v46  ;;  %v2270_v25 = vmul.f32 %v7376_v26, %v10820_v16  ;;  %v10823_v55 = vunpack.c.h.bf16 %v10821_v8  ;;  %v10825_v34 = vunpack.c.l.bf16 %v10824_v37  ;;  %v10829_v8 = vld [vmem:[#allocation90_spill] sm:$0xff] }
 0x309   : > { %v2271_v18 = vmul.f32 %v7368_v30, %v10822_v57  ;;  %v2750_v52 = vadd.f32 %v2749_v4, %v2411_v39  ;;  %v10826_v31 = vunpack.c.h.bf16 %v10824_v37  ;;  %v2673_v16 = vadd.f32 %v2672_v32, %v2356_v12 }
 0x30a   : > { %v2272_v3 = vmul.f32 %v7378_v29, %v10823_v55  ;;  %v2465_v22 = vmul.f32 %v7366_v24, %v10825_v34  ;;  %v2553_v48 = vadd.f32 %v2270_v25, %v2269_v15  ;;  %v10828_v6 = vunpack.c.l.bf16 %v10827_v5  ;;  %v10834_v15 = vld [vmem:[#allocation91_spill] sm:$0xff]  ;;  %v10836_v25 = vld [vmem:[#allocation92_spill] sm:$0xff] }
 0x30b   : > { %v2466_v46 = vmul.f32 %v7376_v26, %v10826_v31  ;;  %v2751_v57 = vadd.f32 %v2750_v52, %v2412_v28  ;;  %v10830_v23 = vunpack.c.l.bf16 %v10829_v8  ;;  %v10831_v37 = vunpack.c.h.bf16 %v10829_v8  ;;  %2674 = vadd.xlane.f32.xlu1 %v2673_v16 }
 0x30c   : > { %v2467_v39 = vmul.f32 %v7368_v30, %v10828_v6  ;;  %v2554_v21 = vadd.f32 %v2553_v48, %v2271_v18  ;;  %v10833_v6 = vunpack.c.h.bf16 %v10827_v5  ;;  %v10835_v32 = vunpack.c.l.bf16 %v10834_v15  ;;  %v10840_v5 = vld [vmem:[#allocation93_spill] sm:$0xff] }
 0x30d   : > { %v2827_v55 = vadd.f32 %v2466_v46, %v2465_v22  ;;  %v2325_v34 = vmul.f32 %v7366_v24, %v10830_v23  ;;  %v2326_v31 = vmul.f32 %v7376_v26, %v10831_v37  ;;  %v10837_v23 = vunpack.c.l.bf16 %v10836_v25 }
 0x30e   : > { %v2468_v12 = vmul.f32 %v7378_v29, %v10833_v6  ;;  %v2327_v28 = vmul.f32 %v7368_v30, %v10835_v32  ;;  %v10838_v37 = vunpack.c.h.bf16 %v10834_v15  ;;  %v10839_v48 = vunpack.c.h.bf16 %v10836_v25  ;;  %v10848_v25 = vld [vmem:[#allocation96_spill] sm:$0xff] }
 0x30f   : > { %v2521_v52 = vmul.f32 %v7366_v24, %v10837_v23  ;;  %v2828_v22 = vadd.f32 %v2827_v55, %v2467_v39  ;;  %v2632_v4 = vadd.f32 %v2326_v31, %v2325_v34  ;;  %v2555_v6 = vadd.f32 %v2554_v21, %v2272_v3  ;;  %v10846_v3 = vld [vmem:[#allocation95_spill] sm:$0xff]  ;;  %2752 = vadd.xlane.f32.xlu1 %v2751_v57 }
 0x310   : > { %v2328_v46 = vmul.f32 %v7378_v29, %v10838_v37  ;;  %v2522_v18 = vmul.f32 %v7376_v26, %v10839_v48  ;;  %v10841_v8 = vunpack.c.l.bf16 %v10840_v5  ;;  %v10843_v41 = vunpack.c.l.bf16 %v10842_v27 }
 0x311   : > { %v2829_v23 = vadd.f32 %v2828_v22, %v2468_v12  ;;  %v2633_v37 = vadd.f32 %v2632_v4, %v2327_v28  ;;  %v10844_v31 = vunpack.c.h.bf16 %v10842_v27  ;;  %v10845_v54 = vunpack.c.h.bf16 %v10840_v5  ;;  %v10854_v27 = vld [vmem:[#allocation100_spill] sm:$0xff]  ;;  %2556 = vadd.xlane.f32.xlu0 %v2555_v6 }
 0x312   : > { %v2523_v32 = vmul.f32 %v7368_v30, %v10841_v8  ;;  %v2381_v39 = vmul.f32 %v7366_v24, %v10843_v41  ;;  %v2905_v34 = vadd.f32 %v2522_v18, %v2521_v52  ;;  %v10847_v21 = vunpack.c.l.bf16 %v10846_v3 }
 0x313   : > { %v2382_v48 = vmul.f32 %v7376_v26, %v10844_v31  ;;  %v2524_v9 = vmul.f32 %v7378_v29, %v10845_v54  ;;  %v10849_v15 = vunpack.c.l.bf16 %v10848_v25  ;;  %v10850_v12 = vunpack.c.h.bf16 %v10848_v25  ;;  %v10852_v54 = vld [vmem:[#allocation97_spill] sm:$0xff]  ;;  %2830 = vadd.xlane.f32.xlu1 %v2829_v23  ;;  %v10885_v23 = vld [vmem:[#allocation108_spill] sm:$0xff] }
 0x314   : > { %v2383_v8 = vmul.f32 %v7368_v30, %v10847_v21  ;;  %v2634_v28 = vadd.f32 %v2633_v37, %v2328_v46  ;;  %v2906_v52 = vadd.f32 %v2905_v34, %v2523_v32  ;;  %v10851_v22 = vunpack.c.h.bf16 %v10846_v3  ;;  %v10867_v3 = vld [vmem:[#allocation102_spill] sm:$0xff] }
 0x315   : > { %v2437_v41 = vmul.f32 %v7366_v24, %v10849_v15  ;;  %v2438_v4 = vmul.f32 %v7376_v26, %v10850_v12  ;;  %v2710_v31 = vadd.f32 %v2382_v48, %v2381_v39  ;;  %v10853_v55 = vunpack.c.l.bf16 %v10852_v54  ;;  %v7943_v39 = vld [vmem:[%s9936_s4 + $0x308] sm:$0x11] }
 0x316   : > { %v2384_v18 = vmul.f32 %v7378_v29, %v10851_v22  ;;  %v10855_v15 = vunpack.c.l.bf16 %v10854_v27  ;;  %v2907_v46 = vadd.f32 %v2906_v52, %v2524_v9  ;;  %v10856_v37 = vunpack.c.h.bf16 %v10852_v54  ;;  %10858 = vst [vmem:[#allocation135_spill] sm:$0xff] %v7943_v39  ;;  %v10859_v48 = vld [vmem:[#allocation101_spill] sm:$0xff]  ;;  %v10861_v9 = vld [vmem:[#allocation98_spill] sm:$0xff]  ;;  %2635 = vadd.xlane.f32.xlu0 %v2634_v28 }
 0x317   : > { %v2439_v21 = vmul.f32 %v7368_v30, %v10853_v55  ;;  %v2788_v5 = vadd.f32 %v2438_v4, %v2437_v41  ;;  %v2711_v32 = vadd.f32 %v2710_v31, %v2383_v8  ;;  %v10857_v20 = vunpack.c.h.bf16 %v10854_v27  ;;  %v10865_v27 = vld [vmem:[#allocation99_spill] sm:$0xff] }
 0x318   : > { %v2273_v25 = vmul.f32 %v7389_v35, %v10855_v15  ;;  %v2440_v34 = vmul.f32 %v7378_v29, %v10856_v37  ;;  %v10860_v41 = vunpack.c.l.bf16 %v10859_v48  ;;  %v10862_v8 = vunpack.c.l.bf16 %v10861_v9  ;;  %2908 = vadd.xlane.f32.xlu1 %v2907_v46 }
 0x319   : > { %v2274_v16 = vmul.f32 %v7394_v50, %v10857_v20  ;;  %v2789_v55 = vadd.f32 %v2788_v5, %v2439_v21  ;;  %v10863_v22 = vunpack.c.h.bf16 %v10861_v9  ;;  %v2712_v15 = vadd.f32 %v2711_v32, %v2384_v18 }
 0x31a   : > { %v2275_v4 = vmul.f32 %v7391_v40, %v10860_v41  ;;  %v2493_v52 = vmul.f32 %v7366_v24, %v10862_v8  ;;  %v10864_v37 = vunpack.c.h.bf16 %v10859_v48  ;;  %v10866_v5 = vunpack.c.l.bf16 %v10865_v27 }
 0x31b   : > { %v2494_v31 = vmul.f32 %v7376_v26, %v10863_v22  ;;  %v2558_v12 = vadd.f32 %v2274_v16, %v2273_v25  ;;  %v2790_v41 = vadd.f32 %v2789_v55, %v2440_v34  ;;  %v10868_v24 = vunpack.c.l.bf16 %v10867_v3  ;;  %2713 = vadd.xlane.f32.xlu0 %v2712_v15  ;;  %v10898_v15 = vld [vmem:[#allocation112_spill] sm:$0xff] }
 0x31c   : > { %v2276_v20 = vmul.f32 %v7399_v17, %v10864_v37  ;;  %v2495_v21 = vmul.f32 %v7368_v30, %v10866_v5  ;;  %v10869_v32 = vunpack.c.h.bf16 %v10865_v27  ;;  %v10870_v25 = vunpack.c.h.bf16 %v10867_v3  ;;  %v10871_v30 = vld [vmem:[#allocation103_spill] sm:$0xff] }
 0x31d   : > { %v2866_v54 = vadd.f32 %v2494_v31, %v2493_v52  ;;  %v2329_v8 = vmul.f32 %v7389_v35, %v10868_v24  ;;  %v2559_v18 = vadd.f32 %v2558_v12, %v2275_v4  ;;  %v10872_v57 = vunpack.c.l.bf16 %v10871_v30  ;;  %v10874_v31 = vld [vmem:[#allocation104_spill] sm:$0xff]  ;;  %v10896_v27 = vld [vmem:[#allocation111_spill] sm:$0xff] }
 0x31e   : > { %v2496_v22 = vmul.f32 %v7378_v29, %v10869_v32  ;;  %v2330_v16 = vmul.f32 %v7394_v50, %v10870_v25  ;;  %v10873_v55 = vunpack.c.h.bf16 %v10871_v30  ;;  %v10875_v37 = vunpack.c.l.bf16 %v10874_v31  ;;  %v10877_v32 = vld [vmem:[#allocation105_spill] sm:$0xff] }
 0x31f   : > { %v2331_v6 = vmul.f32 %v7391_v40, %v10872_v57  ;;  %v2867_v34 = vadd.f32 %v2866_v54, %v2495_v21  ;;  %v10876_v4 = vunpack.c.h.bf16 %v10874_v31  ;;  %v2560_v5 = vadd.f32 %v2559_v18, %v2276_v20  ;;  %v10879_v57 = vld [vmem:[#allocation106_spill] sm:$0xff]  ;;  %v8016_v20 = vpop.f32.mrb[116].mxu1  ;;  %2791 = vadd.xlane.f32.xlu0 %v2790_v41 }
 0x320   : > { %v2332_v52 = vmul.f32 %v7399_v17, %v10873_v55  ;;  %v2301_v12 = vmul.f32 %v7389_v35, %v10875_v37  ;;  %v2637_v24 = vadd.f32 %v2330_v16, %v2329_v8  ;;  %v10878_v25 = vunpack.c.l.bf16 %v10877_v32 }
 0x321   : > { %v2302_v29 = vmul.f32 %v7394_v50, %v10876_v4  ;;  %v10880_v54 = vunpack.c.l.bf16 %v10879_v57  ;;  %v7988_v55 = vadd.f32 %v2867_v34, %v2496_v22  ;;  %v10881_v37 = vunpack.c.h.bf16 %v10879_v57  ;;  %v10883_v4 = vld [vmem:[#allocation107_spill] sm:$0xff]  ;;  %v10890_v57 = vld [vmem:[#allocation109_spill] sm:$0xff]  ;;  %2561 = vadd.xlane.f32.xlu1 %v2560_v5 }
 0x322   : > { %v2303_v26 = vmul.f32 %v7391_v40, %v10878_v25  ;;  %v2638_v8 = vadd.f32 %v2637_v24, %v2331_v6  ;;  %v10882_v18 = vunpack.c.h.bf16 %v10877_v32  ;;  %v10884_v25 = vunpack.c.l.bf16 %v10883_v4  ;;  %v8006_v34 = vld [vmem:[%s9936_s4 + $0x450] sm:$0x11]  ;;  %v8081_v5 = vld [vmem:[%s9936_s4 + $0x458] sm:$0x11] }
 0x323   : > { %v2385_v21 = vmul.f32 %v7389_v35, %v10880_v54  ;;  %v2598_v48 = vadd.f32 %v2302_v29, %v2301_v12  ;;  %v2386_v30 = vmul.f32 %v7394_v50, %v10881_v37  ;;  %v10886_v28 = vunpack.c.l.bf16 %v10885_v23  ;;  %10887 = vst [vmem:[#allocation136_spill] sm:$0xff] %v8006_v34  ;;  %10912 = vst [vmem:[#allocation137_spill] sm:$0xff] %v8081_v5 }
 0x324   : > { %v2304_v16 = vmul.f32 %v7399_v17, %v10882_v18  ;;  %v2387_v54 = vmul.f32 %v7391_v40, %v10884_v25  ;;  %v10888_v6 = vunpack.c.h.bf16 %v10883_v4  ;;  %v10889_v37 = vunpack.c.h.bf16 %v10885_v23  ;;  %v8014_v25 = vpop.f32.mrb[116].mxu0  ;;  %2869 = vadd.xlane.f32.xlu0 %v7988_v55  ;;  %v10934_v55 = vld [vmem:[#allocation119_spill] sm:$0xff] }
 0x325   : > { %v2357_v22 = vmul.f32 %v7389_v35, %v10886_v28  ;;  %v2599_v12 = vadd.f32 %v2598_v48, %v2303_v26  ;;  %v2715_v24 = vadd.f32 %v2386_v30, %v2385_v21  ;;  %v2639_v28 = vadd.f32 %v2638_v8, %v2332_v52  ;;  %v10892_v48 = vld [vmem:[#allocation110_spill] sm:$0xff] }
 0x326   : > { %v2388_v29 = vmul.f32 %v7399_v17, %v10888_v6  ;;  %v2358_v18 = vmul.f32 %v7394_v50, %v10889_v37  ;;  %v10891_v3 = vunpack.c.l.bf16 %v10890_v57  ;;  %v10893_v26 = vunpack.c.l.bf16 %v10892_v48  ;;  %v8027_v6 = vpop.f32.mrb[117].mxu0  ;;  %v8029_v37 = vpop.f32.mrb[117].mxu1 }
 0x327   : > { %v10894_v30 = vunpack.c.h.bf16 %v10892_v48  ;;  %v8031_v23 = vadd.f32 %v2599_v12, %v2304_v16  ;;  %v2716_v52 = vadd.f32 %v2715_v24, %v2387_v54  ;;  %v8033_v31 = vpop.f32.mrb[118].mxu0  ;;  %v10895_v48 = vunpack.c.h.bf16 %v10890_v57  ;;  %2640 = vadd.xlane.f32.xlu1 %v2639_v28 }
 0x328   : > { %v2359_v32 = vmul.f32 %v7391_v40, %v10891_v3  ;;  %v2441_v4 = vmul.f32 %v7389_v35, %v10893_v26  ;;  %v2676_v8 = vadd.f32 %v2358_v18, %v2357_v22  ;;  %v8035_v3 = vpop.f32.mrb[118].mxu1  ;;  %v10897_v9 = vunpack.c.l.bf16 %v10896_v27  ;;  %v8047_v22 = vpop.f32.mrb[119].mxu0 }
 0x329   : > { %v2442_v21 = vmul.f32 %v7394_v50, %v10894_v30  ;;  %v2360_v30 = vmul.f32 %v7399_v17, %v10895_v48  ;;  %v10899_v16 = vunpack.c.l.bf16 %v10898_v15  ;;  %v8049_v12 = vpop.f32.mrb[119].mxu1  ;;  %v2717_v24 = vadd.f32 %v2716_v52, %v2388_v29  ;;  %2601 = vadd.xlane.f32.xlu0 %v8031_v23 }
 0x32a   : > { %v2443_v49 = vmul.f32 %v7391_v40, %v10897_v9  ;;  %v2677_v18 = vadd.f32 %v2676_v8, %v2359_v32  ;;  %v10900_v26 = vunpack.c.h.bf16 %v10896_v27  ;;  %v10901_v48 = vunpack.c.h.bf16 %v10898_v15 }
 0x32b   : > { %v2793_v46 = vadd.f32 %v2442_v21, %v2441_v4  ;;  %v2413_v54 = vmul.f32 %v7389_v35, %v10899_v16  ;;  %v10902_v4 = vld [vmem:[#allocation113_spill] sm:$0xff]  ;;  %v10904_v16 = vld [vmem:[#allocation114_spill] sm:$0xff]  ;;  %2718 = vadd.xlane.f32.xlu1 %v2717_v24 }
 0x32c   : > { %v2444_v57 = vmul.f32 %v7399_v17, %v10900_v26  ;;  %v2414_v63 = vmul.f32 %v7394_v50, %v10901_v48  ;;  %v10903_v21 = vunpack.c.l.bf16 %v10902_v4  ;;  %v10905_v13 = vunpack.c.l.bf16 %v10904_v16 }
 0x32d   : > { %v2794_v9 = vadd.f32 %v2793_v46, %v2443_v49  ;;  %v10906_v29 = vunpack.c.h.bf16 %v10904_v16  ;;  %v8066_v52 = vadd.f32 %v2677_v18, %v2360_v30  ;;  %v10907_v8 = vunpack.c.h.bf16 %v10902_v4  ;;  %v10910_v16 = vld [vmem:[#allocation116_spill] sm:$0xff] }
 0x32e   : > { %v2415_v56 = vmul.f32 %v7391_v40, %v10903_v21  ;;  %v2497_v51 = vmul.f32 %v7389_v35, %v10905_v13  ;;  %v2754_v26 = vadd.f32 %v2414_v63, %v2413_v54  ;;  %v10908_v21 = vld [vmem:[#allocation115_spill] sm:$0xff]  ;;  %v10911_v33 = vunpack.c.l.bf16 %v10910_v16 }
 0x32f   : > { %v2498_v32 = vmul.f32 %v7394_v50, %v10906_v29  ;;  %v2416_v49 = vmul.f32 %v7399_v17, %v10907_v8  ;;  %v2795_v48 = vadd.f32 %v2794_v9, %v2444_v57  ;;  %v10909_v15 = vunpack.c.l.bf16 %v10908_v21  ;;  %v8092_v29 = vpop.f32.mrb[120].mxu0  ;;  %v10919_v8 = vld [vmem:[#allocation120_spill] sm:$0xff]  ;;  %2679 = vadd.xlane.f32.xlu0 %v8066_v52 }
 0x330   : > { %v2469_v41 = vmul.f32 %v7389_v35, %v10911_v33  ;;  %v2755_v30 = vadd.f32 %v2754_v26, %v2415_v56  ;;  %v10913_v63 = vunpack.c.h.bf16 %v10908_v21  ;;  %v10914_v57 = vunpack.c.h.bf16 %v10910_v16  ;;  %10917 = vst [vmem:[#allocation138_spill] sm:$0xff] %v8092_v29  ;;  %v8094_v33 = vpop.f32.mrb[120].mxu1  ;;  %v10922_v16 = vld [vmem:[#allocation121_spill] sm:$0xff]  ;;  %v8105_v21 = vpop.f32.mrb[121].mxu0 }
 0x331   : > { %v2499_v13 = vmul.f32 %v7391_v40, %v10909_v15  ;;  %v2871_v27 = vadd.f32 %v2498_v32, %v2497_v51  ;;  %v10915_v15 = vld [vmem:[#allocation117_spill] sm:$0xff]  ;;  %10918 = vst [vmem:[#allocation139_spill] sm:$0xff] %v8094_v33  ;;  %v10920_v46 = vunpack.c.l.bf16 %v10919_v8  ;;  %v10921_v26 = vunpack.c.h.bf16 %v10919_v8  ;;  %10924 = vst [vmem:[#allocation140_spill] sm:$0xff] %v8105_v21  ;;  %v8116_v33 = vpop.f32.mrb[122].mxu0  ;;  %2796 = vadd.xlane.f32.xlu1 %v2795_v48 }
 0x332   : > { %v2500_v54 = vmul.f32 %v7399_v17, %v10913_v63  ;;  %v2470_v18 = vmul.f32 %v7394_v50, %v10914_v57  ;;  %v10916_v51 = vunpack.c.l.bf16 %v10915_v15  ;;  %v10923_v4 = vunpack.c.l.bf16 %v10922_v16  ;;  %v8123_v28 = vpop.f32.mrb[123].mxu0 }
 0x333   : > { %v2872_v32 = vadd.f32 %v2871_v27, %v2499_v13  ;;  %v2305_v56 = vmul.f32 %v7437_v60, %v10920_v46  ;;  %v2306_v63 = vmul.f32 %v7450_v61, %v10921_v26  ;;  %v8110_v27 = vadd.f32 %v2755_v30, %v2416_v49  ;;  %10928 = vst [vmem:[#allocation143_spill] sm:$0xff] %v8123_v28  ;;  %v10931_v26 = vld [vmem:[#allocation118_spill] sm:$0xff] }
 0x334   : > { %v2471_v9 = vmul.f32 %v7391_v40, %v10916_v51  ;;  %v2307_v57 = vmul.f32 %v7439_v1, %v10923_v4  ;;  %v8107_v51 = vpop.f32.mrb[121].mxu1  ;;  %v2832_v13 = vadd.f32 %v2470_v18, %v2469_v41  ;;  %v10926_v46 = vunpack.c.h.bf16 %v10922_v16  ;;  %v10936_v28 = vld [vmem:[#allocation122_spill] sm:$0xff] }
 0x335   : > { %10925 = vst [vmem:[#allocation141_spill] sm:$0xff] %v8107_v51  ;;  %v8118_v29 = vpop.f32.mrb[122].mxu1  ;;  %v2873_v4 = vadd.f32 %v2872_v32, %v2500_v54  ;;  %v2603_v21 = vsel %vm2563_vm5, %v2305_v56, 0.0  ;;  %v2604_v51 = vsel %vm2563_vm5, %v2306_v63, 0.0  ;;  %v10930_v41 = vunpack.c.h.bf16 %v10915_v15  ;;  %2757 = vadd.xlane.f32.xlu0 %v8110_v27 }
 0x336   : > { %v2308_v8 = vmul.f32 %v7455_v19, %v10926_v46  ;;  %10927 = vst [vmem:[#allocation142_spill] sm:$0xff] %v8118_v29  ;;  %v8125_v49 = vpop.f32.mrb[123].mxu1  ;;  %v2833_v18 = vadd.f32 %v2832_v13, %v2471_v9  ;;  %v2605_v46 = vadd.f32 %v2604_v51, %v2603_v21  ;;  %v10932_v16 = vunpack.c.l.bf16 %v10931_v26  ;;  %v10939_v51 = vld [vmem:[#allocation123_spill] sm:$0xff] }
 0x337   : > { %10929 = vst [vmem:[#allocation144_spill] sm:$0xff] %v8125_v49  ;;  %v2472_v30 = vmul.f32 %v7399_v17, %v10930_v41  ;;  %v2606_v32 = vsel %vm2563_vm5, %v2307_v57, 0.0  ;;  %v10933_v56 = vunpack.c.h.bf16 %v10931_v26  ;;  %v10935_v29 = vunpack.c.l.bf16 %v10934_v55  ;;  %2874 = vadd.xlane.f32.xlu1 %v2873_v4 }
 0x338   : > { %v2525_v54 = vmul.f32 %v7389_v35, %v10932_v16  ;;  %v10937_v15 = vunpack.c.l.bf16 %v10936_v28  ;;  %v2607_v35 = vadd.f32 %v2606_v32, %v2605_v46  ;;  %v2608_v16 = vsel %vm2563_vm5, %v2308_v8, 0.0 }
 0x339   : > { %v2526_v63 = vmul.f32 %v7394_v50, %v10933_v56  ;;  %v2527_v49 = vmul.f32 %v7391_v40, %v10935_v29  ;;  %v8144_v21 = vadd.f32 %v2833_v18, %v2472_v30  ;;  %v10938_v9 = vunpack.c.h.bf16 %v10936_v28  ;;  %v10942_v18 = vld [vmem:[#allocation124_spill] sm:$0xff]  ;;  %v8164_v56 = vpop.f32.mrb[124].mxu0 }
 0x33a   : > { %v2361_v41 = vmul.f32 %v7437_v60, %v10937_v15  ;;  %v10940_v13 = vunpack.c.l.bf16 %v10939_v51  ;;  %v10941_v29 = vunpack.c.h.bf16 %v10939_v51  ;;  %v2609_v24 = vadd.f32 %v2608_v16, %v2607_v35 }
 0x33b   : > { %v2362_v50 = vmul.f32 %v7450_v61, %v10938_v9  ;;  %v2910_v57 = vadd.f32 %v2526_v63, %v2525_v54  ;;  %v10943_v8 = vunpack.c.l.bf16 %v10942_v18  ;;  %v10944_v32 = vunpack.c.h.bf16 %v10942_v18  ;;  %v8166_v63 = vpop.f32.mrb[124].mxu1  ;;  %2835 = vadd.xlane.f32.xlu0 %v8144_v21 }
 0x33c   : > { %v2363_v40 = vmul.f32 %v7439_v1, %v10940_v13  ;;  %v2364_v15 = vmul.f32 %v7455_v19, %v10941_v29  ;;  %v2681_v23 = vsel %vm2563_vm5, %v2361_v41, 0.0  ;;  %v10945_v9 = vunpack.c.h.bf16 %v10934_v55  ;;  %v8174_v29 = vpop.f32.mrb[125].mxu1  ;;  %2610 = vadd.xlane.f32.xlu1 %v2609_v24 }
 0x33d   : > { %v2682_v30 = vsel %vm2563_vm5, %v2362_v50, 0.0  ;;  %v2417_v46 = vmul.f32 %v7437_v60, %v10943_v8  ;;  %v2418_v54 = vmul.f32 %v7450_v61, %v10944_v32  ;;  %v2911_v41 = vadd.f32 %v2910_v57, %v2527_v49  ;;  %v8172_v50 = vpop.f32.mrb[125].mxu0  ;;  %v10946_v8 = vld [vmem:[#allocation125_spill] sm:$0xff] }
 0x33e   : > { %v2528_v13 = vmul.f32 %v7399_v17, %v10945_v9  ;;  %v2683_v35 = vadd.f32 %v2682_v30, %v2681_v23  ;;  %v2684_v16 = vsel %vm2563_vm5, %v2363_v40, 0.0  ;;  %v10947_v32 = vunpack.c.l.bf16 %v10946_v8  ;;  %v8185_v57 = vpop.f32.mrb[126].mxu0  ;;  %v8187_v40 = vpop.f32.mrb[126].mxu1 }
 0x33f   : > { %v10948_v26 = vunpack.c.h.bf16 %v10946_v8  ;;  %v2759_v17 = vsel %vm2563_vm5, %v2417_v46, 0.0  ;;  %v2760_v49 = vsel %vm2563_vm5, %v2418_v54, 0.0  ;;  %v10949_v48 = vunpack.c.l.bf16 %v7208_v36  ;;  %v8194_v8 = vpop.f32.mrb[127].mxu1 }
 0x340   : > { %v2419_v18 = vmul.f32 %v7439_v1, %v10947_v32  ;;  %v2912_v23 = vadd.f32 %v2911_v41, %v2528_v13  ;;  %v2685_v30 = vadd.f32 %v2684_v16, %v2683_v35  ;;  %v2761_v52 = vadd.f32 %v2760_v49, %v2759_v17  ;;  %v8192_v32 = vpop.f32.mrb[127].mxu0 }
 0x341   : > { %v2420_v55 = vmul.f32 %v7455_v19, %v10948_v26  ;;  %v2277_v9 = vmul.f32 %v7437_v60, %v10949_v48  ;;  %v2686_v26 = vsel %vm2563_vm5, %v2364_v15, 0.0  ;;  %v10950_v54 = vunpack.c.h.bf16 %v7208_v36 }
 0x342   : > { %v2762_v46 = vsel %vm2563_vm5, %v2419_v18, 0.0  ;;  %v10951_v13 = vunpack.c.l.bf16 %v7336_v7  ;;  %v2687_v35 = vadd.f32 %v2686_v26, %v2685_v30  ;;  %v10952_v17 = vunpack.c.h.bf16 %v7336_v7  ;;  %2913 = vadd.xlane.f32.xlu0 %v2912_v23 }
 0x343   : > { %v2278_v51 = vmul.f32 %v7450_v61, %v10950_v54  ;;  %v2763_v16 = vadd.f32 %v2762_v46, %v2761_v52  ;;  %v2564_v48 = vsel %vm2563_vm5, %v2277_v9, 0.0  ;;  %v2764_v15 = vsel %vm2563_vm5, %v2420_v55, 0.0 }
 0x344   : > { %v2279_v41 = vmul.f32 %v7439_v1, %v10951_v13  ;;  %v2280_v49 = vmul.f32 %v7455_v19, %v10952_v17  ;;  %v10953_v54 = vunpack.c.l.bf16 %v7410_v38  ;;  %v10954_v30 = vunpack.c.h.bf16 %v7410_v38  ;;  %2688 = vadd.xlane.f32.xlu1 %v2687_v35 }
 0x345   : > { %v2565_v18 = vsel %vm2563_vm5, %v2278_v51, 0.0  ;;  %v2765_v26 = vadd.f32 %v2764_v15, %v2763_v16  ;;  %v10955_v9 = vunpack.c.l.bf16 %v7476_v47  ;;  %v10956_v4 = vunpack.c.h.bf16 %v7476_v47  ;;  %v8229_v16 = vpop.f32.mrb[128].mxu0 }
 0x346   : > { %v2473_v28 = vmul.f32 %v7437_v60, %v10953_v54  ;;  %v2474_v52 = vmul.f32 %v7450_v61, %v10954_v30  ;;  %v2566_v46 = vadd.f32 %v2565_v18, %v2564_v48  ;;  %v2567_v13 = vsel %vm2563_vm5, %v2279_v41, 0.0  ;;  %v8231_v48 = vpop.f32.mrb[128].mxu1  ;;  %v8237_v47 = vpop.f32.mrb[129].mxu0 }
 0x347   : > { %v2475_v27 = vmul.f32 %v7439_v1, %v10955_v9  ;;  %v2476_v55 = vmul.f32 %v7455_v19, %v10956_v4  ;;  %v10957_v54 = vunpack.c.l.bf16 %v7534_v14  ;;  %10958 = vst [vmem:[#allocation145_spill] sm:$0xff] %v8231_v48  ;;  %v2569_v15 = vsel %vm2563_vm5, %v2280_v49, 0.0 }
 0x348   : > { %v2837_v51 = vsel %vm2563_vm5, %v2473_v28, 0.0  ;;  %v2838_v17 = vsel %vm2563_vm5, %v2474_v52, 0.0  ;;  %v2568_v41 = vadd.f32 %v2567_v13, %v2566_v46  ;;  %v10959_v9 = vunpack.c.h.bf16 %v7534_v14  ;;  %v8239_v28 = vpop.f32.mrb[129].mxu1  ;;  %2766 = vadd.xlane.f32.xlu1 %v2765_v26  ;;  %v10975_v26 = vld [vmem:[#allocation6_spill] sm:$0xff] }
 0x349   : > { %v2333_v30 = vmul.f32 %v7437_v60, %v10957_v54  ;;  %v2839_v18 = vadd.f32 %v2838_v17, %v2837_v51  ;;  %10960 = vst [vmem:[#allocation146_spill] sm:$0xff] %v8239_v28  ;;  %v2840_v52 = vsel %vm2563_vm5, %v2475_v27, 0.0  ;;  %v10961_v54 = vunpack.c.l.bf16 %v7567_v59  ;;  %v3609_v17 = vpop.f32.mrb[130].mxu0 }
 0x34a   : > { %v2334_v4 = vmul.f32 %v7450_v61, %v10959_v9  ;;  %v10962_v49 = vunpack.c.h.bf16 %v7567_v59  ;;  %v3751_v9 = vpop.f32.mrb[130].mxu1  ;;  %v2570_v38 = vadd.f32 %v2569_v15, %v2568_v41  ;;  %v10963_v21 = vunpack.c.l.bf16 %v7650_v62  ;;  %v3610_v27 = vpop.f32.mrb[131].mxu0 }
 0x34b   : > { %v2335_v46 = vmul.f32 %v7439_v1, %v10961_v54  ;;  %v2642_v51 = vsel %vm2563_vm5, %v2333_v30, 0.0  ;;  %v2841_v14 = vadd.f32 %v2840_v52, %v2839_v18  ;;  %v3752_v48 = vpop.f32.mrb[131].mxu1  ;;  %v2842_v54 = vsel %vm2563_vm5, %v2476_v55, 0.0 }
 0x34c   : > { %v2336_v13 = vmul.f32 %v7455_v19, %v10962_v49  ;;  %v2643_v28 = vsel %vm2563_vm5, %v2334_v4, 0.0  ;;  %v2501_v24 = vmul.f32 %v7437_v60, %v10963_v21  ;;  %v10964_v49 = vunpack.c.h.bf16 %v7650_v62  ;;  %2571 = vadd.xlane.f32.xlu0 %v2570_v38 }
 0x34d   : > { %v2644_v7 = vadd.f32 %v2643_v28, %v2642_v51  ;;  %v2645_v59 = vsel %vm2563_vm5, %v2335_v46, 0.0  ;;  %v2843_v17 = vadd.f32 %v2842_v54, %v2841_v14  ;;  %v10965_v41 = vunpack.c.l.bf16 %v7683_v10 }
 0x34e   : > { %v2502_v30 = vmul.f32 %v7450_v61, %v10964_v49  ;;  %v10966_v18 = vunpack.c.h.bf16 %v7683_v10  ;;  %v2876_v48 = vsel %vm2563_vm5, %v2501_v24, 0.0  ;;  %v10967_v52 = vunpack.c.l.bf16 %v7769_v11 }
 0x34f   : > { %v2503_v15 = vmul.f32 %v7439_v1, %v10965_v41  ;;  %v2646_v55 = vadd.f32 %v2645_v59, %v2644_v7  ;;  %v10968_v14 = vunpack.c.h.bf16 %v7769_v11  ;;  %v2647_v9 = vsel %vm2563_vm5, %v2336_v13, 0.0  ;;  %2844 = vadd.xlane.f32.xlu1 %v2843_v17 }
 0x350   : > { %v2504_v4 = vmul.f32 %v7455_v19, %v10966_v18  ;;  %v2877_v28 = vsel %vm2563_vm5, %v2502_v30, 0.0  ;;  %v2389_v46 = vmul.f32 %v7437_v60, %v10967_v52  ;;  %v10969_v24 = vunpack.c.l.bf16 %v7802_v0 }
 0x351   : > { %v2390_v51 = vmul.f32 %v7450_v61, %v10968_v14  ;;  %v2878_v21 = vadd.f32 %v2877_v28, %v2876_v48  ;;  %v2879_v27 = vsel %vm2563_vm5, %v2503_v15, 0.0  ;;  %v2648_v7 = vadd.f32 %v2647_v9, %v2646_v55 }
 0x352   : > { %v2391_v23 = vmul.f32 %v7439_v1, %v10969_v24  ;;  %v10970_v59 = vunpack.c.h.bf16 %v7802_v0  ;;  %v2720_v54 = vsel %vm2563_vm5, %v2389_v46, 0.0  ;;  %v2881_v41 = vsel %vm2563_vm5, %v2504_v4, 0.0 }
 0x353   : > { %v2721_v49 = vsel %vm2563_vm5, %v2390_v51, 0.0  ;;  %v2880_v30 = vadd.f32 %v2879_v27, %v2878_v21  ;;  %v10971_v18 = vunpack.c.l.bf16 %v7885_v2  ;;  %v10972_v55 = vunpack.c.h.bf16 %v7885_v2  ;;  %2649 = vadd.xlane.f32.xlu0 %v2648_v7  ;;  %v10985_v7 = vld [vmem:[#allocation8_spill] sm:$0xff]  ;;  %v11102_v2 = vld [vmem:[#allocation33_spill] sm:$0xff] }
 0x354   : > { %v2392_v35 = vmul.f32 %v7455_v19, %v10970_v59  ;;  %v2722_v13 = vadd.f32 %v2721_v49, %v2720_v54  ;;  %v2723_v48 = vsel %vm2563_vm5, %v2391_v23, 0.0  ;;  %v10973_v52 = vunpack.c.l.bf16 %v7943_v39 }
 0x355   : > { %v2445_v15 = vmul.f32 %v7437_v60, %v10971_v18  ;;  %v2446_v28 = vmul.f32 %v7450_v61, %v10972_v55  ;;  %v10974_v14 = vunpack.c.h.bf16 %v7943_v39  ;;  %v2882_v51 = vadd.f32 %v2881_v41, %v2880_v30  ;;  %v10978_v30 = vld [vmem:[#allocation7_spill] sm:$0xff] }
 0x356   : > { %v2447_v46 = vmul.f32 %v7439_v1, %v10973_v52  ;;  %v2724_v9 = vadd.f32 %v2723_v48, %v2722_v13  ;;  %v10976_v38 = vunpack.c.l.bf16 %v10975_v26  ;;  %v2725_v24 = vsel %vm2563_vm5, %v2392_v35, 0.0 }
 0x357   : > { %v2448_v4 = vmul.f32 %v7455_v19, %v10974_v14  ;;  %v2798_v21 = vsel %vm2563_vm5, %v2445_v15, 0.0  ;;  %v2799_v23 = vsel %vm2563_vm5, %v2446_v28, 0.0  ;;  %v10977_v54 = vunpack.c.h.bf16 %v10975_v26  ;;  %2883 = vadd.xlane.f32.xlu1 %v2882_v51 }
 0x358   : > { %v3754_v27 = vmul.f32 %v8014_v25, %v10976_v38  ;;  %v2801_v59 = vsel %vm2563_vm5, %v2447_v46, 0.0  ;;  %v2726_v18 = vadd.f32 %v2725_v24, %v2724_v9  ;;  %v2800_v55 = vadd.f32 %v2799_v23, %v2798_v21 }
 0x359   : > { %v3755_v49 = vmul.f32 %v8027_v6, %v10977_v54  ;;  %v10979_v41 = vunpack.c.l.bf16 %v10978_v30  ;;  %v10980_v15 = vunpack.c.h.bf16 %v10978_v30  ;;  %v2803_v35 = vsel %vm2563_vm5, %v2448_v4, 0.0 }
 0x35a   : > { %v10981_v52 = vunpack.c.l.bf16 %v8006_v34  ;;  %v10982_v14 = vunpack.c.h.bf16 %v8006_v34  ;;  %v2802_v21 = vadd.f32 %v2801_v59, %v2800_v55  ;;  %v10983_v26 = vunpack.c.l.bf16 %v8081_v5  ;;  %2727 = vadd.xlane.f32.xlu0 %v2726_v18  ;;  %v11071_v34 = vld [vmem:[#allocation39_spill] sm:$0xff] }
 0x35b   : > { %v3756_v13 = vmul.f32 %v8016_v20, %v10979_v41  ;;  %v3757_v48 = vmul.f32 %v8029_v37, %v10980_v15  ;;  %v4034_v28 = vadd.f32 %v3755_v49, %v3754_v27  ;;  %v10984_v24 = vunpack.c.h.bf16 %v8081_v5  ;;  %v10988_v41 = vld [vmem:[#allocation9_spill] sm:$0xff] }
 0x35c   : > { %v2529_v46 = vmul.f32 %v7437_v60, %v10981_v52  ;;  %v2530_v9 = vmul.f32 %v7450_v61, %v10982_v14  ;;  %v2531_v38 = vmul.f32 %v7439_v1, %v10983_v26  ;;  %v10986_v4 = vunpack.c.l.bf16 %v10985_v7 }
 0x35d   : > { %v2532_v17 = vmul.f32 %v7455_v19, %v10984_v24  ;;  %v4035_v23 = vadd.f32 %v4034_v28, %v3756_v13  ;;  %v10987_v61 = vunpack.c.h.bf16 %v10985_v7  ;;  %v2804_v49 = vadd.f32 %v2803_v35, %v2802_v21  ;;  %v10994_v21 = vld [vmem:[#allocation13_spill] sm:$0xff]  ;;  %v10997_v7 = vld [vmem:[#allocation10_spill] sm:$0xff] }
 0x35e   : > { %v3782_v27 = vmul.f32 %v8014_v25, %v10986_v4  ;;  %v2915_v60 = vsel %vm2563_vm5, %v2529_v46, 0.0  ;;  %v2916_v54 = vsel %vm2563_vm5, %v2530_v9, 0.0  ;;  %v2918_v19 = vsel %vm2563_vm5, %v2531_v38, 0.0  ;;  %v10991_v9 = vld [vmem:[#allocation12_spill] sm:$0xff] }
 0x35f   : > { %v3783_v59 = vmul.f32 %v8027_v6, %v10987_v61  ;;  %v2917_v55 = vadd.f32 %v2916_v54, %v2915_v60  ;;  %v4036_v1 = vadd.f32 %v4035_v23, %v3757_v48  ;;  %v2920_v30 = vsel %vm2563_vm5, %v2532_v17, 0.0  ;;  %2805 = vadd.xlane.f32.xlu0 %v2804_v49  ;;  %v11006_v49 = vld [vmem:[#allocation14_spill] sm:$0xff] }
 0x360   : > { %v10989_v15 = vunpack.c.l.bf16 %v10988_v41  ;;  %v10990_v52 = vunpack.c.h.bf16 %v10988_v41  ;;  %v10992_v35 = vunpack.c.l.bf16 %v10991_v9  ;;  %v10993_v18 = vunpack.c.h.bf16 %v10991_v9 }
 0x361   : > { %v2919_v28 = vadd.f32 %v2918_v19, %v2917_v55  ;;  %v4073_v14 = vadd.f32 %v3783_v59, %v3782_v27  ;;  %v10995_v26 = vunpack.c.l.bf16 %v10994_v21  ;;  %v10996_v24 = vunpack.c.h.bf16 %v10994_v21  ;;  %4037 = vadd.xlane.f32.xlu1 %v4036_v1 }
 0x362   : > { %v3784_v13 = vmul.f32 %v8016_v20, %v10989_v15  ;;  %v3785_v46 = vmul.f32 %v8029_v37, %v10990_v52  ;;  %v3838_v51 = vmul.f32 %v8014_v25, %v10992_v35  ;;  %v3839_v48 = vmul.f32 %v8027_v6, %v10993_v18 }
 0x363   : > { %v3840_v38 = vmul.f32 %v8016_v20, %v10995_v26  ;;  %v3841_v17 = vmul.f32 %v8029_v37, %v10996_v24  ;;  %v10998_v4 = vunpack.c.l.bf16 %v10997_v7  ;;  %v2921_v23 = vadd.f32 %v2920_v30, %v2919_v28  ;;  %v11003_v30 = vld [vmem:[#allocation17_spill] sm:$0xff] }
 0x364   : > { %v4074_v60 = vadd.f32 %v4073_v14, %v3784_v13  ;;  %v10999_v54 = vunpack.c.h.bf16 %v10997_v7  ;;  %v11000_v59 = vunpack.c.l.bf16 %v6373_v58  ;;  %v11001_v19 = vlaneseq }
 0x365   : > { %v3810_v27 = vmul.f32 %v8014_v25, %v10998_v4  ;;  %v4151_v15 = vadd.f32 %v3839_v48, %v3838_v51  ;;  %v11002_v52 = vunpack.c.h.bf16 %v6373_v58  ;;  %v11004_v13 = vunpack.c.l.bf16 %v11003_v30  ;;  %v11009_v48 = vld [vmem:[#allocation11_spill] sm:$0xff]  ;;  %2922 = vadd.xlane.f32.xlu0 %v2921_v23 }
 0x366   : > { %v3811_v61 = vmul.f32 %v8027_v6, %v10999_v54  ;;  %v3812_v55 = vmul.f32 %v8016_v20, %v11000_v59  ;;  %v8364_v41 = vand.u32 127, %v11001_v19  ;;  %v4075_v14 = vadd.f32 %v4074_v60, %v3785_v46 }
 0x367   : > { %v3813_v9 = vmul.f32 %v8029_v37, %v11002_v52  ;;  %v3866_v28 = vmul.f32 %v8014_v25, %v11004_v13  ;;  %v11005_v18 = vunpack.c.h.bf16 %v11003_v30  ;;  %v11007_v1 = vunpack.c.l.bf16 %v11006_v49  ;;  %v11015_v13 = vld [vmem:[#allocation15_spill] sm:$0xff] }
 0x368   : > { %v4112_v35 = vadd.f32 %v3811_v61, %v3810_v27  ;;  %v4152_v24 = vadd.f32 %v4151_v15, %v3840_v38  ;;  %v11008_v51 = vunpack.c.h.bf16 %v11006_v49  ;;  %v11010_v7 = vunpack.c.l.bf16 %v11009_v48  ;;  %v11012_v61 = vld [vmem:[#allocation16_spill] sm:$0xff]  ;;  %4076 = vadd.xlane.f32.xlu1 %v4075_v14 }
 0x369   : > { %v3867_v21 = vmul.f32 %v8027_v6, %v11005_v18  ;;  %v3868_v26 = vmul.f32 %v8016_v20, %v11007_v1  ;;  %v11011_v46 = vunpack.c.h.bf16 %v11009_v48  ;;  %v11013_v59 = vunpack.c.l.bf16 %v11012_v61  ;;  %v8396_v1 = vpop.xlane.xlu1 %2576  ;;  %v11018_v48 = vld [vmem:[#allocation20_spill] sm:$0xff] }
 0x36a   : > { %v3869_v58 = vmul.f32 %v8029_v37, %v11008_v51  ;;  %v3894_v4 = vmul.f32 %v8014_v25, %v11010_v7  ;;  %v4113_v60 = vadd.f32 %v4112_v35, %v3812_v55  ;;  %v11014_v38 = vunpack.c.h.bf16 %v11012_v61  ;;  %v8398_v55 = vpop.xlane.xlu0 %2536 }
 0x36b   : > { %v3895_v27 = vmul.f32 %v8027_v6, %v11011_v46  ;;  %v4190_v54 = vadd.f32 %v3867_v21, %v3866_v28  ;;  %v3896_v19 = vmul.f32 %v8016_v20, %v11013_v59  ;;  %v4153_v52 = vadd.f32 %v4152_v24, %v3841_v17  ;;  %v11020_v17 = vld [vmem:[#allocation5_spill] sm:$0xff] }
 0x36c   : > { %v3897_v15 = vmul.f32 %v8029_v37, %v11014_v38  ;;  %v11016_v18 = vunpack.c.l.bf16 %v11015_v13  ;;  %v4114_v28 = vadd.f32 %v4113_v60, %v3813_v9  ;;  %v11017_v21 = vunpack.c.h.bf16 %v11015_v13  ;;  %v11025_v13 = vld [vmem:[#allocation18_spill] sm:$0xff] }
 0x36d   : > { %v4229_v30 = vadd.f32 %v3895_v27, %v3894_v4  ;;  %v4191_v35 = vadd.f32 %v4190_v54, %v3868_v26  ;;  %v11019_v7 = vunpack.c.l.bf16 %v11018_v48  ;;  %v8408_v14 = vsub.s32 %v8364_v41, %v11020_v17  ;;  %v11022_v26 = vld [vmem:[#allocation21_spill] sm:$0xff]  ;;  %4154 = vadd.xlane.f32.xlu0 %v4153_v52 }
 0x36e   : > { %v3950_v49 = vmul.f32 %v8014_v25, %v11016_v18  ;;  %v3951_v51 = vmul.f32 %v8027_v6, %v11017_v21  ;;  %v11021_v4 = vunpack.c.h.bf16 %v11018_v48  ;;  %v11023_v60 = vunpack.c.l.bf16 %v11022_v26  ;;  %4115 = vadd.xlane.f32.xlu1 %v4114_v28 }
 0x36f   : > { %v3952_v23 = vmul.f32 %v8016_v20, %v11019_v7  ;;  %v4230_v24 = vadd.f32 %v4229_v30, %v3896_v19  ;;  %v4192_v27 = vadd.f32 %v4191_v35, %v3869_v58  ;;  %v11024_v61 = vunpack.c.h.bf16 %v11022_v26  ;;  %v8427_v35 = vpop.xlane.xlu0 %2615 }
 0x370   : > { %v3953_v46 = vmul.f32 %v8029_v37, %v11021_v4  ;;  %v4307_v9 = vadd.f32 %v3951_v51, %v3950_v49  ;;  %v3922_v54 = vmul.f32 %v8014_v25, %v11023_v60  ;;  %v11026_v18 = vunpack.c.l.bf16 %v11025_v13  ;;  %v8425_v49 = vpop.xlane.xlu1 %2654 }
 0x371   : > { %v3923_v59 = vmul.f32 %v8027_v6, %v11024_v61  ;;  %v4231_v38 = vadd.f32 %v4230_v24, %v3897_v15  ;;  %v11027_v30 = vunpack.c.h.bf16 %v11025_v13  ;;  %v11028_v48 = vunpack.c.l.bf16 %v6452_v43  ;;  %4193 = vadd.xlane.f32.xlu0 %v4192_v27 }
 0x372   : > { %v3924_v19 = vmul.f32 %v8016_v20, %v11026_v18  ;;  %v4308_v21 = vadd.f32 %v4307_v9, %v3952_v23  ;;  %v11029_v15 = vunpack.c.h.bf16 %v6452_v43  ;;  %v11030_v7 = vunpack.c.l.bf16 %v6457_v44 }
 0x373   : > { %v3925_v58 = vmul.f32 %v8029_v37, %v11027_v30  ;;  %v4268_v51 = vadd.f32 %v3923_v59, %v3922_v54  ;;  %v3978_v52 = vmul.f32 %v8014_v25, %v11028_v48  ;;  %v11031_v4 = vunpack.c.h.bf16 %v6457_v44  ;;  %4232 = vadd.xlane.f32.xlu1 %v4231_v38  ;;  %v8455_v30 = vpop.xlane.xlu0 %2693  ;;  %v11035_v48 = vld [vmem:[#allocation19_spill] sm:$0xff] }
 0x374   : > { %v3979_v28 = vmul.f32 %v8027_v6, %v11029_v15  ;;  %v3980_v24 = vmul.f32 %v8016_v20, %v11030_v7  ;;  %v4309_v60 = vadd.f32 %v4308_v21, %v3953_v46  ;;  %v11032_v9 = vunpack.c.l.bf16 %v6536_v42 }
 0x375   : > { %v3981_v26 = vmul.f32 %v8029_v37, %v11031_v4  ;;  %v4269_v61 = vadd.f32 %v4268_v51, %v3924_v19  ;;  %v11033_v59 = vunpack.c.h.bf16 %v6536_v42  ;;  %v11034_v44 = vunpack.c.l.bf16 %v6541_v45  ;;  %v8453_v19 = vpop.xlane.xlu1 %2732 }
 0x376   : > { %v4346_v23 = vadd.f32 %v3979_v28, %v3978_v52  ;;  %v3842_v54 = vmul.f32 %v8033_v31, %v11032_v9  ;;  %v3000_v46 = vadd.s32 4294967288, %v8364_v41  ;;  %v11036_v52 = vunpack.c.l.bf16 %v11035_v48  ;;  %v11039_v9 = vld [vmem:[#allocation24_spill] sm:$0xff]  ;;  %4310 = vadd.xlane.f32.xlu0 %v4309_v60 }
 0x377   : > { %v3843_v13 = vmul.f32 %v8047_v22, %v11033_v59  ;;  %v3844_v18 = vmul.f32 %v8035_v3, %v11034_v44  ;;  %v4270_v21 = vadd.f32 %v4269_v61, %v3925_v58  ;;  %v11037_v42 = vunpack.c.h.bf16 %v11035_v48  ;;  %v11042_v44 = vld [vmem:[#allocation29_spill] sm:$0xff] }
 0x378   : > { %v4347_v51 = vadd.f32 %v4346_v23, %v3980_v24  ;;  %v4006_v27 = vmul.f32 %v8014_v25, %v11036_v52  ;;  %v11038_v28 = vunpack.c.h.bf16 %v6541_v45  ;;  %v11040_v59 = vunpack.c.l.bf16 %v11039_v9 }
 0x379   : > { %v4007_v38 = vmul.f32 %v8027_v6, %v11037_v42  ;;  %v4156_v4 = vadd.f32 %v3843_v13, %v3842_v54  ;;  %v11041_v61 = vunpack.c.h.bf16 %v11039_v9  ;;  %v11043_v6 = vunpack.c.l.bf16 %v11042_v44  ;;  %4271 = vadd.xlane.f32.xlu1 %v4270_v21  ;;  %v11045_v13 = vld [vmem:[#allocation26_spill] sm:$0xff]  ;;  %v8490_v60 = vpop.xlane.xlu1 %2810 }
 0x37a   : > { %v3845_v7 = vmul.f32 %v8049_v12, %v11038_v28  ;;  %v4008_v58 = vmul.f32 %v8016_v20, %v11040_v59  ;;  %v4348_v24 = vadd.f32 %v4347_v51, %v3981_v26  ;;  %v11044_v52 = vunpack.c.h.bf16 %v11042_v44  ;;  %v11052_v28 = vld [vmem:[#allocation23_spill] sm:$0xff] }
 0x37b   : > { %v4009_v25 = vmul.f32 %v8029_v37, %v11041_v61  ;;  %v4385_v23 = vadd.f32 %v4007_v38, %v4006_v27  ;;  %v3870_v48 = vmul.f32 %v8033_v31, %v11043_v6  ;;  %v4157_v45 = vadd.f32 %v4156_v4, %v3844_v18  ;;  %v8492_v18 = vpop.xlane.xlu0 %2771  ;;  %v11050_v6 = vld [vmem:[#allocation35_spill] sm:$0xff] }
 0x37c   : > { %v3871_v54 = vmul.f32 %v8047_v22, %v11044_v52  ;;  %v11046_v42 = vunpack.c.l.bf16 %v11045_v13  ;;  %v8484_v26 = vadd.s32 4294967280, %v8364_v41  ;;  %v3079_v51 = vrot.slane %v8427_v35, %v8408_v14  ;;  %4349 = vadd.xlane.f32.xlu0 %v4348_v24 }
 0x37d   : > { %v4386_v21 = vadd.f32 %v4385_v23, %v4008_v58  ;;  %v11047_v27 = vunpack.c.l.bf16 %v6578_v53  ;;  %v4158_v9 = vadd.f32 %v4157_v45, %v3845_v7  ;;  %v11048_v35 = vunpack.c.h.bf16 %v11045_v13 }
 0x37e   : > { %v3872_v20 = vmul.f32 %v8035_v3, %v11046_v42  ;;  %v4195_v59 = vadd.f32 %v3871_v54, %v3870_v48  ;;  %v11049_v58 = vunpack.c.h.bf16 %v6578_v53  ;;  %v11051_v52 = vunpack.c.l.bf16 %v11050_v6  ;;  %v8519_v53 = vpop.xlane.xlu1 %2888 }
 0x37f   : > { %v3954_v38 = vmul.f32 %v8033_v31, %v11047_v27  ;;  %v4387_v61 = vadd.f32 %v4386_v21, %v4009_v25  ;;  %v3873_v44 = vmul.f32 %v8049_v12, %v11048_v35  ;;  %4159 = vadd.xlane.f32.xlu1 %v4158_v9  ;;  %v11053_v37 = vunpack.c.l.bf16 %v11052_v28  ;;  %v8521_v54 = vpop.xlane.xlu0 %2849 }
 0x380   : > { %v3955_v23 = vmul.f32 %v8047_v22, %v11049_v58  ;;  %v3956_v42 = vmul.f32 %v8035_v3, %v11051_v52  ;;  %v4196_v27 = vadd.f32 %v4195_v59, %v3872_v20  ;;  %v11054_v25 = vunpack.c.h.bf16 %v11052_v28  ;;  %v11055_v20 = vld [vmem:[#allocation28_spill] sm:$0xff] }
 0x381   : > { %v3758_v7 = vmul.f32 %v8033_v31, %v11053_v37  ;;  %v8517_v45 = vadd.s32 4294967272, %v8364_v41  ;;  %v8524_v13 = vsub.s32 %v3000_v46, %v11020_v17  ;;  %v11056_v21 = vunpack.c.l.bf16 %v11055_v20  ;;  %v11057_v37 = vld [vmem:[#allocation31_spill] sm:$0xff]  ;;  %4388 = vadd.xlane.f32.xlu0 %v4387_v61 }
 0x382   : > { %v3759_v48 = vmul.f32 %v8047_v22, %v11054_v25  ;;  %v4312_v24 = vadd.f32 %v3955_v23, %v3954_v38  ;;  %v11058_v59 = vunpack.c.l.bf16 %v11057_v37  ;;  %v4197_v35 = vadd.f32 %v4196_v27, %v3873_v44 }
 0x383   : > { %v3760_v9 = vmul.f32 %v8035_v3, %v11056_v21  ;;  %v11059_v58 = vunpack.c.h.bf16 %v11050_v6  ;;  %v11060_v25 = vunpack.c.h.bf16 %v11055_v20  ;;  %v11061_v38 = vunpack.c.h.bf16 %v11057_v37  ;;  %v11062_v21 = vld [vmem:[#allocation36_spill] sm:$0xff]  ;;  %v11065_v20 = vld [vmem:[#allocation27_spill] sm:$0xff]  ;;  %v2621_v37 = vpop.xlane.xlu1 %2620 }
 0x384   : > { %v3982_v28 = vmul.f32 %v8033_v31, %v11058_v59  ;;  %v4039_v46 = vadd.f32 %v3759_v48, %v3758_v7  ;;  %v4313_v4 = vadd.f32 %v4312_v24, %v3956_v42  ;;  %v11063_v15 = vunpack.c.l.bf16 %v11062_v21  ;;  %4198 = vadd.xlane.f32.xlu1 %v4197_v35 }
 0x385   : > { %v3957_v52 = vmul.f32 %v8049_v12, %v11059_v58  ;;  %v3761_v43 = vmul.f32 %v8049_v12, %v11060_v25  ;;  %v3983_v23 = vmul.f32 %v8047_v22, %v11061_v38  ;;  %v11064_v44 = vunpack.c.h.bf16 %v11062_v21  ;;  %v11068_v38 = vld [vmem:[#allocation32_spill] sm:$0xff] }
 0x386   : > { %v3984_v5 = vmul.f32 %v8035_v3, %v11063_v15  ;;  %v4040_v27 = vadd.f32 %v4039_v46, %v3760_v9  ;;  %v11066_v59 = vunpack.c.l.bf16 %v11065_v20  ;;  %v11067_v42 = vunpack.c.h.bf16 %v11065_v20  ;;  %v2542_v15 = vpop.xlane.xlu0 %2541 }
 0x387   : > { %v3985_v6 = vmul.f32 %v8049_v12, %v11064_v44  ;;  %v8554_v24 = vadd.s32 4294967264, %v8364_v41  ;;  %v4314_v58 = vadd.f32 %v4313_v4, %v3957_v52  ;;  %v4351_v25 = vadd.f32 %v3983_v23, %v3982_v28  ;;  %v11074_v23 = vld [vmem:[#allocation40_spill] sm:$0xff] }
 0x388   : > { %v3786_v7 = vmul.f32 %v8033_v31, %v11066_v59  ;;  %v3787_v48 = vmul.f32 %v8047_v22, %v11067_v42  ;;  %v11069_v21 = vunpack.c.l.bf16 %v11068_v38  ;;  %v11070_v9 = vunpack.c.h.bf16 %v11068_v38 }
 0x389   : > { %v3083_v46 = vrot.slane %v2621_v37, %v8524_v13  ;;  %v3004_v44 = vrot.slane %v2542_v15, %v8524_v13  ;;  %v4041_v20 = vadd.f32 %v4040_v27, %v3761_v43  ;;  %v4352_v42 = vadd.f32 %v4351_v25, %v3984_v5  ;;  %4315 = vadd.xlane.f32.xlu1 %v4314_v58  ;;  %v11077_v15 = vld [vmem:[#allocation25_spill] sm:$0xff] }
 0x38a   : > { %v3788_v61 = vmul.f32 %v8035_v3, %v11069_v21  ;;  %v3789_v35 = vmul.f32 %v8049_v12, %v11070_v9  ;;  %v4078_v59 = vadd.f32 %v3787_v48, %v3786_v7  ;;  %v11072_v10 = vunpack.c.l.bf16 %v11071_v34  ;;  %v2699_v7 = vpop.xlane.xlu1 %2698  ;;  %v2582_v48 = vpop.xlane.xlu0 %2581 }
 0x38b   : > { %v11073_v28 = vunpack.c.h.bf16 %v11071_v34  ;;  %v11075_v21 = vunpack.c.l.bf16 %v11074_v23  ;;  %v8574_v9 = vsel %vm3005_vm6, %v3083_v46, %v3079_v51  ;;  %v11076_v43 = vrot.slane %v8398_v55, %v8408_v14  ;;  %4042 = vadd.xlane.f32.xlu0 %v4041_v20 }
 0x38c   : > { %v4010_v4 = vmul.f32 %v8033_v31, %v11072_v10  ;;  %v4079_v10 = vadd.f32 %v4078_v59, %v3788_v61  ;;  %v8583_v34 = vadd.s32 4294967256, %v8364_v41  ;;  %v4353_v37 = vadd.f32 %v4352_v42, %v3985_v6  ;;  %v11081_v6 = vld [vmem:[#allocation22_spill] sm:$0xff] }
 0x38d   : > { %v4011_v52 = vmul.f32 %v8047_v22, %v11073_v28  ;;  %v4012_v38 = vmul.f32 %v8035_v3, %v11075_v21  ;;  %v8580_v5 = vsel %vm3005_vm6, %v3004_v44, %v11076_v43  ;;  %v11078_v25 = vunpack.c.l.bf16 %v11077_v15 }
 0x38e   : > { %v3151_v46 = vrot.slane %v2699_v7, %v8524_v13  ;;  %v3049_v58 = vrot.slane %v2582_v48, %v8524_v13  ;;  %v4080_v44 = vadd.f32 %v4079_v10, %v3789_v35  ;;  %v11079_v61 = vunpack.c.h.bf16 %v11077_v15  ;;  %4354 = vadd.xlane.f32.xlu1 %v4353_v37 }
 0x38f   : > { %v4390_v51 = vadd.f32 %v4011_v52, %v4010_v4  ;;  %v3814_v55 = vmul.f32 %v8033_v31, %v11078_v25  ;;  %v11080_v59 = vunpack.c.h.bf16 %v11074_v23  ;;  %v11082_v42 = vunpack.c.l.bf16 %v11081_v6  ;;  %v11083_v52 = vld [vmem:[#allocation37_spill] sm:$0xff]  ;;  %v2777_v25 = vpop.xlane.xlu1 %2776 }
 0x390   : > { %v3815_v20 = vmul.f32 %v8047_v22, %v11079_v61  ;;  %v11084_v43 = vunpack.c.l.bf16 %v11083_v52  ;;  %v11085_v35 = vrot.slane %v8455_v30, %v8408_v14  ;;  %v11086_v23 = vrot.slane %v8396_v1, %v8408_v14  ;;  %4081 = vadd.xlane.f32.xlu0 %v4080_v44  ;;  %v8621_v30 = vpop.xlane.xlu0 %2659 }
 0x391   : > { %v4013_v28 = vmul.f32 %v8049_v12, %v11080_v59  ;;  %v4391_v21 = vadd.f32 %v4390_v51, %v4012_v38  ;;  %v3816_v4 = vmul.f32 %v8035_v3, %v11082_v42  ;;  %v8617_v51 = vadd.s32 4294967248, %v8364_v41  ;;  %v11088_v59 = vld [vmem:[#allocation34_spill] sm:$0xff] }
 0x392   : > { %v3898_v7 = vmul.f32 %v8033_v31, %v11084_v43  ;;  %v8608_v10 = vsel %vm3005_vm6, %v3151_v46, %v11085_v35  ;;  %v8614_v48 = vsel %vm3005_vm6, %v3049_v58, %v11086_v23  ;;  %v4117_v38 = vadd.f32 %v3815_v20, %v3814_v55  ;;  %v11091_v20 = vld [vmem:[#allocation38_spill] sm:$0xff]  ;;  %v11095_v23 = vld [vmem:[#allocation140_spill] sm:$0xff] }
 0x393   : > { %v3215_v15 = vrot.slane %v8492_v18, %v8408_v14  ;;  %v4392_v46 = vadd.f32 %v4391_v21, %v4013_v28  ;;  %v11087_v61 = vunpack.c.h.bf16 %v11083_v52  ;;  %v11089_v58 = vunpack.c.l.bf16 %v11088_v59  ;;  %v11093_v43 = vld [vmem:[#allocation138_spill] sm:$0xff] }
 0x394   : > { %v3219_v55 = vrot.slane %v2777_v25, %v8524_v13  ;;  %v11090_v41 = vunpack.c.h.bf16 %v11081_v6  ;;  %v4118_v18 = vadd.f32 %v4117_v38, %v3816_v4  ;;  %v11092_v42 = vunpack.c.l.bf16 %v11091_v20  ;;  %v11098_v25 = vld [vmem:[#allocation139_spill] sm:$0xff] }
 0x395   : > { %v3899_v1 = vmul.f32 %v8047_v22, %v11087_v61  ;;  %v3900_v37 = vmul.f32 %v8035_v3, %v11089_v58  ;;  %v3283_v21 = vrot.slane %v8521_v54, %v8408_v14  ;;  %v11094_v35 = vunpack.c.h.bf16 %v11091_v20  ;;  %v11096_v58 = vld [vmem:[#allocation43_spill] sm:$0xff]  ;;  %4393 = vadd.xlane.f32.xlu1 %v4392_v46  ;;  %v2855_v20 = vpop.xlane.xlu1 %2854 }
 0x396   : > { %v3817_v44 = vmul.f32 %v8049_v12, %v11090_v41  ;;  %v3762_v28 = vmul.f32 %v11093_v43, %v11092_v42  ;;  %v11097_v27 = vunpack.c.l.bf16 %v11096_v58  ;;  %v8645_v6 = vsel %vm3005_vm6, %v3219_v55, %v3215_v15  ;;  %v2738_v42 = vpop.xlane.xlu0 %2737 }
 0x397   : > { %v4234_v52 = vadd.f32 %v3899_v1, %v3898_v7  ;;  %v3763_v61 = vmul.f32 %v11095_v23, %v11094_v35  ;;  %v11099_v38 = vunpack.c.h.bf16 %v11088_v59  ;;  %v11100_v54 = vunpack.c.h.bf16 %v11096_v58  ;;  %v11101_v7 = vld [vmem:[#allocation141_spill] sm:$0xff] }
 0x398   : > { %v3764_v62 = vmul.f32 %v11098_v25, %v11097_v27  ;;  %v4119_v4 = vadd.f32 %v4118_v18, %v3817_v44  ;;  %v11103_v0 = vunpack.c.l.bf16 %v11102_v2  ;;  %v11104_v15 = vunpack.c.h.bf16 %v11102_v2  ;;  %v11107_v2 = vld [vmem:[#allocation46_spill] sm:$0xff] }
 0x399   : > { %v3901_v41 = vmul.f32 %v8049_v12, %v11099_v38  ;;  %v3765_v1 = vmul.f32 %v11101_v7, %v11100_v54  ;;  %v4235_v35 = vadd.f32 %v4234_v52, %v3900_v37  ;;  %v4044_v39 = vadd.f32 %v3763_v61, %v3762_v28  ;;  %v11105_v37 = vld [vmem:[#allocation30_spill] sm:$0xff]  ;;  %v11110_v38 = vld [vmem:[#allocation47_spill] sm:$0xff] }
 0x39a   : > { %v3926_v27 = vmul.f32 %v8033_v31, %v11103_v0  ;;  %v3927_v46 = vmul.f32 %v8047_v22, %v11104_v15  ;;  %v3117_v59 = vrot.slane %v8621_v30, %v8524_v13  ;;  %4120 = vadd.xlane.f32.xlu0 %v4119_v4  ;;  %v3287_v55 = vrot.slane %v2855_v20, %v8524_v13 }
 0x39b   : > { %v8664_v44 = vsub.s32 %v8484_v26, %v11020_v17  ;;  %v11106_v18 = vunpack.c.l.bf16 %v11105_v37  ;;  %v4236_v52 = vadd.f32 %v4235_v35, %v3901_v41  ;;  %v4045_v0 = vadd.f32 %v4044_v39, %v3764_v62  ;;  %v2816_v62 = vpop.xlane.xlu0 %2815  ;;  %v2547_v39 = vpop.xlane.xlu1 %2546 }
 0x39c   : > { %v4273_v31 = vadd.f32 %v3927_v46, %v3926_v27  ;;  %v11108_v61 = vunpack.c.l.bf16 %v11107_v2  ;;  %v8673_v30 = vsel %vm3005_vm6, %v3287_v55, %v3283_v21  ;;  %v3185_v58 = vrot.slane %v2738_v42, %v8524_v13  ;;  %v11113_v21 = vld [vmem:[#allocation41_spill] sm:$0xff] }
 0x39d   : > { %v3928_v28 = vmul.f32 %v8035_v3, %v11106_v18  ;;  %v11109_v4 = vunpack.c.h.bf16 %v11107_v2  ;;  %v11111_v54 = vunpack.c.l.bf16 %v11110_v38  ;;  %v4046_v41 = vadd.f32 %v4045_v0, %v3765_v1 }
 0x39e   : > { %v3818_v22 = vmul.f32 %v11093_v43, %v11108_v61  ;;  %v11112_v20 = vunpack.c.h.bf16 %v11105_v37  ;;  %v11114_v15 = vunpack.c.l.bf16 %v11113_v21  ;;  %4237 = vadd.xlane.f32.xlu0 %v4236_v52  ;;  %v3011_v46 = vrot.slane %v2547_v39, %v8664_v44  ;;  %v11119_v52 = vld [vmem:[#allocation44_spill] sm:$0xff] }
 0x39f   : > { %v3819_v26 = vmul.f32 %v11095_v23, %v11109_v4  ;;  %v3820_v3 = vmul.f32 %v11098_v25, %v11111_v54  ;;  %v4274_v27 = vadd.f32 %v4273_v31, %v3928_v28  ;;  %v11115_v55 = vunpack.c.h.bf16 %v11110_v38  ;;  %4047 = vadd.xlane.f32.xlu1 %v4046_v41  ;;  %v11117_v28 = vld [vmem:[#allocation42_spill] sm:$0xff] }
 0x3a0   : > { %v3929_v35 = vmul.f32 %v8049_v12, %v11112_v20  ;;  %v3790_v42 = vmul.f32 %v11093_v43, %v11114_v15  ;;  %v11116_v1 = vunpack.c.h.bf16 %v11113_v21  ;;  %v3253_v12 = vrot.slane %v2816_v62, %v8524_v13  ;;  %v2894_v20 = vpop.xlane.xlu0 %2893  ;;  %v11123_v15 = vld [vmem:[#allocation45_spill] sm:$0xff] }
 0x3a1   : > { %v3821_v18 = vmul.f32 %v11101_v7, %v11115_v55  ;;  %v4122_v2 = vadd.f32 %v3819_v26, %v3818_v22  ;;  %v11118_v31 = vunpack.c.l.bf16 %v11117_v28  ;;  %v11120_v4 = vunpack.c.l.bf16 %v11119_v52 }
 0x3a2   : > { %v3791_v0 = vmul.f32 %v11095_v23, %v11116_v1  ;;  %v4275_v37 = vadd.f32 %v4274_v27, %v3929_v35  ;;  %v8704_v38 = vsel %vm3012_vm7, %v3011_v46, %v8580_v5  ;;  %v11121_v26 = vunpack.c.h.bf16 %v11117_v28  ;;  %v2587_v35 = vpop.xlane.xlu1 %2586  ;;  %v11125_v46 = vld [vmem:[#allocation50_spill] sm:$0xff] }
 0x3a3   : > { %v3792_v61 = vmul.f32 %v11098_v25, %v11118_v31  ;;  %v3846_v54 = vmul.f32 %v11093_v43, %v11120_v4  ;;  %v4123_v22 = vadd.f32 %v4122_v2, %v3820_v3  ;;  %v3317_v62 = vrot.slane %v8519_v53, %v8408_v14 }
 0x3a4   : > { %v3793_v41 = vmul.f32 %v11101_v7, %v11121_v26  ;;  %v4083_v39 = vadd.f32 %v3791_v0, %v3790_v42  ;;  %v11122_v27 = vunpack.c.h.bf16 %v11119_v52  ;;  %v11124_v55 = vunpack.c.l.bf16 %v11123_v15  ;;  %4276 = vadd.xlane.f32.xlu0 %v4275_v37 }
 0x3a5   : > { %v11126_v3 = vunpack.c.l.bf16 %v11125_v46  ;;  %v11127_v42 = vrot.slane %v8425_v49, %v8408_v14  ;;  %v11128_v53 = vrot.slane %v8453_v19, %v8408_v14  ;;  %v4124_v28 = vadd.f32 %v4123_v22, %v3821_v18 }
 0x3a6   : > { %v3847_v21 = vmul.f32 %v11095_v23, %v11122_v27  ;;  %v3848_v5 = vmul.f32 %v11098_v25, %v11124_v55  ;;  %v4084_v31 = vadd.f32 %v4083_v39, %v3792_v61  ;;  %v11129_v52 = vunpack.c.h.bf16 %v11123_v15  ;;  %v11131_v55 = vld [vmem:[#allocation51_spill] sm:$0xff]  ;;  %v2626_v15 = vpop.xlane.xlu0 %2625 }
 0x3a7   : > { %v3874_v2 = vmul.f32 %v11093_v43, %v11126_v3  ;;  %v3118_v1 = vsel %vm3005_vm6, %v3117_v59, %v11127_v42  ;;  %v8728_v0 = vsel %vm3005_vm6, %v3185_v58, %v11128_v53  ;;  %v11130_v27 = vunpack.c.h.bf16 %v11125_v46  ;;  %4125 = vadd.xlane.f32.xlu1 %v4124_v28  ;;  %v2665_v46 = vpop.xlane.xlu1 %2664 }
 0x3a8   : > { %v3849_v4 = vmul.f32 %v11101_v7, %v11129_v52  ;;  %v4161_v26 = vadd.f32 %v3847_v21, %v3846_v54  ;;  %v11132_v59 = vunpack.c.l.bf16 %v11131_v55  ;;  %v11133_v19 = vrot.slane %v8490_v60, %v8408_v14  ;;  %v11135_v54 = vld [vmem:[#allocation54_spill] sm:$0xff] }
 0x3a9   : > { %v3875_v49 = vmul.f32 %v11095_v23, %v11130_v27  ;;  %v4085_v18 = vadd.f32 %v4084_v31, %v3793_v41  ;;  %v11134_v37 = vunpack.c.h.bf16 %v11131_v55  ;;  %v11136_v22 = vunpack.c.l.bf16 %v11135_v54 }
 0x3aa   : > { %v3876_v3 = vmul.f32 %v11098_v25, %v11132_v59  ;;  %v8743_v58 = vsel %vm3005_vm6, %v3253_v12, %v11133_v19  ;;  %v4162_v21 = vadd.f32 %v4161_v26, %v3848_v5  ;;  %v11137_v53 = vunpack.c.h.bf16 %v11135_v54  ;;  %v11138_v12 = vld [vmem:[#allocation55_spill] sm:$0xff]  ;;  %v11141_v26 = vld [vmem:[#allocation48_spill] sm:$0xff] }
 0x3ab   : > { %v3877_v61 = vmul.f32 %v11101_v7, %v11134_v37  ;;  %v3930_v39 = vmul.f32 %v11093_v43, %v11136_v22  ;;  %v4200_v42 = vadd.f32 %v3875_v49, %v3874_v2  ;;  %v11139_v52 = vunpack.c.l.bf16 %v11138_v12  ;;  %4086 = vadd.xlane.f32.xlu0 %v4085_v18  ;;  %v11144_v18 = vld [vmem:[#allocation49_spill] sm:$0xff] }
 0x3ac   : > { %v3931_v60 = vmul.f32 %v11095_v23, %v11137_v53  ;;  %v3321_v28 = vrot.slane %v2894_v20, %v8524_v13  ;;  %v3054_v31 = vrot.slane %v2587_v35, %v8664_v44  ;;  %v11140_v27 = vunpack.c.h.bf16 %v11138_v12 }
 0x3ad   : > { %v3932_v41 = vmul.f32 %v11098_v25, %v11139_v52  ;;  %v11142_v55 = vunpack.c.l.bf16 %v11141_v26  ;;  %v4163_v49 = vadd.f32 %v4162_v21, %v3849_v4  ;;  %v4201_v59 = vadd.f32 %v4200_v42, %v3876_v3  ;;  %v2743_v21 = vpop.xlane.xlu1 %2742 }
 0x3ae   : > { %v3933_v5 = vmul.f32 %v11101_v7, %v11140_v27  ;;  %v4278_v19 = vadd.f32 %v3931_v60, %v3930_v39  ;;  %v11143_v37 = vunpack.c.h.bf16 %v11141_v26  ;;  %v3088_v20 = vrot.slane %v2626_v15, %v8664_v44  ;;  %v2704_v39 = vpop.xlane.xlu0 %2703  ;;  %v11147_v60 = vld [vmem:[#allocation52_spill] sm:$0xff] }
 0x3af   : > { %v3902_v2 = vmul.f32 %v11093_v43, %v11142_v55  ;;  %v3122_v35 = vrot.slane %v2665_v46, %v8664_v44  ;;  %v11145_v22 = vunpack.c.l.bf16 %v11144_v18  ;;  %v11146_v12 = vunpack.c.h.bf16 %v11144_v18  ;;  %4164 = vadd.xlane.f32.xlu1 %v4163_v49 }
 0x3b0   : > { %v3903_v54 = vmul.f32 %v11095_v23, %v11143_v37  ;;  %v4202_v4 = vadd.f32 %v4201_v59, %v3877_v61  ;;  %v4279_v3 = vadd.f32 %v4278_v19, %v3932_v41  ;;  %v11148_v27 = vunpack.c.l.bf16 %v11147_v60  ;;  %v11150_v61 = vld [vmem:[#allocation53_spill] sm:$0xff] }
 0x3b1   : > { %v3904_v53 = vmul.f32 %v11098_v25, %v11145_v22  ;;  %v3905_v52 = vmul.f32 %v11101_v7, %v11146_v12  ;;  %v8780_v46 = vsel %vm3005_vm6, %v3321_v28, %v3317_v62  ;;  %v8784_v26 = vsel %vm3012_vm7, %v3054_v31, %v8614_v48 }
 0x3b2   : > { %v4239_v42 = vadd.f32 %v3903_v54, %v3902_v2  ;;  %v3958_v15 = vmul.f32 %v11093_v43, %v11148_v27  ;;  %v11149_v55 = vunpack.c.h.bf16 %v11147_v60  ;;  %v11151_v41 = vunpack.c.l.bf16 %v11150_v61  ;;  %4203 = vadd.xlane.f32.xlu0 %v4202_v4  ;;  %v11152_v54 = vld [vmem:[#allocation58_spill] sm:$0xff] }
 0x3b3   : > { %v4280_v2 = vadd.f32 %v4279_v3, %v3933_v5  ;;  %v3156_v19 = vrot.slane %v2704_v39, %v8664_v44  ;;  %v11153_v62 = vunpack.c.l.bf16 %v11152_v54  ;;  %v3089_v48 = vsel %vm3012_vm7, %v3088_v20, %v8574_v9  ;;  %v2782_v3 = vpop.xlane.xlu0 %2781  ;;  %v2821_v39 = vpop.xlane.xlu1 %2820  ;;  %v11158_v20 = vld [vmem:[#allocation56_spill] sm:$0xff] }
 0x3b4   : > { %v3959_v49 = vmul.f32 %v11095_v23, %v11149_v55  ;;  %v3960_v59 = vmul.f32 %v11098_v25, %v11151_v41  ;;  %v4240_v37 = vadd.f32 %v4239_v42, %v3904_v53  ;;  %v11154_v31 = vunpack.c.h.bf16 %v11150_v61  ;;  %v11156_v42 = vld [vmem:[#allocation59_spill] sm:$0xff] }
 0x3b5   : > { %v3986_v28 = vmul.f32 %v11093_v43, %v11153_v62  ;;  %v11155_v12 = vunpack.c.h.bf16 %v11152_v54  ;;  %v8805_v5 = vsel %vm3012_vm7, %v3122_v35, %v3118_v1  ;;  %4281 = vadd.xlane.f32.xlu1 %v4280_v2  ;;  %v11157_v60 = vunpack.c.l.bf16 %v11156_v42 }
 0x3b6   : > { %v3961_v18 = vmul.f32 %v11101_v7, %v11154_v31  ;;  %v4317_v22 = vadd.f32 %v3959_v49, %v3958_v15  ;;  %v4241_v53 = vadd.f32 %v4240_v37, %v3905_v52  ;;  %v11159_v27 = vunpack.c.l.bf16 %v11158_v20 }
 0x3b7   : > { %v3987_v4 = vmul.f32 %v11095_v23, %v11155_v12  ;;  %v3988_v9 = vmul.f32 %v11098_v25, %v11157_v60  ;;  %v3190_v15 = vrot.slane %v2743_v21, %v8664_v44  ;;  %v11160_v61 = vunpack.c.h.bf16 %v11156_v42  ;;  %v8832_v12 = vpop.xlane.xlu1 %2551 }
 0x3b8   : > { %v4014_v55 = vmul.f32 %v11093_v43, %v11159_v27  ;;  %v4318_v49 = vadd.f32 %v4317_v22, %v3960_v59  ;;  %v8819_v52 = vsel %vm3012_vm7, %v3156_v19, %v8608_v10  ;;  %4242 = vadd.xlane.f32.xlu0 %v4241_v53  ;;  %v3224_v41 = vrot.slane %v2782_v3, %v8664_v44  ;;  %v11162_v43 = vld [vmem:[#allocation57_spill] sm:$0xff]  ;;  %v2860_v22 = vpop.xlane.xlu0 %2859 }
 0x3b9   : > { %v3989_v1 = vmul.f32 %v11101_v7, %v11160_v61  ;;  %v4356_v35 = vadd.f32 %v3987_v4, %v3986_v28  ;;  %v11161_v2 = vunpack.c.h.bf16 %v11158_v20  ;;  %v11163_v54 = vunpack.c.l.bf16 %v11162_v43  ;;  %v11165_v4 = vld [vmem:[#allocation64_spill] sm:$0xff] }
 0x3ba   : > { %v4319_v59 = vadd.f32 %v4318_v49, %v3961_v18  ;;  %v3258_v62 = vrot.slane %v2821_v39, %v8664_v44  ;;  %v11164_v31 = vunpack.c.h.bf16 %v11162_v43  ;;  %v11166_v53 = vunpack.c.l.bf16 %v11165_v4  ;;  %v11169_v18 = vld [vmem:[#allocation65_spill] sm:$0xff]  ;;  %v11171_v39 = vld [vmem:[#allocation142_spill] sm:$0xff]  ;;  %v11173_v49 = vld [vmem:[#allocation144_spill] sm:$0xff] }
 0x3bb   : > { %v4015_v37 = vmul.f32 %v11095_v23, %v11161_v2  ;;  %v4016_v21 = vmul.f32 %v11098_v25, %v11163_v54  ;;  %v4357_v28 = vadd.f32 %v4356_v35, %v3988_v9  ;;  %v11167_v3 = vunpack.c.h.bf16 %v11165_v4  ;;  %v11168_v25 = vld [vmem:[#allocation143_spill] sm:$0xff] }
 0x3bc   : > { %v4017_v10 = vmul.f32 %v11101_v7, %v11164_v31  ;;  %v3794_v23 = vmul.f32 %v8116_v33, %v11166_v53  ;;  %v11170_v60 = vunpack.c.l.bf16 %v11169_v18  ;;  %v8845_v20 = vsel %vm3012_vm7, %v3190_v15, %v8728_v0  ;;  %4320 = vadd.xlane.f32.xlu1 %v4319_v59 }
 0x3bd   : > { %v4395_v19 = vadd.f32 %v4015_v37, %v4014_v55  ;;  %v3795_v42 = vmul.f32 %v11168_v25, %v11167_v3  ;;  %v4358_v7 = vadd.f32 %v4357_v28, %v3989_v1  ;;  %v8849_v27 = vsub.s32 %v8517_v45, %v11020_v17  ;;  %v11174_v37 = vld [vmem:[#allocation60_spill] sm:$0xff]  ;;  %v11177_v1 = vld [vmem:[#allocation61_spill] sm:$0xff]  ;;  %v8874_v3 = vpop.xlane.xlu0 %2898 }
 0x3be   : > { %v3796_v9 = vmul.f32 %v11171_v39, %v11170_v60  ;;  %v11172_v55 = vunpack.c.h.bf16 %v11169_v18  ;;  %v11175_v43 = vunpack.c.l.bf16 %v11174_v37  ;;  %v11176_v31 = vunpack.c.h.bf16 %v11174_v37 }
 0x3bf   : > { %v4396_v35 = vadd.f32 %v4395_v19, %v4016_v21  ;;  %v4088_v2 = vadd.f32 %v3795_v42, %v3794_v23  ;;  %v8862_v15 = vsel %vm3012_vm7, %v3224_v41, %v8645_v6  ;;  %v8866_v45 = vsel %vm3012_vm7, %v3258_v62, %v8743_v58  ;;  %4359 = vadd.xlane.f32.xlu0 %v4358_v7  ;;  %v2631_v6 = vpop.xlane.xlu1 %2630  ;;  %v11180_v41 = vld [vmem:[#allocation62_spill] sm:$0xff] }
 0x3c0   : > { %v3797_v61 = vmul.f32 %v11173_v49, %v11172_v55  ;;  %v3766_v54 = vmul.f32 %v8116_v33, %v11175_v43  ;;  %v3767_v0 = vmul.f32 %v11168_v25, %v11176_v31  ;;  %v11178_v21 = vunpack.c.l.bf16 %v11177_v1  ;;  %v11183_v55 = vld [vmem:[#allocation63_spill] sm:$0xff]  ;;  %v11185_v43 = vld [vmem:[#allocation68_spill] sm:$0xff] }
 0x3c1   : > { %v11179_v28 = vunpack.c.h.bf16 %v11177_v1  ;;  %v4397_v4 = vadd.f32 %v4396_v35, %v4017_v10  ;;  %v4089_v53 = vadd.f32 %v4088_v2, %v3796_v9  ;;  %v11181_v42 = vunpack.c.l.bf16 %v11180_v41 }
 0x3c2   : > { %v3768_v59 = vmul.f32 %v11171_v39, %v11178_v21  ;;  %v4049_v23 = vadd.f32 %v3767_v0, %v3766_v54  ;;  %v3292_v62 = vrot.slane %v2860_v22, %v8664_v44  ;;  %v3093_v18 = vrot.slane %v2631_v6, %v8849_v27  ;;  %v2592_v6 = vpop.xlane.xlu0 %2591 }
 0x3c3   : > { %v3769_v19 = vmul.f32 %v11173_v49, %v11179_v28  ;;  %v3822_v58 = vmul.f32 %v8116_v33, %v11181_v42  ;;  %v11182_v60 = vunpack.c.h.bf16 %v11180_v41  ;;  %v11184_v37 = vunpack.c.l.bf16 %v11183_v55  ;;  %4398 = vadd.xlane.f32.xlu1 %v4397_v4  ;;  %v2709_v41 = vpop.xlane.xlu1 %2708  ;;  %v11192_v42 = vld [vmem:[#allocation72_spill] sm:$0xff] }
 0x3c4   : > { %v3018_v9 = vrot.slane %v8832_v12, %v8849_v27  ;;  %v4090_v35 = vadd.f32 %v4089_v53, %v3797_v61  ;;  %v4050_v2 = vadd.f32 %v4049_v23, %v3768_v59  ;;  %v11186_v54 = vunpack.c.l.bf16 %v11185_v43  ;;  %v11189_v61 = vld [vmem:[#allocation69_spill] sm:$0xff] }
 0x3c5   : > { %v3823_v7 = vmul.f32 %v11168_v25, %v11182_v60  ;;  %v3824_v10 = vmul.f32 %v11171_v39, %v11184_v37  ;;  %v8893_v31 = vsel %vm3019_vm8, %v3093_v18, %v3089_v48  ;;  %v11187_v0 = vunpack.c.h.bf16 %v11183_v55 }
 0x3c6   : > { %v3850_v22 = vmul.f32 %v8116_v33, %v11186_v54  ;;  %v11188_v28 = vunpack.c.h.bf16 %v11185_v43  ;;  %4091 = vadd.xlane.f32.xlu0 %v4090_v35  ;;  %v4051_v12 = vadd.f32 %v4050_v2, %v3769_v19  ;;  %v11190_v59 = vunpack.c.l.bf16 %v11189_v61  ;;  %v11195_v43 = vld [vmem:[#allocation73_spill] sm:$0xff] }
 0x3c7   : > { %v3825_v1 = vmul.f32 %v11173_v49, %v11187_v0  ;;  %v4127_v21 = vadd.f32 %v3823_v7, %v3822_v58  ;;  %v11191_v23 = vunpack.c.h.bf16 %v11189_v61  ;;  %v11193_v18 = vunpack.c.l.bf16 %v11192_v42 }
 0x3c8   : > { %v3851_v4 = vmul.f32 %v11168_v25, %v11188_v28  ;;  %v3852_v53 = vmul.f32 %v11171_v39, %v11190_v59  ;;  %v3059_v55 = vrot.slane %v2592_v6, %v8849_v27  ;;  %v3161_v19 = vrot.slane %v2709_v41, %v8849_v27  ;;  %4052 = vadd.xlane.f32.xlu1 %v4051_v12  ;;  %v11197_v28 = vld [vmem:[#allocation66_spill] sm:$0xff]  ;;  %v11201_v41 = vld [vmem:[#allocation67_spill] sm:$0xff] }
 0x3c9   : > { %v3853_v48 = vmul.f32 %v11173_v49, %v11191_v23  ;;  %v3906_v58 = vmul.f32 %v8116_v33, %v11193_v18  ;;  %v4128_v60 = vadd.f32 %v4127_v21, %v3824_v10  ;;  %v8914_v37 = vsel %vm3012_vm7, %v3292_v62, %v8673_v30 }
 0x3ca   : > { %v4166_v7 = vadd.f32 %v3851_v4, %v3850_v22  ;;  %v11194_v35 = vunpack.c.h.bf16 %v11192_v42  ;;  %v11196_v54 = vunpack.c.l.bf16 %v11195_v43  ;;  %v11198_v10 = vunpack.c.l.bf16 %v11197_v28  ;;  %v2670_v42 = vpop.xlane.xlu0 %2669 }
 0x3cb   : > { %v4129_v21 = vadd.f32 %v4128_v60, %v3825_v1  ;;  %v8927_v61 = vsel %vm3019_vm8, %v3059_v55, %v8784_v26  ;;  %v8931_v30 = vsel %vm3019_vm8, %v3161_v19, %v8819_v52  ;;  %v11199_v62 = vunpack.c.h.bf16 %v11195_v43  ;;  %v2787_v26 = vpop.xlane.xlu1 %2786 }
 0x3cc   : > { %v3907_v2 = vmul.f32 %v11168_v25, %v11194_v35  ;;  %v3908_v0 = vmul.f32 %v11171_v39, %v11196_v54  ;;  %v3878_v22 = vmul.f32 %v8116_v33, %v11198_v10  ;;  %v4167_v4 = vadd.f32 %v4166_v7, %v3852_v53 }
 0x3cd   : > { %v3909_v12 = vmul.f32 %v11173_v49, %v11199_v62  ;;  %v11200_v23 = vunpack.c.h.bf16 %v11197_v28  ;;  %v11202_v1 = vunpack.c.l.bf16 %v11201_v41  ;;  %v3326_v18 = vrot.slane %v8874_v3, %v8664_v44  ;;  %4130 = vadd.xlane.f32.xlu0 %v4129_v21  ;;  %v11207_v28 = vld [vmem:[#allocation71_spill] sm:$0xff] }
 0x3ce   : > { %v4244_v59 = vadd.f32 %v3907_v2, %v3906_v58  ;;  %v4168_v52 = vadd.f32 %v4167_v4, %v3853_v48  ;;  %v11203_v60 = vunpack.c.h.bf16 %v11201_v41  ;;  %v11204_v58 = vld [vmem:[#allocation70_spill] sm:$0xff]  ;;  %v11208_v10 = vunpack.c.l.bf16 %v11207_v28 }
 0x3cf   : > { %v3879_v6 = vmul.f32 %v11168_v25, %v11200_v23  ;;  %v3880_v53 = vmul.f32 %v11171_v39, %v11202_v1  ;;  %v11205_v55 = vunpack.c.l.bf16 %v11204_v58  ;;  %v11206_v43 = vunpack.c.h.bf16 %v11204_v58  ;;  %v11213_v58 = vld [vmem:[#allocation75_spill] sm:$0xff] }
 0x3d0   : > { %v3881_v7 = vmul.f32 %v11173_v49, %v11203_v60  ;;  %v4245_v35 = vadd.f32 %v4244_v59, %v3908_v0  ;;  %v3936_v3 = vmul.f32 %v11171_v39, %v11208_v10  ;;  %v8958_v48 = vsel %vm3019_vm8, %v3018_v9, %v8704_v38  ;;  %4169 = vadd.xlane.f32.xlu1 %v4168_v52  ;;  %v2748_v38 = vpop.xlane.xlu0 %2747  ;;  %v2865_v9 = vpop.xlane.xlu1 %2864 }
 0x3d1   : > { %v3934_v19 = vmul.f32 %v8116_v33, %v11205_v55  ;;  %v4205_v2 = vadd.f32 %v3879_v6, %v3878_v22  ;;  %v3935_v54 = vmul.f32 %v11168_v25, %v11206_v43  ;;  %v3127_v21 = vrot.slane %v2670_v42, %v8849_v27  ;;  %v11210_v22 = vld [vmem:[#allocation74_spill] sm:$0xff] }
 0x3d2   : > { %v11209_v4 = vunpack.c.h.bf16 %v11207_v28  ;;  %v11211_v62 = vunpack.c.l.bf16 %v11210_v22  ;;  %v4246_v23 = vadd.f32 %v4245_v35, %v3909_v12  ;;  %v11212_v1 = vunpack.c.h.bf16 %v11210_v22  ;;  %v11219_v22 = vld [vmem:[#allocation77_spill] sm:$0xff] }
 0x3d3   : > { %v4206_v6 = vadd.f32 %v4205_v2, %v3880_v53  ;;  %v4283_v41 = vadd.f32 %v3935_v54, %v3934_v19  ;;  %v8972_v42 = vsel %vm3012_vm7, %v3326_v18, %v8780_v46  ;;  %v3229_v52 = vrot.slane %v2787_v26, %v8849_v27  ;;  %v11216_v54 = vld [vmem:[#allocation76_spill] sm:$0xff] }
 0x3d4   : > { %v3937_v0 = vmul.f32 %v11173_v49, %v11209_v4  ;;  %v3990_v59 = vmul.f32 %v8116_v33, %v11211_v62  ;;  %v3991_v60 = vmul.f32 %v11168_v25, %v11212_v1  ;;  %v11214_v55 = vunpack.c.l.bf16 %v11213_v58  ;;  %4247 = vadd.xlane.f32.xlu0 %v4246_v23  ;;  %v2597_v1 = vpop.xlane.xlu1 %2596 }
 0x3d5   : > { %v11215_v12 = vunpack.c.h.bf16 %v11213_v58  ;;  %v4207_v19 = vadd.f32 %v4206_v6, %v3881_v7  ;;  %v4284_v35 = vadd.f32 %v4283_v41, %v3936_v3  ;;  %v11217_v28 = vunpack.c.l.bf16 %v11216_v54  ;;  %v11221_v6 = vld [vmem:[#allocation80_spill] sm:$0xff] }
 0x3d6   : > { %v3992_v43 = vmul.f32 %v11171_v39, %v11214_v55  ;;  %v4361_v2 = vadd.f32 %v3991_v60, %v3990_v59  ;;  %v8986_v46 = vsel %vm3019_vm8, %v3127_v21, %v8805_v5  ;;  %v3195_v26 = vrot.slane %v2748_v38, %v8849_v27  ;;  %v2826_v21 = vpop.xlane.xlu0 %2825 }
 0x3d7   : > { %v3993_v53 = vmul.f32 %v11173_v49, %v11215_v12  ;;  %v3962_v10 = vmul.f32 %v8116_v33, %v11217_v28  ;;  %v11218_v18 = vunpack.c.h.bf16 %v11216_v54  ;;  %v11220_v62 = vunpack.c.l.bf16 %v11219_v22  ;;  %4208 = vadd.xlane.f32.xlu1 %v4207_v19  ;;  %v11228_v28 = vld [vmem:[#allocation78_spill] sm:$0xff] }
 0x3d8   : > { %v4285_v3 = vadd.f32 %v4284_v35, %v3937_v0  ;;  %v4362_v59 = vadd.f32 %v4361_v2, %v3992_v43  ;;  %v3297_v23 = vrot.slane %v2865_v9, %v8849_v27  ;;  %v11222_v41 = vunpack.c.l.bf16 %v11221_v6  ;;  %v11225_v0 = vld [vmem:[#allocation81_spill] sm:$0xff] }
 0x3d9   : > { %v3963_v4 = vmul.f32 %v11168_v25, %v11218_v18  ;;  %v3964_v7 = vmul.f32 %v11171_v39, %v11220_v62  ;;  %v11223_v60 = vunpack.c.h.bf16 %v11219_v22  ;;  %v11224_v55 = vunpack.c.h.bf16 %v11221_v6 }
 0x3da   : > { %v3798_v5 = vmul.f32 %v8164_v56, %v11222_v41  ;;  %v11226_v43 = vunpack.c.l.bf16 %v11225_v0  ;;  %4286 = vadd.xlane.f32.xlu0 %v4285_v3  ;;  %v4363_v19 = vadd.f32 %v4362_v59, %v3993_v53  ;;  %v11227_v35 = vunpack.c.h.bf16 %v11225_v0  ;;  %v11231_v3 = vld [vmem:[#allocation79_spill] sm:$0xff] }
 0x3db   : > { %v3965_v38 = vmul.f32 %v11173_v49, %v11223_v60  ;;  %v4322_v58 = vadd.f32 %v3963_v4, %v3962_v10  ;;  %v3799_v12 = vmul.f32 %v8172_v50, %v11224_v55  ;;  %v9013_v54 = vsub.s32 %v8554_v24, %v11020_v17  ;;  %v2675_v55 = vpop.xlane.xlu1 %2674 }
 0x3dc   : > { %v3800_v9 = vmul.f32 %v8166_v63, %v11226_v43  ;;  %v3801_v2 = vmul.f32 %v8174_v29, %v11227_v35  ;;  %v11229_v10 = vunpack.c.l.bf16 %v11228_v28  ;;  %v11230_v62 = vunpack.c.h.bf16 %v11228_v28  ;;  %4364 = vadd.xlane.f32.xlu1 %v4363_v19  ;;  %v11237_v43 = vld [vmem:[#allocation95_spill] sm:$0xff] }
 0x3dd   : > { %v4323_v4 = vadd.f32 %v4322_v58, %v3964_v7  ;;  %v4093_v22 = vadd.f32 %v3799_v12, %v3798_v5  ;;  %v11232_v53 = vunpack.c.l.bf16 %v11231_v3  ;;  %v9026_v41 = vsel %vm3019_vm8, %v3229_v52, %v8862_v15  ;;  %v11234_v5 = vld [vmem:[#allocation94_spill] sm:$0xff]  ;;  %v2904_v58 = vpop.xlane.xlu0 %2903 }
 0x3de   : > { %v4018_v18 = vmul.f32 %v8116_v33, %v11229_v10  ;;  %v4019_v6 = vmul.f32 %v11168_v25, %v11230_v62  ;;  %v9030_v24 = vsel %vm3019_vm8, %v3195_v26, %v8845_v20  ;;  %v11233_v33 = vunpack.c.h.bf16 %v11231_v3  ;;  %v11243_v62 = vld [vmem:[#allocation85_spill] sm:$0xff] }
 0x3df   : > { %v4020_v59 = vmul.f32 %v11171_v39, %v11232_v53  ;;  %v11235_v60 = vunpack.c.l.bf16 %v11234_v5  ;;  %v4324_v39 = vadd.f32 %v4323_v4, %v3965_v38  ;;  %v4094_v12 = vadd.f32 %v4093_v22, %v3800_v9  ;;  %v2753_v3 = vpop.xlane.xlu1 %2752 }
 0x3e0   : > { %v4021_v7 = vmul.f32 %v11173_v49, %v11233_v33  ;;  %v4400_v0 = vadd.f32 %v4019_v6, %v4018_v18  ;;  %v11236_v15 = vunpack.c.h.bf16 %v11234_v5  ;;  %v9043_v20 = vsel %vm3019_vm8, %v3297_v23, %v8914_v37  ;;  %v11240_v37 = vld [vmem:[#allocation84_spill] sm:$0xff] }
 0x3e1   : > { %v3882_v25 = vmul.f32 %v8164_v56, %v11235_v60  ;;  %v3263_v26 = vrot.slane %v2826_v21, %v8849_v27  ;;  %v3064_v49 = vrot.slane %v2597_v1, %v9013_v54  ;;  %v11238_v19 = vunpack.c.l.bf16 %v11237_v43  ;;  %4325 = vadd.xlane.f32.xlu0 %v4324_v39  ;;  %v2557_v53 = vpop.xlane.xlu0 %2556  ;;  %v11246_v39 = vld [vmem:[#allocation86_spill] sm:$0xff] }
 0x3e2   : > { %v3883_v52 = vmul.f32 %v8172_v50, %v11236_v15  ;;  %v4095_v38 = vadd.f32 %v4094_v12, %v3801_v2  ;;  %v4401_v9 = vadd.f32 %v4400_v0, %v4020_v59  ;;  %v11239_v28 = vunpack.c.h.bf16 %v11237_v43  ;;  %v11249_v43 = vld [vmem:[#allocation87_spill] sm:$0xff] }
 0x3e3   : > { %v3884_v35 = vmul.f32 %v8166_v63, %v11238_v19  ;;  %v3331_v4 = vrot.slane %v2904_v58, %v8849_v27  ;;  %v11241_v23 = vunpack.c.l.bf16 %v11240_v37  ;;  %v11242_v1 = vunpack.c.h.bf16 %v11240_v37 }
 0x3e4   : > { %v3885_v10 = vmul.f32 %v8174_v29, %v11239_v28  ;;  %v4210_v18 = vadd.f32 %v3883_v52, %v3882_v25  ;;  %v11244_v6 = vunpack.c.l.bf16 %v11243_v62  ;;  %4096 = vadd.xlane.f32.xlu1 %v4095_v38  ;;  %v4402_v59 = vadd.f32 %v4401_v9, %v4021_v7 }
 0x3e5   : > { %v3910_v21 = vmul.f32 %v8164_v56, %v11241_v23  ;;  %v3911_v22 = vmul.f32 %v8172_v50, %v11242_v1  ;;  %v3132_v5 = vrot.slane %v2675_v55, %v9013_v54  ;;  %v11245_v60 = vunpack.c.h.bf16 %v11243_v62  ;;  %v11252_v23 = vld [vmem:[#allocation96_spill] sm:$0xff]  ;;  %v2636_v62 = vpop.xlane.xlu0 %2635 }
 0x3e6   : > { %v3912_v2 = vmul.f32 %v8166_v63, %v11244_v6  ;;  %v4211_v33 = vadd.f32 %v4210_v18, %v3884_v35  ;;  %v11247_v12 = vunpack.c.l.bf16 %v11246_v39  ;;  %v11248_v15 = vunpack.c.h.bf16 %v11246_v39  ;;  %4403 = vadd.xlane.f32.xlu0 %v4402_v59 }
 0x3e7   : > { %v3913_v25 = vmul.f32 %v8174_v29, %v11245_v60  ;;  %v4249_v58 = vadd.f32 %v3911_v22, %v3910_v21  ;;  %v11250_v19 = vunpack.c.l.bf16 %v11249_v43  ;;  %v3264_v55 = vsel %vm3019_vm8, %v3263_v26, %v8866_v45  ;;  %v2831_v26 = vpop.xlane.xlu1 %2830 }
 0x3e8   : > { %v3770_v0 = vmul.f32 %v8164_v56, %v11247_v12  ;;  %v3771_v52 = vmul.f32 %v8172_v50, %v11248_v15  ;;  %v9080_v35 = vsel %vm3026_vm9, %v3064_v49, %v8927_v61  ;;  %v4212_v38 = vadd.f32 %v4211_v33, %v3885_v10  ;;  %v11255_v10 = vld [vmem:[#allocation97_spill] sm:$0xff]  ;;  %v11258_v12 = vld [vmem:[#allocation90_spill] sm:$0xff] }
 0x3e9   : > { %v3772_v7 = vmul.f32 %v8166_v63, %v11250_v19  ;;  %v11251_v9 = vunpack.c.h.bf16 %v11249_v43  ;;  %v4250_v18 = vadd.f32 %v4249_v58, %v3912_v2  ;;  %v11253_v21 = vunpack.c.l.bf16 %v11252_v23 }
 0x3ea   : > { %v4054_v37 = vadd.f32 %v3771_v52, %v3770_v0  ;;  %v11254_v22 = vunpack.c.h.bf16 %v11252_v23  ;;  %4213 = vadd.xlane.f32.xlu1 %v4212_v38  ;;  %v9093_v61 = vsel %vm3019_vm8, %v3331_v4, %v8972_v42  ;;  %v9097_v49 = vsel %vm3026_vm9, %v3132_v5, %v8986_v46  ;;  %v11261_v52 = vld [vmem:[#allocation91_spill] sm:$0xff] }
 0x3eb   : > { %v3773_v28 = vmul.f32 %v8174_v29, %v11251_v9  ;;  %v3938_v1 = vmul.f32 %v8164_v56, %v11253_v21  ;;  %v11256_v6 = vunpack.c.l.bf16 %v11255_v10  ;;  %v11257_v59 = vunpack.c.h.bf16 %v11255_v10  ;;  %v9122_v23 = vpop.xlane.xlu1 %2908 }
 0x3ec   : > { %v3939_v45 = vmul.f32 %v8172_v50, %v11254_v22  ;;  %v4251_v60 = vadd.f32 %v4250_v18, %v3913_v25  ;;  %v4055_v58 = vadd.f32 %v4054_v37, %v3772_v7  ;;  %v11259_v0 = vunpack.c.l.bf16 %v11258_v12  ;;  %v11264_v18 = vld [vmem:[#allocation98_spill] sm:$0xff] }
 0x3ed   : > { %v3940_v2 = vmul.f32 %v8166_v63, %v11256_v6  ;;  %v3941_v33 = vmul.f32 %v8174_v29, %v11257_v59  ;;  %v3200_v4 = vrot.slane %v2753_v3, %v9013_v54  ;;  %v3025_v46 = vrot.slane %v2557_v53, %v9013_v54  ;;  %v9124_v53 = vpop.xlane.xlu0 %2713 }
 0x3ee   : > { %v4288_v39 = vadd.f32 %v3939_v45, %v3938_v1  ;;  %v3826_v42 = vmul.f32 %v8164_v56, %v11259_v0  ;;  %v11260_v5 = vunpack.c.h.bf16 %v11258_v12  ;;  %v11262_v43 = vunpack.c.l.bf16 %v11261_v52  ;;  %4252 = vadd.xlane.f32.xlu1 %v4251_v60  ;;  %v11267_v45 = vld [vmem:[#allocation99_spill] sm:$0xff]  ;;  %v11270_v60 = vld [vmem:[#allocation82_spill] sm:$0xff] }
 0x3ef   : > { %v4056_v38 = vadd.f32 %v4055_v58, %v3773_v28  ;;  %v11263_v7 = vunpack.c.h.bf16 %v11261_v52  ;;  %v11265_v37 = vunpack.c.l.bf16 %v11264_v18  ;;  %v3268_v1 = vrot.slane %v2831_v26, %v9013_v54  ;;  %v11273_v52 = vld [vmem:[#allocation83_spill] sm:$0xff] }
 0x3f0   : > { %v3827_v15 = vmul.f32 %v8172_v50, %v11260_v5  ;;  %v3828_v19 = vmul.f32 %v8166_v63, %v11262_v43  ;;  %v4289_v25 = vadd.f32 %v4288_v39, %v3940_v2  ;;  %v11266_v22 = vunpack.c.h.bf16 %v11264_v18 }
 0x3f1   : > { %v3829_v9 = vmul.f32 %v8174_v29, %v11263_v7  ;;  %v3994_v3 = vmul.f32 %v8164_v56, %v11265_v37  ;;  %v11268_v10 = vunpack.c.l.bf16 %v11267_v45  ;;  %4057 = vadd.xlane.f32.xlu0 %v4056_v38  ;;  %v3098_v59 = vrot.slane %v2636_v62, %v9013_v54  ;;  %v11276_v7 = vld [vmem:[#allocation88_spill] sm:$0xff] }
 0x3f2   : > { %v4132_v21 = vadd.f32 %v3827_v15, %v3826_v42  ;;  %v3995_v28 = vmul.f32 %v8172_v50, %v11266_v22  ;;  %v4290_v2 = vadd.f32 %v4289_v25, %v3941_v33  ;;  %v11269_v58 = vunpack.c.h.bf16 %v11267_v45 }
 0x3f3   : > { %v3996_v6 = vmul.f32 %v8166_v63, %v11268_v10  ;;  %v11271_v12 = vunpack.c.l.bf16 %v11270_v60  ;;  %v11272_v5 = vunpack.c.h.bf16 %v11270_v60  ;;  %v11274_v43 = vunpack.c.l.bf16 %v11273_v52  ;;  %v11279_v10 = vld [vmem:[#allocation89_spill] sm:$0xff] }
 0x3f4   : > { %v3997_v39 = vmul.f32 %v8174_v29, %v11269_v58  ;;  %v4133_v0 = vadd.f32 %v4132_v21, %v3828_v19  ;;  %v4366_v42 = vadd.f32 %v3995_v28, %v3994_v3  ;;  %v9148_v62 = vsel %vm3026_vm9, %v3200_v4, %v9030_v24  ;;  %v2792_v3 = vpop.xlane.xlu0 %2791  ;;  %v9160_v21 = vpop.xlane.xlu1 %2561  ;;  %4291 = vadd.xlane.f32.xlu1 %v4290_v2 }
 0x3f5   : > { %v3854_v26 = vmul.f32 %v8164_v56, %v11271_v12  ;;  %v3855_v15 = vmul.f32 %v8172_v50, %v11272_v5  ;;  %v3856_v33 = vmul.f32 %v8166_v63, %v11274_v43  ;;  %v9152_v38 = vsel %vm3026_vm9, %v3025_v46, %v8958_v48 }
 0x3f6   : > { %v11275_v25 = vunpack.c.h.bf16 %v11273_v52  ;;  %v11277_v18 = vunpack.c.l.bf16 %v11276_v7  ;;  %v4134_v22 = vadd.f32 %v4133_v0, %v3829_v9  ;;  %v4367_v28 = vadd.f32 %v4366_v42, %v3996_v6  ;;  %v11282_v0 = vld [vmem:[#allocation104_spill] sm:$0xff] }
 0x3f7   : > { %v4171_v24 = vadd.f32 %v3855_v15, %v3854_v26  ;;  %v11278_v4 = vunpack.c.h.bf16 %v11276_v7  ;;  %v9166_v46 = vsel %vm3026_vm9, %v3268_v1, %v3264_v55  ;;  %v9170_v45 = vsel %vm3026_vm9, %v3098_v59, %v8893_v31  ;;  %v11285_v15 = vld [vmem:[#allocation105_spill] sm:$0xff] }
 0x3f8   : > { %v3857_v19 = vmul.f32 %v8174_v29, %v11275_v25  ;;  %v3966_v37 = vmul.f32 %v8164_v56, %v11277_v18  ;;  %v11280_v58 = vunpack.c.l.bf16 %v11279_v10  ;;  %v11281_v2 = vunpack.c.h.bf16 %v11279_v10  ;;  %4135 = vadd.xlane.f32.xlu0 %v4134_v22  ;;  %v2870_v43 = vpop.xlane.xlu0 %2869  ;;  %v11291_v10 = vld [vmem:[#allocation93_spill] sm:$0xff] }
 0x3f9   : > { %v3967_v48 = vmul.f32 %v8172_v50, %v11278_v4  ;;  %v4368_v6 = vadd.f32 %v4367_v28, %v3997_v39  ;;  %v4172_v12 = vadd.f32 %v4171_v24, %v3856_v33  ;;  %v11283_v42 = vunpack.c.l.bf16 %v11282_v0  ;;  %v2641_v33 = vpop.xlane.xlu1 %2640 }
 0x3fa   : > { %v3968_v60 = vmul.f32 %v8166_v63, %v11280_v58  ;;  %v3969_v9 = vmul.f32 %v8174_v29, %v11281_v2  ;;  %v3336_v31 = vrot.slane %v9122_v23, %v9013_v54  ;;  %v3166_v1 = vrot.slane %v9124_v53, %v9013_v54  ;;  %v11287_v23 = vld [vmem:[#allocation92_spill] sm:$0xff] }
 0x3fb   : > { %v4327_v26 = vadd.f32 %v3967_v48, %v3966_v37  ;;  %v3802_v55 = vmul.f32 %v8185_v57, %v11283_v42  ;;  %v11284_v59 = vunpack.c.h.bf16 %v11282_v0  ;;  %v11286_v52 = vunpack.c.l.bf16 %v11285_v15  ;;  %4369 = vadd.xlane.f32.xlu1 %v4368_v6  ;;  %v11294_v6 = vld [vmem:[#allocation102_spill] sm:$0xff] }
 0x3fc   : > { %v4173_v25 = vadd.f32 %v4172_v12, %v3857_v19  ;;  %v9193_v18 = vsub.s32 %v8583_v34, %v11020_v17  ;;  %v11288_v37 = vunpack.c.l.bf16 %v11287_v23  ;;  %v11289_v22 = vunpack.c.h.bf16 %v11285_v15 }
 0x3fd   : > { %v3803_v5 = vmul.f32 %v8192_v32, %v11284_v59  ;;  %v3804_v39 = vmul.f32 %v8187_v40, %v11286_v52  ;;  %v4328_v7 = vadd.f32 %v4327_v26, %v3968_v60  ;;  %v11290_v4 = vunpack.c.h.bf16 %v11287_v23  ;;  %v11297_v59 = vld [vmem:[#allocation103_spill] sm:$0xff] }
 0x3fe   : > { %v4022_v53 = vmul.f32 %v8164_v56, %v11288_v37  ;;  %v3805_v28 = vmul.f32 %v8194_v8, %v11289_v22  ;;  %v11292_v19 = vunpack.c.l.bf16 %v11291_v10  ;;  %4174 = vadd.xlane.f32.xlu0 %v4173_v25  ;;  %v3234_v60 = vrot.slane %v2792_v3, %v9013_v54  ;;  %v9222_v3 = vpop.xlane.xlu1 %2718 }
 0x3ff   : > { %v4098_v24 = vadd.f32 %v3803_v5, %v3802_v55  ;;  %v4023_v48 = vmul.f32 %v8172_v50, %v11290_v4  ;;  %v4329_v34 = vadd.f32 %v4328_v7, %v3969_v9  ;;  %v11293_v2 = vunpack.c.h.bf16 %v11291_v10  ;;  %v9220_v5 = vpop.xlane.xlu0 %2601 }
 0x400   : > { %v4024_v58 = vmul.f32 %v8166_v63, %v11292_v19  ;;  %v11295_v12 = vunpack.c.l.bf16 %v11294_v6  ;;  %v11296_v50 = vunpack.c.h.bf16 %v11294_v6  ;;  %v11298_v63 = vunpack.c.l.bf16 %v11297_v59 }
 0x401   : > { %v4025_v56 = vmul.f32 %v8174_v29, %v11293_v2  ;;  %v4099_v0 = vadd.f32 %v4098_v24, %v3804_v39  ;;  %v4405_v42 = vadd.f32 %v4023_v48, %v4022_v53  ;;  %v9226_v29 = vsel %vm3026_vm9, %v3336_v31, %v9093_v61  ;;  %v11300_v53 = vld [vmem:[#allocation110_spill] sm:$0xff] }
 0x402   : > { %v3830_v26 = vmul.f32 %v8185_v57, %v11295_v12  ;;  %v3831_v55 = vmul.f32 %v8192_v32, %v11296_v50  ;;  %v3832_v9 = vmul.f32 %v8187_v40, %v11298_v63  ;;  %v9230_v15 = vsel %vm3026_vm9, %v3166_v1, %v8931_v30  ;;  %4330 = vadd.xlane.f32.xlu0 %v4329_v34  ;;  %v11303_v1 = vld [vmem:[#allocation111_spill] sm:$0xff]  ;;  %v9255_v2 = vpop.xlane.xlu1 %2796 }
 0x403   : > { %v3032_v52 = vrot.slane %v9160_v21, %v9193_v18  ;;  %v11299_v39 = vunpack.c.h.bf16 %v11297_v59  ;;  %v4100_v7 = vadd.f32 %v4099_v0, %v3805_v28  ;;  %v4406_v23 = vadd.f32 %v4405_v42, %v4024_v58  ;;  %v11305_v58 = vld [vmem:[#allocation100_spill] sm:$0xff] }
 0x404   : > { %v4137_v37 = vadd.f32 %v3831_v55, %v3830_v26  ;;  %v11301_v22 = vunpack.c.l.bf16 %v11300_v53  ;;  %v9242_v61 = vsel %vm3026_vm9, %v3234_v60, %v9026_v41  ;;  %v3302_v30 = vrot.slane %v2870_v43, %v9013_v54  ;;  %v2680_v60 = vpop.xlane.xlu0 %2679 }
 0x405   : > { %v3833_v25 = vmul.f32 %v8194_v8, %v11299_v39  ;;  %v11302_v21 = vunpack.c.h.bf16 %v11300_v53  ;;  %v11304_v4 = vunpack.c.l.bf16 %v11303_v1  ;;  %4101 = vadd.xlane.f32.xlu1 %v4100_v7  ;;  %v4407_v48 = vadd.f32 %v4406_v23, %v4025_v56  ;;  %v11309_v56 = vld [vmem:[#allocation101_spill] sm:$0xff] }
 0x406   : > { %v3942_v24 = vmul.f32 %v8185_v57, %v11301_v22  ;;  %v4138_v10 = vadd.f32 %v4137_v37, %v3832_v9  ;;  %v3103_v19 = vrot.slane %v2641_v33, %v9193_v18  ;;  %v11306_v34 = vunpack.c.l.bf16 %v11305_v58  ;;  %v11312_v9 = vld [vmem:[#allocation114_spill] sm:$0xff] }
 0x407   : > { %v3943_v31 = vmul.f32 %v8192_v32, %v11302_v21  ;;  %v3944_v28 = vmul.f32 %v8187_v40, %v11304_v4  ;;  %v11307_v43 = vunpack.c.h.bf16 %v11303_v1  ;;  %v11308_v26 = vunpack.c.h.bf16 %v11305_v58  ;;  %4408 = vadd.xlane.f32.xlu0 %v4407_v48  ;;  %v11318_v4 = vld [vmem:[#allocation108_spill] sm:$0xff]  ;;  %v9298_v58 = vpop.xlane.xlu1 %2874 }
 0x408   : > { %v3774_v41 = vmul.f32 %v8185_v57, %v11306_v34  ;;  %v11310_v42 = vunpack.c.l.bf16 %v11309_v56  ;;  %v9268_v50 = vsel %vm3033_vm10, %v3032_v52, %v9152_v38  ;;  %v4139_v55 = vadd.f32 %v4138_v10, %v3833_v25  ;;  %v9296_v10 = vpop.xlane.xlu0 %2757 }
 0x409   : > { %v3945_v6 = vmul.f32 %v8194_v8, %v11307_v43  ;;  %v4293_v12 = vadd.f32 %v3943_v31, %v3942_v24  ;;  %v3775_v0 = vmul.f32 %v8192_v32, %v11308_v26  ;;  %v11311_v59 = vunpack.c.h.bf16 %v11309_v56  ;;  %v11315_v24 = vld [vmem:[#allocation115_spill] sm:$0xff] }
 0x40a   : > { %v3776_v33 = vmul.f32 %v8187_v40, %v11310_v42  ;;  %v11313_v39 = vunpack.c.l.bf16 %v11312_v9  ;;  %v11314_v53 = vunpack.c.h.bf16 %v11312_v9  ;;  %v11316_v21 = vunpack.c.l.bf16 %v11315_v24  ;;  %4140 = vadd.xlane.f32.xlu1 %v4139_v55 }
 0x40b   : > { %v3777_v63 = vmul.f32 %v8194_v8, %v11311_v59  ;;  %v4294_v23 = vadd.f32 %v4293_v12, %v3944_v28  ;;  %v4059_v37 = vadd.f32 %v3775_v0, %v3774_v41  ;;  %v9284_v52 = vsel %vm3026_vm9, %v3302_v30, %v9043_v20  ;;  %v11321_v12 = vld [vmem:[#allocation109_spill] sm:$0xff]  ;;  %v11324_v59 = vld [vmem:[#allocation106_spill] sm:$0xff] }
 0x40c   : > { %v3998_v7 = vmul.f32 %v8185_v57, %v11313_v39  ;;  %v3999_v22 = vmul.f32 %v8192_v32, %v11314_v53  ;;  %v4000_v38 = vmul.f32 %v8187_v40, %v11316_v21  ;;  %v9288_v25 = vsel %vm3033_vm10, %v3103_v19, %v9170_v45 }
 0x40d   : > { %v11317_v31 = vunpack.c.h.bf16 %v11315_v24  ;;  %v11319_v28 = vunpack.c.l.bf16 %v11318_v4  ;;  %v4295_v34 = vadd.f32 %v4294_v23, %v3945_v6  ;;  %v4060_v41 = vadd.f32 %v4059_v37, %v3776_v33  ;;  %v11327_v37 = vld [vmem:[#allocation107_spill] sm:$0xff]  ;;  %v9327_v24 = vpop.xlane.xlu1 %2610 }
 0x40e   : > { %v4371_v20 = vadd.f32 %v3999_v22, %v3998_v7  ;;  %v11320_v30 = vunpack.c.h.bf16 %v11318_v4  ;;  %v3069_v19 = vrot.slane %v9220_v5, %v9193_v18  ;;  %v3171_v43 = vrot.slane %v9222_v3, %v9193_v18  ;;  %v9325_v22 = vpop.xlane.xlu0 %2835 }
 0x40f   : > { %v4001_v1 = vmul.f32 %v8194_v8, %v11317_v31  ;;  %v3858_v48 = vmul.f32 %v8185_v57, %v11319_v28  ;;  %v11322_v26 = vunpack.c.l.bf16 %v11321_v12  ;;  %v11323_v56 = vunpack.c.h.bf16 %v11321_v12  ;;  %4296 = vadd.xlane.f32.xlu1 %v4295_v34  ;;  %v11336_v12 = vld [vmem:[#allocation146_spill] sm:$0xff] }
 0x410   : > { %v3859_v45 = vmul.f32 %v8192_v32, %v11320_v30  ;;  %v4061_v42 = vadd.f32 %v4060_v41, %v3777_v63  ;;  %v4372_v33 = vadd.f32 %v4371_v20, %v4000_v38  ;;  %v11325_v9 = vunpack.c.l.bf16 %v11324_v59  ;;  %v11332_v41 = vld [vmem:[#allocation126_spill] sm:$0xff]  ;;  %v11334_v30 = vld [vmem:[#allocation145_spill] sm:$0xff] }
 0x411   : > { %v3860_v0 = vmul.f32 %v8187_v40, %v11322_v26  ;;  %v3861_v6 = vmul.f32 %v8194_v8, %v11323_v56  ;;  %v3137_v5 = vrot.slane %v2680_v60, %v9193_v18  ;;  %v3239_v3 = vrot.slane %v9255_v2, %v9193_v18 }
 0x412   : > { %v4176_v55 = vadd.f32 %v3859_v45, %v3858_v48  ;;  %v3886_v39 = vmul.f32 %v8185_v57, %v11325_v9  ;;  %v11326_v7 = vunpack.c.h.bf16 %v11324_v59  ;;  %v11328_v53 = vunpack.c.l.bf16 %v11327_v37  ;;  %4062 = vadd.xlane.f32.xlu0 %v4061_v42 }
 0x413   : > { %v4373_v21 = vadd.f32 %v4372_v33, %v4001_v1  ;;  %v11329_v60 = vunpack.c.h.bf16 %v11327_v37  ;;  %v11330_v2 = vunpack.c.l.bf16 %v7208_v36  ;;  %v11331_v48 = vunpack.c.h.bf16 %v7208_v36 }
 0x414   : > { %v3887_v23 = vmul.f32 %v8192_v32, %v11326_v7  ;;  %v3888_v63 = vmul.f32 %v8187_v40, %v11328_v53  ;;  %v4177_v38 = vadd.f32 %v4176_v55, %v3860_v0  ;;  %v11333_v20 = vunpack.c.l.bf16 %v11332_v41 }
 0x415   : > { %v3889_v31 = vmul.f32 %v8194_v8, %v11329_v60  ;;  %v3778_v4 = vmul.f32 %v8229_v16, %v11330_v2  ;;  %v3779_v34 = vmul.f32 %v8237_v47, %v11331_v48  ;;  %v11335_v1 = vunpack.c.h.bf16 %v11332_v41  ;;  %4374 = vadd.xlane.f32.xlu1 %v4373_v21 }
 0x416   : > { %v4215_v28 = vadd.f32 %v3887_v23, %v3886_v39  ;;  %v3780_v45 = vmul.f32 %v11334_v30, %v11333_v20  ;;  %v9346_v0 = vsel %vm3033_vm10, %v3069_v19, %v9080_v35  ;;  %v9350_v56 = vsel %vm3033_vm10, %v3171_v43, %v9230_v15  ;;  %v9359_v39 = vpop.xlane.xlu0 %2913  ;;  %v9361_v35 = vpop.xlane.xlu1 %2688 }
 0x417   : > { %v3781_v26 = vmul.f32 %v11336_v12, %v11335_v1  ;;  %v4178_v42 = vadd.f32 %v4177_v38, %v3861_v6  ;;  %v4064_v36 = vsel %vm2563_vm5, %v3778_v4, 0.0  ;;  %v9355_v33 = vsel %vm3033_vm10, %v3137_v5, %v9097_v49  ;;  %v11337_v49 = vld [vmem:[#allocation112_spill] sm:$0xff]  ;;  %v11342_v38 = vld [vmem:[#allocation129_spill] sm:$0xff] }
 0x418   : > { %v4216_v55 = vadd.f32 %v4215_v28, %v3888_v63  ;;  %v4065_v59 = vsel %vm2563_vm5, %v3779_v34, 0.0  ;;  %v4067_v9 = vsel %vm2563_vm5, %v3780_v45, 0.0  ;;  %v9365_v15 = vsel %vm3033_vm10, %v3239_v3, %v9242_v61  ;;  %v11340_v63 = vld [vmem:[#allocation113_spill] sm:$0xff] }
 0x419   : > { %4179 = vadd.xlane.f32.xlu0 %v4178_v42  ;;  %v4066_v19 = vadd.f32 %v4065_v59, %v4064_v36  ;;  %v3205_v43 = vrot.slane %v9296_v10, %v9193_v18  ;;  %v11338_v6 = vunpack.c.l.bf16 %v11337_v49  ;;  %v4069_v23 = vsel %vm2563_vm5, %v3781_v26, 0.0 }
 0x41a   : > { %v4217_v7 = vadd.f32 %v4216_v55, %v3889_v31  ;;  %v11339_v37 = vunpack.c.h.bf16 %v11337_v49  ;;  %v11341_v21 = vunpack.c.l.bf16 %v11340_v63  ;;  %v11343_v60 = vunpack.c.l.bf16 %v11342_v38  ;;  %v11345_v31 = vld [vmem:[#allocation130_spill] sm:$0xff]  ;;  %v9398_v42 = vpop.xlane.xlu1 %2766  ;;  %v9400_v36 = vpop.xlane.xlu0 %2571 }
 0x41b   : > { %v3914_v5 = vmul.f32 %v8185_v57, %v11338_v6  ;;  %v4068_v3 = vadd.f32 %v4067_v9, %v4066_v19  ;;  %v11344_v2 = vunpack.c.h.bf16 %v11342_v38  ;;  %v11346_v28 = vunpack.c.l.bf16 %v11345_v31 }
 0x41c   : > { %v3915_v53 = vmul.f32 %v8192_v32, %v11339_v37  ;;  %v3916_v61 = vmul.f32 %v8187_v40, %v11341_v21  ;;  %v3834_v10 = vmul.f32 %v8229_v16, %v11343_v60  ;;  %v11347_v34 = vunpack.c.h.bf16 %v11340_v63  ;;  %v11349_v37 = vld [vmem:[#allocation116_spill] sm:$0xff]  ;;  %v11352_v21 = vld [vmem:[#allocation117_spill] sm:$0xff]  ;;  %v11354_v60 = vld [vmem:[#allocation122_spill] sm:$0xff] }
 0x41d   : > { %v3835_v4 = vmul.f32 %v8237_v47, %v11344_v2  ;;  %v3836_v48 = vmul.f32 %v11334_v30, %v11346_v28  ;;  %v11348_v45 = vunpack.c.h.bf16 %v11345_v31  ;;  %v9396_v26 = vsub.s32 %v8617_v51, %v11020_v17  ;;  %4218 = vadd.xlane.f32.xlu0 %v4217_v7 }
 0x41e   : > { %v3917_v41 = vmul.f32 %v8194_v8, %v11347_v34  ;;  %v4254_v20 = vadd.f32 %v3915_v53, %v3914_v5  ;;  %v4070_v55 = vadd.f32 %v4069_v23, %v4068_v3  ;;  %v4142_v59 = vsel %vm2563_vm5, %v3834_v10, 0.0  ;;  %v9426_v31 = vpop.xlane.xlu0 %2649 }
 0x41f   : > { %v3837_v1 = vmul.f32 %v11336_v12, %v11348_v45  ;;  %v4143_v9 = vsel %vm2563_vm5, %v3835_v4, 0.0  ;;  %v4145_v19 = vsel %vm2563_vm5, %v3836_v48, 0.0  ;;  %v3307_v49 = vrot.slane %v9298_v58, %v9193_v18  ;;  %v9424_v4 = vpop.xlane.xlu1 %2844  ;;  %v11358_v45 = vld [vmem:[#allocation123_spill] sm:$0xff] }
 0x420   : > { %v4255_v6 = vadd.f32 %v4254_v20, %v3916_v61  ;;  %v4144_v5 = vadd.f32 %v4143_v9, %v4142_v59  ;;  %v3273_v17 = vrot.slane %v9325_v22, %v9193_v18  ;;  %4071 = vadd.xlane.f32.xlu1 %v4070_v55  ;;  %v11350_v7 = vunpack.c.l.bf16 %v11349_v37 }
 0x421   : > { %v4147_v51 = vsel %vm2563_vm5, %v3837_v1, 0.0  ;;  %v11351_v53 = vunpack.c.h.bf16 %v11349_v37  ;;  %v11353_v3 = vunpack.c.l.bf16 %v11352_v21  ;;  %v3074_v22 = vrot.slane %v9327_v24, %v9396_v26 }
 0x422   : > { %v3970_v23 = vmul.f32 %v8185_v57, %v11350_v7  ;;  %v4256_v61 = vadd.f32 %v4255_v6, %v3917_v41  ;;  %v4146_v38 = vadd.f32 %v4145_v19, %v4144_v5  ;;  %v11355_v10 = vunpack.c.l.bf16 %v11354_v60 }
 0x423   : > { %v3971_v63 = vmul.f32 %v8192_v32, %v11351_v53  ;;  %v3972_v58 = vmul.f32 %v8187_v40, %v11353_v3  ;;  %v11356_v28 = vunpack.c.h.bf16 %v11352_v21  ;;  %v11357_v41 = vunpack.c.h.bf16 %v11354_v60  ;;  %v11361_v53 = vld [vmem:[#allocation118_spill] sm:$0xff] }
 0x424   : > { %v3862_v2 = vmul.f32 %v8229_v16, %v11355_v10  ;;  %v11359_v24 = vunpack.c.l.bf16 %v11358_v45  ;;  %v9439_v55 = vsel %vm3033_vm10, %v3205_v43, %v9148_v62  ;;  %4257 = vadd.xlane.f32.xlu0 %v4256_v61  ;;  %v4148_v59 = vadd.f32 %v4147_v51, %v4146_v38 }
 0x425   : > { %v3973_v48 = vmul.f32 %v8194_v8, %v11356_v28  ;;  %v4332_v34 = vadd.f32 %v3971_v63, %v3970_v23  ;;  %v3863_v20 = vmul.f32 %v8237_v47, %v11357_v41  ;;  %v11360_v9 = vunpack.c.h.bf16 %v11358_v45  ;;  %v11369_v41 = vld [vmem:[#allocation133_spill] sm:$0xff] }
 0x426   : > { %v3864_v1 = vmul.f32 %v11334_v30, %v11359_v24  ;;  %v4181_v6 = vsel %vm2563_vm5, %v3862_v2, 0.0  ;;  %v9447_v5 = vsel %vm3033_vm10, %v3307_v49, %v9284_v52  ;;  %4149 = vadd.xlane.f32.xlu1 %v4148_v59  ;;  %v9453_v62 = vsel %vm3033_vm10, %v3273_v17, %v9166_v46  ;;  %v9460_v52 = vpop.xlane.xlu1 %2883  ;;  %v9462_v49 = vpop.xlane.xlu0 %2727  ;;  %v11364_v17 = vld [vmem:[#allocation119_spill] sm:$0xff] }
 0x427   : > { %v3865_v19 = vmul.f32 %v11336_v12, %v11360_v9  ;;  %v4333_v37 = vadd.f32 %v4332_v34, %v3972_v58  ;;  %v4182_v7 = vsel %vm2563_vm5, %v3863_v20, 0.0  ;;  %v3075_v43 = vsel %vm3040_vm11, %v3074_v22, %v9346_v0 }
 0x428   : > { %v4184_v23 = vsel %vm2563_vm5, %v3864_v1, 0.0  ;;  %v4183_v51 = vadd.f32 %v4182_v7, %v4181_v6  ;;  %v11362_v63 = vunpack.c.l.bf16 %v11361_v53  ;;  %v11363_v61 = vunpack.c.h.bf16 %v11361_v53 }
 0x429   : > { %v4334_v3 = vadd.f32 %v4333_v37, %v3973_v48  ;;  %v4186_v58 = vsel %vm2563_vm5, %v3865_v19, 0.0  ;;  %v11365_v38 = vunpack.c.l.bf16 %v11364_v17  ;;  %v3341_v60 = vrot.slane %v9359_v39, %v9193_v18 }
 0x42a   : > { %v4026_v21 = vmul.f32 %v8185_v57, %v11362_v63  ;;  %v4027_v46 = vmul.f32 %v8192_v32, %v11363_v61  ;;  %v4185_v22 = vadd.f32 %v4184_v23, %v4183_v51  ;;  %v11366_v57 = vunpack.c.l.bf16 %v7769_v11  ;;  %v9492_v19 = vpop.xlane.xlu0 %2805  ;;  %v11372_v63 = vld [vmem:[#allocation120_spill] sm:$0xff] }
 0x42b   : > { %v4028_v0 = vmul.f32 %v8187_v40, %v11365_v38  ;;  %v11367_v2 = vunpack.c.h.bf16 %v7769_v11  ;;  %4335 = vadd.xlane.f32.xlu0 %v4334_v3  ;;  %v11368_v48 = vunpack.c.h.bf16 %v11364_v17  ;;  %v11370_v40 = vunpack.c.l.bf16 %v11369_v41  ;;  %v11375_v17 = vld [vmem:[#allocation121_spill] sm:$0xff] }
 0x42c   : > { %v3890_v10 = vmul.f32 %v8229_v16, %v11366_v57  ;;  %v4410_v34 = vadd.f32 %v4027_v46, %v4026_v21  ;;  %v11371_v45 = vunpack.c.h.bf16 %v11369_v41  ;;  %v4187_v1 = vadd.f32 %v4186_v58, %v4185_v22 }
 0x42d   : > { %v3891_v28 = vmul.f32 %v8237_v47, %v11367_v2  ;;  %v4029_v32 = vmul.f32 %v8194_v8, %v11368_v48  ;;  %v3892_v20 = vmul.f32 %v11334_v30, %v11370_v40  ;;  %v3039_v9 = vrot.slane %v9400_v36, %v9396_v26  ;;  %v9494_v8 = vpop.xlane.xlu1 %4037  ;;  %v11378_v2 = vld [vmem:[#allocation134_spill] sm:$0xff] }
 0x42e   : > { %v3893_v24 = vmul.f32 %v11336_v12, %v11371_v45  ;;  %v4220_v11 = vsel %vm2563_vm5, %v3890_v10, 0.0  ;;  %v3142_v6 = vrot.slane %v9361_v35, %v9396_v26  ;;  %v4411_v37 = vadd.f32 %v4410_v34, %v4028_v0  ;;  %4188 = vadd.xlane.f32.xlu1 %v4187_v1  ;;  %v11381_v1 = vld [vmem:[#allocation135_spill] sm:$0xff] }
 0x42f   : > { %v4221_v59 = vsel %vm2563_vm5, %v3891_v28, 0.0  ;;  %v4223_v23 = vsel %vm2563_vm5, %v3892_v20, 0.0  ;;  %v3041_v53 = vsel %vm3040_vm11, %v3039_v9, %v9268_v50  ;;  %v11373_v21 = vunpack.c.l.bf16 %v11372_v63 }
 0x430   : > { %v4222_v7 = vadd.f32 %v4221_v59, %v4220_v11  ;;  %v4225_v51 = vsel %vm2563_vm5, %v3893_v24, 0.0  ;;  %v11374_v3 = vunpack.c.h.bf16 %v11372_v63  ;;  %v4412_v61 = vadd.f32 %v4411_v37, %v4029_v32  ;;  %v9520_v32 = vpop.xlane.xlu0 %2922 }
 0x431   : > { %v3806_v36 = vmul.f32 %v8229_v16, %v11373_v21  ;;  %v3349_v46 = vsel %vm3348_vm12, %v3075_v43, %v3041_v53  ;;  %v11376_v38 = vunpack.c.l.bf16 %v11375_v17  ;;  %v11377_v22 = vunpack.c.h.bf16 %v11375_v17  ;;  %v9522_v34 = vpop.xlane.xlu1 %4076 }
 0x432   : > { %v3807_v58 = vmul.f32 %v8237_v47, %v11374_v3  ;;  %v4224_v35 = vadd.f32 %v4223_v23, %v4222_v7  ;;  %v11379_v28 = vunpack.c.l.bf16 %v11378_v2  ;;  %4413 = vadd.xlane.f32.xlu0 %v4412_v61  ;;  %v11380_v20 = vunpack.c.h.bf16 %v11378_v2 }
 0x433   : > { %v3808_v0 = vmul.f32 %v11334_v30, %v11376_v38  ;;  %v3809_v50 = vmul.f32 %v11336_v12, %v11377_v22  ;;  %v4103_v57 = vsel %vm2563_vm5, %v3806_v36, 0.0  ;;  %v11382_v11 = vunpack.c.l.bf16 %v11381_v1  ;;  %v11387_v22 = vld [vmem:[#allocation125_spill] sm:$0xff] }
 0x434   : > { %v4104_v10 = vsel %vm2563_vm5, %v3807_v58, 0.0  ;;  %v3946_v48 = vmul.f32 %v8229_v16, %v11379_v28  ;;  %v4226_v43 = vadd.f32 %v4225_v51, %v4224_v35  ;;  %v3947_v45 = vmul.f32 %v8237_v47, %v11380_v20  ;;  %v11384_v58 = vld [vmem:[#allocation124_spill] sm:$0xff]  ;;  %v9546_v17 = vpop.xlane.xlu0 %4154 }
 0x435   : > { %v4105_v41 = vadd.f32 %v4104_v10, %v4103_v57  ;;  %v4106_v40 = vsel %vm2563_vm5, %v3808_v0, 0.0  ;;  %v4108_v24 = vsel %vm2563_vm5, %v3809_v50, 0.0  ;;  %v3948_v59 = vmul.f32 %v11334_v30, %v11382_v11  ;;  %v9548_v38 = vpop.xlane.xlu1 %4115 }
 0x436   : > { %v11383_v9 = vunpack.c.h.bf16 %v11381_v1  ;;  %v4298_v7 = vsel %vm2563_vm5, %v3946_v48, 0.0  ;;  %v3143_v23 = vsel %vm3040_vm11, %v3142_v6, %v9355_v33  ;;  %4227 = vadd.xlane.f32.xlu1 %v4226_v43  ;;  %v4299_v53 = vsel %vm2563_vm5, %v3947_v45, 0.0 }
 0x437   : > { %v4107_v51 = vadd.f32 %v4106_v40, %v4105_v41  ;;  %v3108_v63 = vrot.slane %v9426_v31, %v9396_v26  ;;  %v4300_v21 = vadd.f32 %v4299_v53, %v4298_v7  ;;  %v4301_v36 = vsel %vm2563_vm5, %v3948_v59, 0.0  ;;  %v11390_v40 = vld [vmem:[#allocation127_spill] sm:$0xff] }
 0x438   : > { %v3949_v37 = vmul.f32 %v11336_v12, %v11383_v9  ;;  %v11385_v61 = vunpack.c.l.bf16 %v11384_v58  ;;  %v11386_v0 = vunpack.c.h.bf16 %v11384_v58  ;;  %v11388_v50 = vunpack.c.l.bf16 %v11387_v22  ;;  %v11393_v9 = vld [vmem:[#allocation128_spill] sm:$0xff] }
 0x439   : > { %v4109_v33 = vadd.f32 %v4108_v24, %v4107_v51  ;;  %v3109_v6 = vsel %vm3040_vm11, %v3108_v63, %v9288_v25  ;;  %v4302_v10 = vadd.f32 %v4301_v36, %v4300_v21  ;;  %v11389_v28 = vunpack.c.h.bf16 %v11387_v22  ;;  %v9576_v51 = vpop.xlane.xlu0 %4193  ;;  %v9578_v53 = vpop.xlane.xlu1 %4232 }
 0x43a   : > { %v4303_v3 = vsel %vm2563_vm5, %v3949_v37, 0.0  ;;  %v3918_v35 = vmul.f32 %v8229_v16, %v11385_v61  ;;  %v3919_v31 = vmul.f32 %v8237_v47, %v11386_v0  ;;  %v3920_v57 = vmul.f32 %v11334_v30, %v11388_v50  ;;  %v11396_v50 = vld [vmem:[#allocation131_spill] sm:$0xff] }
 0x43b   : > { %v3351_v2 = vsel %vm3350_vm13, %v3109_v6, %v3349_v46  ;;  %v3921_v48 = vmul.f32 %v11336_v12, %v11389_v28  ;;  %4110 = vadd.xlane.f32.xlu0 %v4109_v33  ;;  %v11391_v20 = vunpack.c.l.bf16 %v11390_v40  ;;  %v11392_v24 = vunpack.c.h.bf16 %v11390_v40 }
 0x43c   : > { %v4259_v43 = vsel %vm2563_vm5, %v3918_v35, 0.0  ;;  %v4260_v25 = vsel %vm2563_vm5, %v3919_v31, 0.0  ;;  %v4262_v41 = vsel %vm2563_vm5, %v3920_v57, 0.0  ;;  %v3210_v46 = vrot.slane %v9398_v42, %v9396_v26 }
 0x43d   : > { %v3974_v45 = vmul.f32 %v8229_v16, %v11391_v20  ;;  %v3975_v1 = vmul.f32 %v8237_v47, %v11392_v24  ;;  %v4304_v11 = vadd.f32 %v4303_v3, %v4302_v10  ;;  %v4261_v59 = vadd.f32 %v4260_v25, %v4259_v43  ;;  %v9597_v43 = vpop.xlane.xlu0 %4310  ;;  %v9599_v25 = vpop.xlane.xlu1 %4271 }
 0x43e   : > { %v11394_v37 = vunpack.c.l.bf16 %v11393_v9  ;;  %v4264_v63 = vsel %vm2563_vm5, %v3921_v48, 0.0  ;;  %v11395_v21 = vunpack.c.h.bf16 %v11393_v9  ;;  %v3353_v6 = vsel %vm3352_vm14, %v3143_v23, %v3351_v2  ;;  %v11399_v2 = vld [vmem:[#allocation132_spill] sm:$0xff] }
 0x43f   : > { %v4337_v58 = vsel %vm2563_vm5, %v3974_v45, 0.0  ;;  %v4338_v42 = vsel %vm2563_vm5, %v3975_v1, 0.0  ;;  %4305 = vadd.xlane.f32.xlu1 %v4304_v11  ;;  %v4263_v3 = vadd.f32 %v4262_v41, %v4261_v59  ;;  %v3176_v0 = vrot.slane %v9462_v49, %v9396_v26  ;;  %v11402_v45 = vld [vmem:[#allocation136_spill] sm:$0xff] }
 0x440   : > { %v3976_v7 = vmul.f32 %v11334_v30, %v11394_v37  ;;  %v3977_v36 = vmul.f32 %v11336_v12, %v11395_v21  ;;  %v4339_v61 = vadd.f32 %v4338_v42, %v4337_v58  ;;  %v11397_v57 = vunpack.c.l.bf16 %v11396_v50  ;;  %v11405_v58 = vld [vmem:[#allocation137_spill] sm:$0xff] }
 0x441   : > { %v4265_v31 = vadd.f32 %v4264_v63, %v4263_v3  ;;  %v11398_v28 = vunpack.c.h.bf16 %v11396_v50  ;;  %v3177_v23 = vsel %vm3040_vm11, %v3176_v0, %v9350_v56  ;;  %v11400_v41 = vunpack.c.l.bf16 %v11399_v2  ;;  %v4160_v0 = vpop.xlane.xlu1 %4159 }
 0x442   : > { %v4340_v35 = vsel %vm2563_vm5, %v3976_v7, 0.0  ;;  %v4342_v33 = vsel %vm2563_vm5, %v3977_v36, 0.0  ;;  %v4002_v10 = vmul.f32 %v8229_v16, %v11397_v57  ;;  %v11401_v40 = vunpack.c.h.bf16 %v11399_v2 }
 0x443   : > { %v4341_v22 = vadd.f32 %v4340_v35, %v4339_v61  ;;  %v4003_v48 = vmul.f32 %v8237_v47, %v11398_v28  ;;  %v4004_v49 = vmul.f32 %v11334_v30, %v11400_v41  ;;  %v11403_v24 = vunpack.c.l.bf16 %v11402_v45  ;;  %4266 = vadd.xlane.f32.xlu0 %v4265_v31 }
 0x444   : > { %v4005_v20 = vmul.f32 %v11336_v12, %v11401_v40  ;;  %v3355_v59 = vsel %vm3354_vm15, %v3177_v23, %v3353_v6  ;;  %v4376_v9 = vsel %vm2563_vm5, %v4002_v10, 0.0  ;;  %v11404_v21 = vunpack.c.h.bf16 %v11402_v45  ;;  %v4350_v6 = vpop.xlane.xlu0 %4349 }
 0x445   : > { %v4030_v1 = vmul.f32 %v8229_v16, %v11403_v24  ;;  %v4343_v11 = vadd.f32 %v4342_v33, %v4341_v22  ;;  %v4377_v56 = vsel %vm2563_vm5, %v4003_v48, 0.0  ;;  %v4379_v7 = vsel %vm2563_vm5, %v4004_v49, 0.0  ;;  %v4199_v2 = vpop.xlane.xlu1 %4198 }
 0x446   : > { %v4378_v37 = vadd.f32 %v4377_v56, %v4376_v9  ;;  %v4381_v63 = vsel %vm2563_vm5, %v4005_v20, 0.0  ;;  %v4031_v36 = vmul.f32 %v8237_v47, %v11404_v21  ;;  %v11406_v16 = vunpack.c.l.bf16 %v11405_v58 }
 0x447   : > { %4344 = vadd.xlane.f32.xlu1 %v4343_v11  ;;  %v11407_v3 = vunpack.c.h.bf16 %v11405_v58  ;;  %v4415_v35 = vsel %vm2563_vm5, %v4030_v1, 0.0  ;;  %v3244_v33 = vrot.slane %v9492_v19, %v9396_v26  ;;  %v3278_v31 = vrot.slane %v9424_v4, %v9396_v26 }
 0x448   : > { %v4032_v42 = vmul.f32 %v11334_v30, %v11406_v16  ;;  %v3312_v47 = vrot.slane %v9460_v52, %v9396_v26  ;;  %v4380_v22 = vadd.f32 %v4379_v7, %v4378_v37  ;;  %v4416_v30 = vsel %vm2563_vm5, %v4031_v36, 0.0  ;;  %v4389_v23 = vpop.xlane.xlu0 %4388 }
 0x449   : > { %v4033_v61 = vmul.f32 %v11336_v12, %v11407_v3  ;;  %v4417_v50 = vadd.f32 %v4416_v30, %v4415_v35  ;;  %v3245_v12 = vsel %vm3040_vm11, %v3244_v33, %v9365_v15  ;;  %v3346_v19 = vrot.slane %v9520_v32, %v9396_v26 }
 0x44a   : > { %v4418_v57 = vsel %vm2563_vm5, %v4032_v42, 0.0  ;;  %v3211_v10 = vsel %vm3040_vm11, %v3210_v46, %v9439_v55  ;;  %v4382_v28 = vadd.f32 %v4381_v63, %v4380_v22  ;;  %v3342_v15 = vsel %vm3033_vm10, %v3341_v60, %v9226_v29 }
 0x44b   : > { %v4420_v4 = vsel %vm2563_vm5, %v4033_v61, 0.0  ;;  %v4419_v52 = vadd.f32 %v4418_v57, %v4417_v50  ;;  %v3357_v48 = vsel %vm3356_vm0, %v3211_v10, %v3355_v59  ;;  %v3279_v55 = vsel %vm3040_vm11, %v3278_v31, %v9453_v62  ;;  %v4316_v62 = vpop.xlane.xlu1 %4315 }
 0x44c   : > { %4383 = vadd.xlane.f32.xlu0 %v4382_v28  ;;  %v3359_v32 = vsel %vm3358_vm1, %v3245_v12, %v3357_v48  ;;  %v3313_v49 = vsel %vm3040_vm11, %v3312_v47, %v9447_v5  ;;  %v3347_v40 = vsel %vm3040_vm11, %v3346_v19, %v3342_v15  ;;  %v4599_v29 = vrot.slane %v9546_v17, %v8408_v14  ;;  %v4043_v60 = vpop.xlane.xlu0 %4042 }
 0x44d   : > { %v4421_v46 = vadd.f32 %v4420_v4, %v4419_v52  ;;  %v3361_v41 = vsel %vm3360_vm2, %v3279_v55, %v3359_v32  ;;  %v3362_v39 = vsel %vm3348_vm12, %v3347_v40, %v3313_v49  ;;  %v4633_v24 = vrot.slane %v9576_v51, %v8408_v14 }
 0x44e   : > { %v3366_v20 = vsel %vm3365_vm3, %v3361_v41, 0.0  ;;  %v3370_v45 = vsel %vm3369_vm4, %v3362_v39, 0.0  ;;  %v4603_v5 = vrot.slane %v4160_v0, %v8524_v13  ;;  %v4637_v1 = vrot.slane %v4199_v2, %v8524_v13 }
 0x44f   : > { %4422 = vadd.xlane.f32.xlu1 %v4421_v46  ;;  %v4497_v11 = vrot.slane %v9494_v8, %v8408_v14  ;;  %v4735_v59 = vrot.slane %v9597_v43, %v8408_v14  ;;  %v4739_v17 = vrot.slane %v4316_v62, %v8524_v13  ;;  %v4501_v9 = vrot.slane %v4043_v60, %v8524_v13  ;;  %v4355_v63 = vpop.xlane.xlu1 %4354 }
 0x450   : > { %3367 = vadd.xlane.f32.xlu0 %v3366_v20  ;;  %v4604_v56 = vsel %vm3005_vm6, %v4603_v5, %v4599_v29  ;;  %v4638_v37 = vsel %vm3005_vm6, %v4637_v1, %v4633_v24  ;;  %v4082_v21 = vpop.xlane.xlu0 %4081  ;;  %v4531_v8 = vrot.slane %v9522_v34, %v8408_v14  ;;  %v4769_v43 = vrot.slane %v4350_v6, %v8408_v14 }
 0x451   : > { %v4740_v51 = vsel %vm3005_vm6, %v4739_v17, %v4735_v59  ;;  %v4502_v7 = vsel %vm3005_vm6, %v4501_v9, %v4497_v11  ;;  %v4773_v36 = vrot.slane %v4355_v63, %v8524_v13  ;;  %v4535_v58 = vrot.slane %v4082_v21, %v8524_v13 }
 0x452   : > { %v4803_v61 = vrot.slane %v4389_v23, %v8408_v14  ;;  %v4565_v0 = vrot.slane %v9548_v38, %v8408_v14  ;;  %v4667_v22 = vrot.slane %v9578_v53, %v8408_v14  ;;  %v4701_v10 = vrot.slane %v9599_v25, %v8408_v14 }
 0x453   : > { %3371 = vadd.xlane.f32.xlu1 %v3370_v45  ;;  %v4774_v16 = vsel %vm3005_vm6, %v4773_v36, %v4769_v43  ;;  %v4536_v42 = vsel %vm3005_vm6, %v4535_v58, %v4531_v8  ;;  %v4394_v3 = vpop.xlane.xlu1 %4393 }
 0x454   : > { %v4807_v35 = vrot.slane %v4394_v3, %v8524_v13  ;;  %v4121_v33 = vpop.xlane.xlu0 %4120 }
 0x455   : > { %v4569_v6 = vrot.slane %v4121_v33, %v8524_v13 }
 0x456   : > { %v4808_v34 = vsel %vm3005_vm6, %v4807_v35, %v4803_v61 }
 0x457   : > { %v4570_v31 = vsel %vm3005_vm6, %v4569_v6, %v4565_v0  ;;  %v4048_v50 = vpop.xlane.xlu1 %4047 }
 0x458   : > { %v4238_v47 = vpop.xlane.xlu0 %4237  ;;  %v4506_v57 = vrot.slane %v4048_v50, %v8664_v44 }
 0x459   : > { %v4671_v30 = vrot.slane %v4238_v47, %v8524_v13 }
 0x45a   : > { %v9694_v19 = vsel %vm3012_vm7, %v4506_v57, %v4502_v7 }
 0x45b   : > { %v4672_v12 = vsel %vm3005_vm6, %v4671_v30, %v4667_v22  ;;  %v4126_v4 = vpop.xlane.xlu1 %4125 }
 0x45c   : > { %v4277_v38 = vpop.xlane.xlu0 %4276  ;;  %v4574_v53 = vrot.slane %v4126_v4, %v8664_v44 }
 0x45d   : > { %v4705_v28 = vrot.slane %v4277_v38, %v8524_v13 }
 0x45e   : > { %v9702_v23 = vsel %vm3012_vm7, %v4574_v53, %v4570_v31 }
 0x45f   : > { %v4706_v52 = vsel %vm3005_vm6, %v4705_v28, %v4701_v10  ;;  %v4165_v55 = vpop.xlane.xlu1 %4164 }
 0x460   : > { %v4087_v48 = vpop.xlane.xlu0 %4086  ;;  %v4608_v32 = vrot.slane %v4165_v55, %v8664_v44 }
 0x461   : > { %v4540_v2 = vrot.slane %v4087_v48, %v8664_v44 }
 0x462   : > { %v9708_v25 = vsel %vm3012_vm7, %v4608_v32, %v4604_v56 }
 0x463   : > { %v4541_v15 = vsel %vm3012_vm7, %v4540_v2, %v4536_v42  ;;  %v4282_v49 = vpop.xlane.xlu1 %4281 }
 0x464   : > { %v4204_v46 = vpop.xlane.xlu0 %4203  ;;  %v4710_v20 = vrot.slane %v4282_v49, %v8664_v44 }
 0x465   : > { %v4642_v41 = vrot.slane %v4204_v46, %v8664_v44 }
 0x466   : > { %v9716_v29 = vsel %vm3012_vm7, %v4710_v20, %v4706_v52 }
 0x467   : > { %v9712_v40 = vsel %vm3012_vm7, %v4642_v41, %v4638_v37  ;;  %v4321_v45 = vpop.xlane.xlu1 %4320 }
 0x468   : > { %v4243_v39 = vpop.xlane.xlu0 %4242  ;;  %v4744_v24 = vrot.slane %v4321_v45, %v8664_v44 }
 0x469   : > { %v4676_v62 = vrot.slane %v4243_v39, %v8664_v44 }
 0x46a   : > { %v9724_v1 = vsel %vm3012_vm7, %v4744_v24, %v4740_v51 }
 0x46b   : > { %v9720_v60 = vsel %vm3012_vm7, %v4676_v62, %v4672_v12  ;;  %v4399_v17 = vpop.xlane.xlu1 %4398 }
 0x46c   : > { %v4360_v5 = vpop.xlane.xlu0 %4359  ;;  %v4812_v9 = vrot.slane %v4399_v17, %v8664_v44 }
 0x46d   : > { %v4778_v11 = vrot.slane %v4360_v5, %v8664_v44 }
 0x46e   : > { %v9730_v37 = vsel %vm3012_vm7, %v4812_v9, %v4808_v34 }
 0x46f   : > { %v4779_v59 = vsel %vm3012_vm7, %v4778_v11, %v4774_v16  ;;  %v4053_v63 = vpop.xlane.xlu1 %4052  ;;  %vm4883_vm7 = vcmask 74752  }
 0x470   : > { %v4092_v56 = vpop.xlane.xlu0 %4091  ;;  %v4511_v32 = vrot.slane %v4053_v63, %v8849_v27 }
 0x471   : > { %v4545_v7 = vrot.slane %v4092_v56, %v8849_v27 }
 0x472   : > { %v4512_v62 = vsel %vm3019_vm8, %v4511_v32, %v9694_v19 }
 0x473   : > { %v4546_v21 = vsel %vm3019_vm8, %v4545_v7, %v4541_v15  ;;  %v4170_v43 = vpop.xlane.xlu1 %4169 }
 0x474   : > { %v4131_v8 = vpop.xlane.xlu0 %4130  ;;  %v4613_v41 = vrot.slane %v4170_v43, %v8849_v27 }
 0x475   : > { %v4579_v46 = vrot.slane %v4131_v8, %v8849_v27 }
 0x476   : > { %v4614_v24 = vsel %vm3019_vm8, %v4613_v41, %v9708_v25 }
 0x477   : > { %v4209_v36 = vpop.xlane.xlu1 %4208  ;;  %v4580_v45 = vsel %vm3019_vm8, %v4579_v46, %v9702_v23 }
 0x478   : > { %v9734_v51 = vpop.xlane.xlu0 %4247  ;;  %v4647_v49 = vrot.slane %v4209_v36, %v8849_v27 }
 0x479   : > { %v4681_v11 = vrot.slane %v9734_v51, %v8849_v27 }
 0x47b   : > { %v4365_v16 = vpop.xlane.xlu1 %4364 }
 0x47c   : > { %v9736_v58 = vpop.xlane.xlu0 %4286  ;;  %v4783_v42 = vrot.slane %v4365_v16, %v8849_v27 }
 0x47d   : > { %v4715_v17 = vrot.slane %v9736_v58, %v8849_v27 }
 0x47e   : > { %v9740_v44 = vsel %vm3019_vm8, %v4783_v42, %v4779_v59  ;;  %v4648_v59 = vsel %vm3019_vm8, %v4647_v49, %v9712_v40 }
 0x47f   : > { %v4097_v61 = vpop.xlane.xlu1 %4096 }
 0x480   : > { %v9742_v3 = vpop.xlane.xlu0 %4325  ;;  %v4550_v39 = vrot.slane %v4097_v61, %v9013_v54 }
 0x481   : > { %v4749_v23 = vrot.slane %v9742_v3, %v8849_v27 }
 0x482   : > { %v4551_v63 = vsel %vm3026_vm9, %v4550_v39, %v4546_v21 }
 0x483   : > { %v4214_v33 = vpop.xlane.xlu1 %4213 }
 0x484   : > { %v9744_v35 = vpop.xlane.xlu0 %4403  ;;  %v4652_v5 = vrot.slane %v4214_v33, %v9013_v54 }
 0x486   : > { %v4653_v51 = vsel %vm3026_vm9, %v4652_v5, %v4648_v59  ;;  %v4682_v5 = vsel %vm3019_vm8, %v4681_v11, %v9720_v60 }
 0x487   : > { %v9746_v0 = vpop.xlane.xlu1 %4252 }
 0x488   : > { %v4058_v34 = vpop.xlane.xlu0 %4057  ;;  %v4686_v36 = vrot.slane %v9746_v0, %v9013_v54 }
 0x489   : > { %v4516_v9 = vrot.slane %v4058_v34, %v9013_v54 }
 0x48b   : > { %v9748_v6 = vpop.xlane.xlu1 %4291  ;;  %v4517_v3 = vsel %vm3026_vm9, %v4516_v9, %v4512_v62 }
 0x48c   : > { %v4136_v31 = vpop.xlane.xlu0 %4135 }
 0x48d   : > { %v4584_v56 = vrot.slane %v4136_v31, %v9013_v54 }
 0x48f   : > { %v9750_v47 = vpop.xlane.xlu1 %4369  ;;  %v4585_v34 = vsel %vm3026_vm9, %v4584_v56, %v4580_v45 }
 0x490   : > { %v4175_v22 = vpop.xlane.xlu0 %4174 }
 0x491   : > { %v4618_v8 = vrot.slane %v4175_v22, %v9013_v54 }
 0x493   : > { %v4102_v50 = vpop.xlane.xlu1 %4101 }
 0x494   : > { %v9752_v30 = vpop.xlane.xlu0 %4330  ;;  %v4555_v25 = vrot.slane %v4102_v50, %v9193_v18  ;;  %v4619_v50 = vsel %vm3026_vm9, %v4618_v8, %v4614_v24 }
 0x495   : > { %v4754_v62 = vrot.slane %v9752_v30, %v9013_v54  ;;  %v4716_v30 = vsel %vm3019_vm8, %v4715_v17, %v9716_v29 }
 0x496   : > { %v4556_v31 = vsel %vm3033_vm10, %v4555_v25, %v4551_v63  ;;  %v4750_v25 = vsel %vm3019_vm8, %v4749_v23, %v9724_v1  ;;  %v4788_v1 = vrot.slane %v9750_v47, %v9013_v54 }
 0x497   : > { %v4141_v12 = vpop.xlane.xlu1 %4140 }
 0x498   : > { %v9754_v57 = vpop.xlane.xlu0 %4408  ;;  %v4589_v40 = vrot.slane %v4141_v12, %v9193_v18 }
 0x49a   : > { %v4590_v12 = vsel %vm3033_vm10, %v4589_v40, %v4585_v34 }
 0x49c   : > { %v9756_v38 = vpop.xlane.xlu1 %4296 }
 0x49f   : > { %v4063_v10 = vpop.xlane.xlu0 %4062 }
 0x4a0   : > { %v4521_v7 = vrot.slane %v4063_v10, %v9193_v18 }
 0x4a2   : > { %v9758_v28 = vpop.xlane.xlu1 %4374  ;;  %v4522_v22 = vsel %vm3033_vm10, %v4521_v7, %v4517_v3  ;;  %v4755_v7 = vsel %vm3026_vm9, %v4754_v62, %v4750_v25 }
 0x4a6   : > { %v4180_v4 = vpop.xlane.xlu0 %4179 }
 0x4a7   : > { %v4623_v58 = vrot.slane %v4180_v4, %v9193_v18 }
 0x4aa   : > { %v4219_v52 = vpop.xlane.xlu0 %4218 }
 0x4ab   : > { %v4657_v21 = vrot.slane %v4219_v52, %v9193_v18 }
 0x4ad   : > { %v4072_v53 = vpop.xlane.xlu1 %4071  ;;  %v4658_v46 = vsel %vm3033_vm10, %v4657_v21, %v4653_v51 }
 0x4ae   : > { %v4526_v43 = vrot.slane %v4072_v53, %v9396_v26  ;;  %v4720_v53 = vrot.slane %v9748_v6, %v9013_v54  ;;  %v4725_v6 = vrot.slane %v9756_v38, %v9193_v18  ;;  %v4687_v38 = vsel %vm3026_vm9, %v4686_v36, %v4682_v5 }
 0x4af   : > { %v4817_v36 = vrot.slane %v9744_v35, %v8849_v27  ;;  %v4789_v27 = vsel %vm3026_vm9, %v4788_v1, %v9740_v44 }
 0x4b0   : > { %v4527_v10 = vsel %vm3040_vm11, %v4526_v43, %v4522_v22  ;;  %v4721_v60 = vsel %vm3026_vm9, %v4720_v53, %v4716_v30 }
 0x4b1   : > { %v9760_v48 = vpop.xlane.xlu0 %4257  ;;  %v4726_v63 = vsel %vm3033_vm10, %v4725_v6, %v4721_v60  ;;  %v4818_v35 = vsel %vm3019_vm8, %v4817_v36, %v9730_v37 }
 0x4b2   : > { %v4691_v41 = vrot.slane %v9760_v48, %v9193_v18 }
 0x4b3   : > { %v4150_v2 = vpop.xlane.xlu1 %4149 }
 0x4b4   : > { %v4594_v16 = vrot.slane %v4150_v2, %v9396_v26  ;;  %v4624_v2 = vsel %vm3033_vm10, %v4623_v58, %v4619_v50  ;;  %v4692_v11 = vsel %vm3033_vm10, %v4691_v41, %v4687_v38  ;;  %v4793_v58 = vrot.slane %v9758_v28, %v9193_v18 }
 0x4b6   : > { %v4794_v28 = vsel %vm3033_vm10, %v4793_v58, %v4789_v27 }
 0x4b8   : > { %v9762_v15 = vpop.xlane.xlu0 %4335 }
 0x4b9   : > { %v4759_v48 = vrot.slane %v9762_v15, %v9193_v18 }
 0x4bb   : > { %v4189_v55 = vpop.xlane.xlu1 %4188  ;;  %v4760_v17 = vsel %vm3033_vm10, %v4759_v48, %v4755_v7 }
 0x4bc   : > { %v4628_v61 = vrot.slane %v4189_v55, %v9396_v26  ;;  %v4595_v55 = vsel %vm3040_vm11, %v4594_v16, %v4590_v12 }
 0x4be   : > { %v4629_v49 = vsel %vm3040_vm11, %v4628_v61, %v4624_v2 }
 0x4bf   : > { %v9768_v20 = vpop.xlane.xlu0 %4413 }
 0x4c0   : > { %v4827_v47 = vrot.slane %v9768_v20, %v9193_v18 }
 0x4c3   : > { %v4228_v19 = vpop.xlane.xlu1 %4227 }
 0x4c4   : > { %v4662_v0 = vrot.slane %v4228_v19, %v9396_v26 }
 0x4c6   : > { %v4663_v45 = vsel %vm3040_vm11, %v4662_v0, %v4658_v46 }
 0x4c8   : > { %v4111_v42 = vpop.xlane.xlu0 %4110 }
 0x4c9   : > { %v4560_v33 = vrot.slane %v4111_v42, %v9396_v26  ;;  %v4822_v42 = vrot.slane %v9754_v57, %v9013_v54 }
 0x4cb   : > { %v4561_v4 = vsel %vm3040_vm11, %v4560_v33, %v4556_v31  ;;  %v4823_v54 = vsel %vm3026_vm9, %v4822_v42, %v4818_v35 }
 0x4cc   : > { %v4306_v52 = vpop.xlane.xlu1 %4305  ;;  %v4834_v32 = vsel %vm3348_vm12, %v4561_v4, %v4527_v10  ;;  %v4828_v18 = vsel %vm3033_vm10, %v4827_v47, %v4823_v54 }
 0x4cd   : > { %v4835_v39 = vsel %vm3350_vm13, %v4595_v55, %v4834_v32  ;;  %v4730_v59 = vrot.slane %v4306_v52, %v9396_v26  ;;  %v5113_v52 = vld [vmem:[%s9937_s5] ss:$0 sm:$0xff] }
 0x4ce   : > { %v4836_v24 = vsel %vm3352_vm14, %v4629_v49, %v4835_v39 }
 0x4cf   : > { %v4837_v19 = vsel %vm3354_vm15, %v4663_v45, %v4836_v24  ;;  %v4731_v40 = vsel %vm3040_vm11, %v4730_v59, %v4726_v63 }
 0x4d0   : > { %v4267_v9 = vpop.xlane.xlu0 %4266 }
 0x4d1   : > { %v4696_v56 = vrot.slane %v4267_v9, %v9396_v26 }
 0x4d3   : > { %v4697_v8 = vsel %vm3040_vm11, %v4696_v56, %v4692_v11 }
 0x4d4   : > { %v4345_v15 = vpop.xlane.xlu1 %4344  ;;  %v4838_v43 = vsel %vm3356_vm0, %v4697_v8, %v4837_v19 }
 0x4d5   : > { %v4764_v29 = vrot.slane %v4345_v15, %v9396_v26  ;;  %v4839_v51 = vsel %vm3358_vm1, %v4731_v40, %v4838_v43 }
 0x4d7   : > { %v4765_v23 = vsel %vm3040_vm11, %v4764_v29, %v4760_v17 }
 0x4d8   : > { %v4840_v16 = vsel %vm3360_vm2, %v4765_v23, %v4839_v51 }
 0x4d9   : > { %v4384_v3 = vpop.xlane.xlu0 %4383  ;;  %v4844_v21 = vsel %vm3365_vm3, %v4840_v16, 0.0 }
 0x4da   : > { %v4798_v61 = vrot.slane %v4384_v3, %v9396_v26  ;;  %4845 = vadd.xlane.f32.xlu0 %v4844_v21 }
 0x4dc   : > { %v4423_v33 = vpop.xlane.xlu1 %4422  ;;  %v4799_v34 = vsel %vm3040_vm11, %v4798_v61, %v4794_v28 }
 0x4dd   : > { %v4832_v57 = vrot.slane %v4423_v33, %v9396_v26  ;;  %v3368_v37 = vpop.xlane.xlu0 %3367 }
 0x4de   : > { %v4855_v12 = vrot.slane %v3368_v37, %v8408_v14 }
 0x4df   : > { %v4833_v20 = vsel %vm3040_vm11, %v4832_v57, %v4828_v18 }
 0x4e0   : > { %v4841_v31 = vsel %vm3348_vm12, %v4833_v20, %v4799_v34  ;;  %v3372_v22 = vpop.xlane.xlu1 %3371 }
 0x4e1   : > { %v4847_v44 = vsel %vm3369_vm4, %v4841_v31, 0.0  ;;  %v4859_v50 = vrot.slane %v3372_v22, %v8524_v13 }
 0x4e2   : > { %4848 = vadd.xlane.f32.xlu1 %v4847_v44 }
 0x4e3   : > { %v4860_v53 = vsel %vm3005_vm6, %v4859_v50, %v4855_v12 }
 0x567   : > { %v4846_v0 = vpop.xlane.xlu0 %4845 }
 0x568   : > { %v4867_v10 = vrot.slane %v4846_v0, %v8408_v14 }
 0x56f   : > { %v4849_v26 = vpop.xlane.xlu1 %4848 }
 0x570   : > { %v4871_v4 = vrot.slane %v4849_v26, %v8524_v13 }
 0x572   : > { %v4872_v2 = vsel %vm3005_vm6, %v4871_v4, %v4867_v10 }
 0x573   : > { %v4874_v55 = vsel %vm2563_vm5, %v4860_v53, %v4872_v2 }
 0x574   : > { %v4882_v32 = vadd.f32 %v5113_v52, %v4874_v55 }
 0x576   : > { %4884 = vst.msk [vmem:[%s244_s13] sm:$0x3] %vm4883_vm7, %v4882_v32 }
 0x577   : > { %5318 = shalt.err (!%p5315_p3)
}
 0x578   : > { %s5319_s28 = scalar_lea.hbm %s9890_s17, 32  ;;  %s5323_s10 = scalar_lea.hbm %s9938_s6, 64 }
 0x579   : > { %p5320_p4 = scmp.ne.s32.totalorder %s9890_s17, %s5319_s28  ;;  %p5324_p9 = scmp.lt.u32.totalorder %s9890_s17, %s9938_s6 }
 0x57a   : > { %p5325_p10 = scmp.lt.u32.totalorder %s5323_s10, %s5319_s28  ;;  %p5327_p12 = scmp.lt.u32.totalorder %s5319_s28, %s9890_s17 }
 0x57b   : > { %p5321_p7 = pnand %p5320_p4, %p5445_p5 }
 0x57c   : > { %p5326_p11 = por %p5325_p10, %p5324_p9 }
 0x57d   : > { %p5322_p8 = pneg %p5321_p7 }
 0x57e   : > { %p5328_p13 = por %p5327_p12, %p5326_p11 }
 0x580   : > { %p5329_p0 = pnand %p5328_p13, %p5322_p8 }
 0x582   : > { %5332 = shalt.err (!%p5329_p0)
}
 0x583   : > { %5183 = dma.vmem_to_hbm [thread:$0]  (%p5445_p5), %s9892_s14, 32, %s9890_s17, %s4886_s25  }
 0x584 PF: > { %p5189_p1 = scmp.ge.s32.totalorder %s5367_s24, 2  ;;  %s4911_s13 = sand.u32 1, %s5355_s21  }
 0x585   : > { %s4912_s15 = scalar_lea.sflag [#allocation3], %s4911_s13 }
 0x586   : > { %p5186_p2 = pnand %p5189_p1, %p5449_p6 }
 0x588   : > { %5350 = dma.done.wait (!%p5186_p2), %s4912_s15, 32  }
 0x589   : > { %5352 = vsyncadd (!%p5186_p2), %s4912_s15, 4294967264  ;;  %p16_p3 = scmp.ge.s32.totalorder %s5432_s27, 4   ;;  %s11408_s21 = smov %s5359_s22 }
 0x58a   : > { %s11409_s22 = smov %s5363_s23  ;;  %s11410_s23 = smov %s5443_s30 }
 0x58b   : > { %s11411_s24 = smov %s5432_s27  ;;  %18 = sbr.rel (!%p16_p3) target bundleno = 3 (0x3), region = 80 }
 0x592   :  { %4917 = vsyncpa [#allocation3], 1 }
 0x593   :  { %4919 = vsyncpa [#allocation3 + $0x1], 1 }

</bundles_post_ra>
